<compile_context>
chip_gen: v5e
topology: v5e:2x2
jax: 0.10.0
libtpu: 0.0.40
codegen_flags: <defaults>
</compile_context>

<pallas_src>
import functools

import jax
import jax.numpy as jnp
from jax.experimental import pallas as pl
from jax.experimental.pallas import tpu as pltpu


VMEM_SPEC = pl.BlockSpec(memory_space=pltpu.MemorySpace.VMEM)


def _round_up(n, m):
    return ((n + m - 1) // m) * m


# ----------------------------------------------------------------------------
# Fused CVAE forward kernel
# ----------------------------------------------------------------------------
def _cvae_fused_kernel(
    # inputs: data + packed parameter slabs
    x_ref, eps_ref, w_ref, b_ref,
    # outputs
    musig_ref, tutv_ref,
    # scratch: ping-pong (S*B, 4*Hmax) gate pre-activation slabs
    xg_a, xg_b,
    *, S, B, cond, Hen, Hde, wmeta, bmeta,
):
    D = x_ref.shape[1]
    rep = eps_ref.shape[1]

    def W(name):
        off, nr, nc = wmeta[name]
        return w_ref[off:off + nr, 0:nc]          # bf16, 16-sublane-aligned rows

    def Bias(name):
        row, width = bmeta[name]
        return b_ref[row:row + 1, 0:width]        # f32 (1, width) row

    def mm(x, w):
        return jnp.dot(x.astype(jnp.bfloat16), w, preferred_element_type=jnp.float32)

    def lstm_layer(xg_ref, whh, H, h0, c0, emit=None):
        """One LSTM layer, fully unrolled over time.

        xg_ref[:, :4H] must already hold x_t @ W_ih + b (+ any time-invariant
        gate term).  whh is the full (H, 4H) recurrent block: one MXU matmul
        per step.  emit(r0, r1, h_bf16) runs per step OFF the h->h chain and
        is used to fuse the next layer's input projection / the output head.
        """
        h, c = h0, c0
        hb = h0.astype(jnp.bfloat16)
        for t in range(S):                        # static trip count -> unrolled
            r0, r1 = t * B, (t + 1) * B           # B multiple of 8 -> aligned slabs
            pre = xg_ref[r0:r1, 0:4 * H] + jnp.dot(
                hb, whh, preferred_element_type=jnp.float32)
            ig = jax.nn.sigmoid(pre[:, 0:H])      # PyTorch gate order: i, f, g, o
            fg = jax.nn.sigmoid(pre[:, H:2 * H])
            gg = jnp.tanh(pre[:, 2 * H:3 * H])
            og = jax.nn.sigmoid(pre[:, 3 * H:4 * H])
            c = fg * c + ig * gg
            h = og * jnp.tanh(c)
            hb = h.astype(jnp.bfloat16)
            if emit is not None:
                emit(r0, r1, hb)
        return h

    X = x_ref[...]                                # (S*B, D), time-major blocks

    # ------------------------------ Encoder ------------------------------
    e_enc = mm(X, W("we_emb")) + Bias("be_emb")                     # (S*B, emb)
    xg_a[:, 0:4 * Hen] = mm(e_enc, W("we_ih0")) + Bias("be_l0")     # layer-0 xg

    we_ih1 = W("we_ih1")
    be_l1 = Bias("be_l1")

    def emit_enc0(r0, r1, hb):                    # fuse layer-1 input projection
        xg_b[r0:r1, 0:4 * Hen] = jnp.dot(
            hb, we_ih1, preferred_element_type=jnp.float32) + be_l1

    zeros_en = jnp.zeros((B, Hen), jnp.float32)
    lstm_layer(xg_a, W("we_hh0"), Hen, zeros_en, zeros_en, emit=emit_enc0)
    h_last = lstm_layer(xg_b, W("we_hh1"), Hen, zeros_en, zeros_en)  # lstm_out[:, -1]

    musig = mm(h_last, W("w_musig")) + Bias("b_musig")               # fused [mu|sigma]
    musig_ref[...] = musig
    mu = musig[:, 0:rep]
    sigma = musig[:, rep:2 * rep]

    # Reparametrization trick: z = mu + exp(0.5*sigma) * eps  (from SSA values)
    z = mu + jnp.exp(0.5 * sigma) * eps_ref[...]                     # (B, rep)

    # ------------------------------ Decoder ------------------------------
    cond_x = X[0:B, D - cond:D]                                      # x[:, 0, -cond:]

    # f_rep([z | conditional]) without materializing the lane concat.
    rep_x = mm(z, W("wd_frep_z")) + mm(cond_x, W("wd_frep_c")) + Bias("bd_frep")

    # decoder h_0 / c_0 filled with x_dec[b, 0, -cond] (a column of rep_x)
    cond_val = rep_x[:, D - cond:D - cond + 1]                       # (B, 1)
    h0d = jnp.broadcast_to(cond_val, (B, Hde))
    c0d = h0d

    # origin_rep ([z|cond]) gate contribution + layer-0 bias, folded once.
    extra0 = mm(z, W("wd_ih0_z")) + mm(cond_x, W("wd_ih0_c")) + Bias("bd_l0")

    # TODO(synk): word_drop > 0 (random timestep zeroing) not implemented;
    # the reference forward here uses word_drop = 0 where that loop is a no-op.
    wd_emb_w = W("wd_emb")
    bd_emb = Bias("bd_emb")
    wd_ih0_e = W("wd_ih0_e")

    # Decoder layer-0 xg: block 0 comes from f_rep output, blocks 1..S-1 from
    # x[:, :-1, :]; extra0 (bias + rep gates) folded in outside the step loop.
    e_dec0 = mm(rep_x, wd_emb_w) + bd_emb                            # (B, emb)
    xg_a[0:B, 0:4 * Hde] = mm(e_dec0, wd_ih0_e) + extra0
    e_dec_rest = mm(X[0:(S - 1) * B, :], wd_emb_w) + bd_emb          # ((S-1)*B, emb)
    xg_rest = mm(e_dec_rest, wd_ih0_e)                               # ((S-1)*B, 4Hde)
    for t in range(1, S):
        xg_a[t * B:(t + 1) * B, 0:4 * Hde] = xg_rest[(t - 1) * B:t * B, :] + extra0

    wd_ih1 = W("wd_ih1")
    bd_l1 = Bias("bd_l1")

    def emit_dec0(r0, r1, hb):
        xg_b[r0:r1, 0:4 * Hde] = jnp.dot(
            hb, wd_ih1, preferred_element_type=jnp.float32) + bd_l1

    lstm_layer(xg_a, W("wd_hh0"), Hde, h0d, c0d, emit=emit_dec0)

    wd_ih2 = W("wd_ih2")
    bd_l2 = Bias("bd_l2")

    def emit_dec1(r0, r1, hb):
        xg_a[r0:r1, 0:4 * Hde] = jnp.dot(
            hb, wd_ih2, preferred_element_type=jnp.float32) + bd_l2

    lstm_layer(xg_b, W("wd_hh1"), Hde, h0d, c0d, emit=emit_dec1)

    # TODO(synk): nn.Dropout(0.5) runs as identity (eval-mode semantics).
    w_tutv = W("w_tutv")
    b_tutv = Bias("b_tutv")

    def emit_dec2(r0, r1, hb):                     # fuse [f_tu | f_tv] output head
        tutv_ref[r0:r1, :] = jnp.dot(
            hb, w_tutv, preferred_element_type=jnp.float32) + b_tutv

    lstm_layer(xg_a, W("wd_hh2"), Hde, h0d, c0d, emit=emit_dec2)


# ----------------------------------------------------------------------------
# Parameter init (shapes follow the PyTorch __init__) and kernel-side packing
# ----------------------------------------------------------------------------
def init_params(key, dfs_size, time_size, condition_size,
                emb_size, en_hidden, de_hidden, rep_size):
    keys = iter(jax.random.split(key, 64))

    def lin(din, dout):
        # stored transposed (Din, Dout) to feed the kernel directly
        w = 0.1 * jax.random.normal(next(keys), (din, dout), jnp.float32)
        b = 0.1 * jax.random.normal(next(keys), (dout,), jnp.float32)
        return (w, b)

    def lstm_layer(din, H):
        wih_t = 0.1 * jax.random.normal(next(keys), (din, 4 * H), jnp.float32)
        whh_t = 0.1 * jax.random.normal(next(keys), (H, 4 * H), jnp.float32)
        b = 0.1 * jax.random.normal(next(keys), (4 * H,), jnp.float32)  # = b_ih + b_hh
        return (wih_t, whh_t, b)

    return dict(
        enc_emb=lin(dfs_size, emb_size),
        enc_lstm=[lstm_layer(emb_size, en_hidden),
                  lstm_layer(en_hidden, en_hidden)],
        enc_mu=lin(en_hidden, rep_size),
        enc_sigma=lin(en_hidden, rep_size),
        dec_emb=lin(dfs_size, emb_size),
        dec_f_rep=lin(rep_size + condition_size, dfs_size),
        dec_lstm=[lstm_layer(emb_size + rep_size + condition_size, de_hidden),
                  lstm_layer(de_hidden, de_hidden),
                  lstm_layer(de_hidden, de_hidden)],
        dec_f_tu=lin(de_hidden, time_size),
        dec_f_tv=lin(de_hidden, time_size),
    )


def prepare_params(params, *, rep_size):
    """Pack all parameters into ONE bf16 weight slab + ONE f32 bias slab.

    Each weight gets a 16-sublane-aligned row range (bf16 tile aligned) padded
    to the max column width; mu/sigma and f_tu/f_tv weights are fused
    column-wise; decoder f_rep / layer-0 W_ih are pre-split so the kernel
    never lane-concats [emb | z | conditional].  Returns (wslab, bslab, meta)
    where meta is a hashable layout description used as a static jit arg.
    """
    we_emb, be_emb = params["enc_emb"]
    (we_ih0, we_hh0, be_l0), (we_ih1, we_hh1, be_l1) = params["enc_lstm"]
    w_mu, b_mu = params["enc_mu"]
    w_sig, b_sig = params["enc_sigma"]
    wd_frep, bd_frep = params["dec_f_rep"]
    wd_emb, bd_emb = params["dec_emb"]
    (wd_ih0, wd_hh0, bd_l0), (wd_ih1, wd_hh1, bd_l1), (wd_ih2, wd_hh2, bd_l2) = params["dec_lstm"]
    w_tu, b_tu = params["dec_f_tu"]
    w_tv, b_tv = params["dec_f_tv"]
    emb = wd_emb.shape[1]

    weights = [
        ("we_emb", we_emb),
        ("we_ih0", we_ih0), ("we_hh0", we_hh0),
        ("we_ih1", we_ih1), ("we_hh1", we_hh1),
        ("w_musig", jnp.concatenate([w_mu, w_sig], axis=1)),
        ("wd_frep_z", wd_frep[:rep_size]), ("wd_frep_c", wd_frep[rep_size:]),
        ("wd_emb", wd_emb),
        ("wd_ih0_e", wd_ih0[:emb]),
        ("wd_ih0_z", wd_ih0[emb:emb + rep_size]),
        ("wd_ih0_c", wd_ih0[emb + rep_size:]),
        ("wd_hh0", wd_hh0),
        ("wd_ih1", wd_ih1), ("wd_hh1", wd_hh1),
        ("wd_ih2", wd_ih2), ("wd_hh2", wd_hh2),
        ("w_tutv", jnp.concatenate([w_tu, w_tv], axis=1)),
    ]
    wmax = max(int(w.shape[1]) for _, w in weights)
    blocks, wmeta, off = [], [], 0
    for name, w in weights:
        nr, nc = int(w.shape[0]), int(w.shape[1])
        nr_pad = _round_up(nr, 16)                 # bf16 (16,128) tile alignment
        blk = jnp.zeros((nr_pad, wmax), jnp.float32).at[:nr, :nc].set(w)
        blocks.append(blk)
        wmeta.append((name, off, nr, nc))
        off += nr_pad
    wslab = jnp.concatenate(blocks, axis=0).astype(jnp.bfloat16)

    biases = [
        ("be_emb", be_emb), ("be_l0", be_l0), ("be_l1", be_l1),
        ("b_musig", jnp.concatenate([b_mu, b_sig])),
        ("bd_frep", bd_frep), ("bd_emb", bd_emb),
        ("bd_l0", bd_l0), ("bd_l1", bd_l1), ("bd_l2", bd_l2),
        ("b_tutv", jnp.concatenate([b_tu, b_tv])),
    ]
    bmax = max(int(b.shape[0]) for _, b in biases)
    brows, bmeta = [], []
    for row, (name, b) in enumerate(biases):
        brows.append(jnp.zeros((1, bmax), jnp.float32).at[0, :b.shape[0]].set(b))
        bmeta.append((name, row, int(b.shape[0])))
    bslab = jnp.concatenate(brows, axis=0)

    return wslab, bslab, (tuple(wmeta), tuple(bmeta))


# ----------------------------------------------------------------------------
# CVAE forward wrapper (single pallas_call)
# ----------------------------------------------------------------------------
@functools.partial(
    jax.jit,
    static_argnames=("condition_size", "time_size", "rep_size",
                     "en_hidden", "de_hidden", "meta"),
)
def cvae_forward(x, eps, wslab, bslab, *, condition_size, time_size, rep_size,
                 en_hidden, de_hidden, meta):
    B, S, D = x.shape
    Bp = ((B + 7) // 8) * 8                        # pad batch to 8 sublanes
    x_p = jnp.pad(x.astype(jnp.float32), ((0, Bp - B), (0, 0), (0, 0)))
    eps_p = jnp.pad(eps.reshape(B, rep_size).astype(jnp.float32), ((0, Bp - B), (0, 0)))
    x_tm = jnp.transpose(x_p, (1, 0, 2)).reshape(S * Bp, D)   # time-major row blocks

    wmeta = {name: (off, nr, nc) for name, off, nr, nc in meta[0]}
    bmeta = {name: (row, width) for name, row, width in meta[1]}
    gate_w = 4 * max(en_hidden, de_hidden)

    kern = functools.partial(
        _cvae_fused_kernel, S=S, B=Bp, cond=condition_size,
        Hen=en_hidden, Hde=de_hidden, wmeta=wmeta, bmeta=bmeta)

    musig, tutv = pl.pallas_call(
        kern,
        out_shape=(
            jax.ShapeDtypeStruct((Bp, 2 * rep_size), jnp.float32),
            jax.ShapeDtypeStruct((S * Bp, 2 * time_size), jnp.float32),
        ),
        in_specs=[VMEM_SPEC] * 4,
        out_specs=(VMEM_SPEC, VMEM_SPEC),
        scratch_shapes=[
            pltpu.VMEM((S * Bp, gate_w), jnp.float32),   # xg slab A (ping)
            pltpu.VMEM((S * Bp, gate_w), jnp.float32),   # xg slab B (pong)
        ],
    )(x_tm, eps_p, wslab, bslab)

    mu = musig[:B, :rep_size].reshape(B, 1, rep_size)
    sigma = musig[:B, rep_size:].reshape(B, 1, rep_size)
    tutv = tutv.reshape(S, Bp, 2 * time_size).transpose(1, 0, 2)[:B]
    tu = tutv[:, :, :time_size]
    tv = tutv[:, :, time_size:]
    return mu, sigma, tu, tv


# ----------------------------------------------------------------------------
# Main
# ----------------------------------------------------------------------------
if __name__ == "__main__":
    # dfs code = [onehot(tu), onehot(tv), condition]
    B, S = 2, 8
    time_size, condition_size = 8, 4
    dfs_size = 2 * time_size + condition_size        # 20
    emb_size, en_hidden, de_hidden, rep_size = 16, 32, 32, 8

    key = jax.random.PRNGKey(0)
    pkey, xkey, nkey = jax.random.split(key, 3)

    params = init_params(pkey, dfs_size, time_size, condition_size,
                         emb_size, en_hidden, de_hidden, rep_size)
    wslab, bslab, meta = prepare_params(params, rep_size=rep_size)

    x = jax.random.uniform(xkey, (B, S, dfs_size), jnp.float32)
    eps = jax.random.normal(nkey, (B, 1, rep_size), jnp.float32)

    mu, sigma, tu, tv = cvae_forward(
        x, eps, wslab, bslab,
        condition_size=condition_size, time_size=time_size, rep_size=rep_size,
        en_hidden=en_hidden, de_hidden=de_hidden, meta=meta,
    )
    mu, sigma, tu, tv = jax.block_until_ready((mu, sigma, tu, tv))

    assert mu.shape == (B, 1, rep_size)
    assert sigma.shape == (B, 1, rep_size)
    assert tu.shape == (B, S, time_size)
    assert tv.shape == (B, S, time_size)
    assert all(bool(jnp.all(jnp.isfinite(a))) for a in (mu, sigma, tu, tv))

    print("KERNEL_OK")
</pallas_src>

<mosaic_0001>
module attributes {stable_mosaic.version = 11 : i64} {
  func.func @_cvae_fused_kernel(%arg0: memref<64x20xf32, #tpu.memory_space<vmem>>, %arg1: memref<8x8xf32, #tpu.memory_space<vmem>>, %arg2: memref<480x128xbf16, #tpu.memory_space<vmem>>, %arg3: memref<10x128xf32, #tpu.memory_space<vmem>>, %arg4: memref<8x16xf32, #tpu.memory_space<vmem>>, %arg5: memref<64x16xf32, #tpu.memory_space<vmem>>, %arg6: memref<64x128xf32, #tpu.memory_space<vmem>>, %arg7: memref<64x128xf32, #tpu.memory_space<vmem>>) attributes {dimension_semantics = [], scalar_prefetch = 0 : i64, scratch_operands = 2 : i64, tpu.core_type = #tpu.core_type<tc>} {
    %c0 = arith.constant 0 : index
    %c0_0 = arith.constant 0 : index
    %0 = vector.load %arg0[%c0, %c0_0] : memref<64x20xf32, #tpu.memory_space<vmem>>, vector<64x20xf32>
    %c0_1 = arith.constant 0 : index
    %c0_2 = arith.constant 0 : index
    %1 = vector.load %arg2[%c0_1, %c0_2] : memref<480x128xbf16, #tpu.memory_space<vmem>>, vector<20x16xbf16>
    %2 = arith.truncf %0 : vector<64x20xf32> to vector<64x20xbf16>
    %cst = arith.constant dense<0.000000e+00> : vector<64x16xf32>
    %3 = tpu.matmul %2, %1, %cst {dimension_numbers = #tpu.dot_dimension_numbers<[1], [0], [0], [1], [0, 0, 1, 1], [], []>} : vector<64x20xbf16>, vector<20x16xbf16>, vector<64x16xf32> -> vector<64x16xf32>
    %c0_3 = arith.constant 0 : index
    %c0_4 = arith.constant 0 : index
    %4 = vector.load %arg3[%c0_3, %c0_4] : memref<10x128xf32, #tpu.memory_space<vmem>>, vector<1x16xf32>
    %5 = vector.broadcast %4 : vector<1x16xf32> to vector<64x16xf32>
    %6 = arith.addf %3, %5 : vector<64x16xf32>
    %c32 = arith.constant 32 : index
    %c0_5 = arith.constant 0 : index
    %7 = vector.load %arg2[%c32, %c0_5] : memref<480x128xbf16, #tpu.memory_space<vmem>>, vector<16x128xbf16>
    %8 = arith.truncf %6 : vector<64x16xf32> to vector<64x16xbf16>
    %cst_6 = arith.constant dense<0.000000e+00> : vector<64x128xf32>
    %9 = tpu.matmul %8, %7, %cst_6 {dimension_numbers = #tpu.dot_dimension_numbers<[1], [0], [0], [1], [0, 0, 1, 1], [], []>} : vector<64x16xbf16>, vector<16x128xbf16>, vector<64x128xf32> -> vector<64x128xf32>
    %c1 = arith.constant 1 : index
    %c0_7 = arith.constant 0 : index
    %10 = vector.load %arg3[%c1, %c0_7] : memref<10x128xf32, #tpu.memory_space<vmem>>, vector<1x128xf32>
    %11 = vector.broadcast %10 : vector<1x128xf32> to vector<64x128xf32>
    %12 = arith.addf %9, %11 : vector<64x128xf32>
    %c0_8 = arith.constant 0 : index
    %c0_9 = arith.constant 0 : index
    %13 = vector.load %arg6[%c0_8, %c0_9] : memref<64x128xf32, #tpu.memory_space<vmem>>, vector<64x128xf32>
    tpu.vector_store %arg6[%c0_8, %c0_9], %12 {strides = array<i32>} : memref<64x128xf32, #tpu.memory_space<vmem>>, vector<64x128xf32>,
    %c80 = arith.constant 80 : index
    %c0_10 = arith.constant 0 : index
    %14 = vector.load %arg2[%c80, %c0_10] : memref<480x128xbf16, #tpu.memory_space<vmem>>, vector<32x128xbf16>
    %c2 = arith.constant 2 : index
    %c0_11 = arith.constant 0 : index
    %15 = vector.load %arg3[%c2, %c0_11] : memref<10x128xf32, #tpu.memory_space<vmem>>, vector<1x128xf32>
    %cst_12 = arith.constant 0.000000e+00 : f32
    %16 = vector.broadcast %cst_12 : f32 to vector<8x32xf32>
    %c48 = arith.constant 48 : index
    %c0_13 = arith.constant 0 : index
    %17 = vector.load %arg2[%c48, %c0_13] : memref<480x128xbf16, #tpu.memory_space<vmem>>, vector<32x128xbf16>
    %18 = arith.truncf %16 : vector<8x32xf32> to vector<8x32xbf16>
    %c0_14 = arith.constant 0 : index
    %c0_15 = arith.constant 0 : index
    %19 = vector.load %arg6[%c0_14, %c0_15] : memref<64x128xf32, #tpu.memory_space<vmem>>, vector<8x128xf32>
    %cst_16 = arith.constant dense<0.000000e+00> : vector<8x128xf32>
    %20 = tpu.matmul %18, %17, %cst_16 {dimension_numbers = #tpu.dot_dimension_numbers<[1], [0], [0], [1], [0, 0, 1, 1], [], []>} : vector<8x32xbf16>, vector<32x128xbf16>, vector<8x128xf32> -> vector<8x128xf32>
    %21 = arith.addf %19, %20 : vector<8x128xf32>
    %22 = vector.extract_strided_slice %21 {offsets = [0, 0], sizes = [8, 32], strides = [1, 1]} : vector<8x128xf32> to vector<8x32xf32>
    %23 = arith.negf %22 : vector<8x32xf32>
    %24 = math.exp %23 : vector<8x32xf32>
    %cst_17 = arith.constant 1.000000e+00 : f32
    %25 = vector.broadcast %cst_17 : f32 to vector<8x32xf32>
    %26 = arith.addf %25, %24 : vector<8x32xf32>
    %27 = arith.divf %25, %26 : vector<8x32xf32>
    %28 = vector.extract_strided_slice %21 {offsets = [0, 32], sizes = [8, 32], strides = [1, 1]} : vector<8x128xf32> to vector<8x32xf32>
    %29 = arith.negf %28 : vector<8x32xf32>
    %30 = math.exp %29 : vector<8x32xf32>
    %cst_18 = arith.constant 1.000000e+00 : f32
    %31 = vector.broadcast %cst_18 : f32 to vector<8x32xf32>
    %32 = arith.addf %31, %30 : vector<8x32xf32>
    %33 = arith.divf %31, %32 : vector<8x32xf32>
    %34 = vector.extract_strided_slice %21 {offsets = [0, 64], sizes = [8, 32], strides = [1, 1]} : vector<8x128xf32> to vector<8x32xf32>
    %35 = math.tanh %34 : vector<8x32xf32>
    %36 = vector.extract_strided_slice %21 {offsets = [0, 96], sizes = [8, 32], strides = [1, 1]} : vector<8x128xf32> to vector<8x32xf32>
    %37 = arith.negf %36 : vector<8x32xf32>
    %38 = math.exp %37 : vector<8x32xf32>
    %cst_19 = arith.constant 1.000000e+00 : f32
    %39 = vector.broadcast %cst_19 : f32 to vector<8x32xf32>
    %40 = arith.addf %39, %38 : vector<8x32xf32>
    %41 = arith.divf %39, %40 : vector<8x32xf32>
    %42 = arith.mulf %33, %16 : vector<8x32xf32>
    %43 = arith.mulf %27, %35 : vector<8x32xf32>
    %44 = arith.addf %42, %43 : vector<8x32xf32>
    %45 = math.tanh %44 : vector<8x32xf32>
    %46 = arith.mulf %41, %45 : vector<8x32xf32>
    %47 = arith.truncf %46 : vector<8x32xf32> to vector<8x32xbf16>
    %cst_20 = arith.constant dense<0.000000e+00> : vector<8x128xf32>
    %48 = tpu.matmul %47, %14, %cst_20 {dimension_numbers = #tpu.dot_dimension_numbers<[1], [0], [0], [1], [0, 0, 1, 1], [], []>} : vector<8x32xbf16>, vector<32x128xbf16>, vector<8x128xf32> -> vector<8x128xf32>
    %49 = vector.broadcast %15 : vector<1x128xf32> to vector<8x128xf32>
    %50 = arith.addf %48, %49 : vector<8x128xf32>
    %c0_21 = arith.constant 0 : index
    %c0_22 = arith.constant 0 : index
    %51 = vector.load %arg7[%c0_21, %c0_22] : memref<64x128xf32, #tpu.memory_space<vmem>>, vector<8x128xf32>
    tpu.vector_store %arg7[%c0_21, %c0_22], %50 {strides = array<i32>} : memref<64x128xf32, #tpu.memory_space<vmem>>, vector<8x128xf32>,
    %c8 = arith.constant 8 : index
    %c0_23 = arith.constant 0 : index
    %52 = vector.load %arg6[%c8, %c0_23] : memref<64x128xf32, #tpu.memory_space<vmem>>, vector<8x128xf32>
    %cst_24 = arith.constant dense<0.000000e+00> : vector<8x128xf32>
    %53 = tpu.matmul %47, %17, %cst_24 {dimension_numbers = #tpu.dot_dimension_numbers<[1], [0], [0], [1], [0, 0, 1, 1], [], []>} : vector<8x32xbf16>, vector<32x128xbf16>, vector<8x128xf32> -> vector<8x128xf32>
    %54 = arith.addf %52, %53 : vector<8x128xf32>
    %55 = vector.extract_strided_slice %54 {offsets = [0, 0], sizes = [8, 32], strides = [1, 1]} : vector<8x128xf32> to vector<8x32xf32>
    %56 = arith.negf %55 : vector<8x32xf32>
    %57 = math.exp %56 : vector<8x32xf32>
    %cst_25 = arith.constant 1.000000e+00 : f32
    %58 = vector.broadcast %cst_25 : f32 to vector<8x32xf32>
    %59 = arith.addf %58, %57 : vector<8x32xf32>
    %60 = arith.divf %58, %59 : vector<8x32xf32>
    %61 = vector.extract_strided_slice %54 {offsets = [0, 32], sizes = [8, 32], strides = [1, 1]} : vector<8x128xf32> to vector<8x32xf32>
    %62 = arith.negf %61 : vector<8x32xf32>
    %63 = math.exp %62 : vector<8x32xf32>
    %cst_26 = arith.constant 1.000000e+00 : f32
    %64 = vector.broadcast %cst_26 : f32 to vector<8x32xf32>
    %65 = arith.addf %64, %63 : vector<8x32xf32>
    %66 = arith.divf %64, %65 : vector<8x32xf32>
    %67 = vector.extract_strided_slice %54 {offsets = [0, 64], sizes = [8, 32], strides = [1, 1]} : vector<8x128xf32> to vector<8x32xf32>
    %68 = math.tanh %67 : vector<8x32xf32>
    %69 = vector.extract_strided_slice %54 {offsets = [0, 96], sizes = [8, 32], strides = [1, 1]} : vector<8x128xf32> to vector<8x32xf32>
    %70 = arith.negf %69 : vector<8x32xf32>
    %71 = math.exp %70 : vector<8x32xf32>
    %cst_27 = arith.constant 1.000000e+00 : f32
    %72 = vector.broadcast %cst_27 : f32 to vector<8x32xf32>
    %73 = arith.addf %72, %71 : vector<8x32xf32>
    %74 = arith.divf %72, %73 : vector<8x32xf32>
    %75 = arith.mulf %66, %44 : vector<8x32xf32>
    %76 = arith.mulf %60, %68 : vector<8x32xf32>
    %77 = arith.addf %75, %76 : vector<8x32xf32>
    %78 = math.tanh %77 : vector<8x32xf32>
    %79 = arith.mulf %74, %78 : vector<8x32xf32>
    %80 = arith.truncf %79 : vector<8x32xf32> to vector<8x32xbf16>
    %cst_28 = arith.constant dense<0.000000e+00> : vector<8x128xf32>
    %81 = tpu.matmul %80, %14, %cst_28 {dimension_numbers = #tpu.dot_dimension_numbers<[1], [0], [0], [1], [0, 0, 1, 1], [], []>} : vector<8x32xbf16>, vector<32x128xbf16>, vector<8x128xf32> -> vector<8x128xf32>
    %82 = vector.broadcast %15 : vector<1x128xf32> to vector<8x128xf32>
    %83 = arith.addf %81, %82 : vector<8x128xf32>
    %c8_29 = arith.constant 8 : index
    %c0_30 = arith.constant 0 : index
    %84 = vector.load %arg7[%c8_29, %c0_30] : memref<64x128xf32, #tpu.memory_space<vmem>>, vector<8x128xf32>
    tpu.vector_store %arg7[%c8_29, %c0_30], %83 {strides = array<i32>} : memref<64x128xf32, #tpu.memory_space<vmem>>, vector<8x128xf32>,
    %c16 = arith.constant 16 : index
    %c0_31 = arith.constant 0 : index
    %85 = vector.load %arg6[%c16, %c0_31] : memref<64x128xf32, #tpu.memory_space<vmem>>, vector<8x128xf32>
    %cst_32 = arith.constant dense<0.000000e+00> : vector<8x128xf32>
    %86 = tpu.matmul %80, %17, %cst_32 {dimension_numbers = #tpu.dot_dimension_numbers<[1], [0], [0], [1], [0, 0, 1, 1], [], []>} : vector<8x32xbf16>, vector<32x128xbf16>, vector<8x128xf32> -> vector<8x128xf32>
    %87 = arith.addf %85, %86 : vector<8x128xf32>
    %88 = vector.extract_strided_slice %87 {offsets = [0, 0], sizes = [8, 32], strides = [1, 1]} : vector<8x128xf32> to vector<8x32xf32>
    %89 = arith.negf %88 : vector<8x32xf32>
    %90 = math.exp %89 : vector<8x32xf32>
    %cst_33 = arith.constant 1.000000e+00 : f32
    %91 = vector.broadcast %cst_33 : f32 to vector<8x32xf32>
    %92 = arith.addf %91, %90 : vector<8x32xf32>
    %93 = arith.divf %91, %92 : vector<8x32xf32>
    %94 = vector.extract_strided_slice %87 {offsets = [0, 32], sizes = [8, 32], strides = [1, 1]} : vector<8x128xf32> to vector<8x32xf32>
    %95 = arith.negf %94 : vector<8x32xf32>
    %96 = math.exp %95 : vector<8x32xf32>
    %cst_34 = arith.constant 1.000000e+00 : f32
    %97 = vector.broadcast %cst_34 : f32 to vector<8x32xf32>
    %98 = arith.addf %97, %96 : vector<8x32xf32>
    %99 = arith.divf %97, %98 : vector<8x32xf32>
    %100 = vector.extract_strided_slice %87 {offsets = [0, 64], sizes = [8, 32], strides = [1, 1]} : vector<8x128xf32> to vector<8x32xf32>
    %101 = math.tanh %100 : vector<8x32xf32>
    %102 = vector.extract_strided_slice %87 {offsets = [0, 96], sizes = [8, 32], strides = [1, 1]} : vector<8x128xf32> to vector<8x32xf32>
    %103 = arith.negf %102 : vector<8x32xf32>
    %104 = math.exp %103 : vector<8x32xf32>
    %cst_35 = arith.constant 1.000000e+00 : f32
    %105 = vector.broadcast %cst_35 : f32 to vector<8x32xf32>
    %106 = arith.addf %105, %104 : vector<8x32xf32>
    %107 = arith.divf %105, %106 : vector<8x32xf32>
    %108 = arith.mulf %99, %77 : vector<8x32xf32>
    %109 = arith.mulf %93, %101 : vector<8x32xf32>
    %110 = arith.addf %108, %109 : vector<8x32xf32>
    %111 = math.tanh %110 : vector<8x32xf32>
    %112 = arith.mulf %107, %111 : vector<8x32xf32>
    %113 = arith.truncf %112 : vector<8x32xf32> to vector<8x32xbf16>
    %cst_36 = arith.constant dense<0.000000e+00> : vector<8x128xf32>
    %114 = tpu.matmul %113, %14, %cst_36 {dimension_numbers = #tpu.dot_dimension_numbers<[1], [0], [0], [1], [0, 0, 1, 1], [], []>} : vector<8x32xbf16>, vector<32x128xbf16>, vector<8x128xf32> -> vector<8x128xf32>
    %115 = vector.broadcast %15 : vector<1x128xf32> to vector<8x128xf32>
    %116 = arith.addf %114, %115 : vector<8x128xf32>
    %c16_37 = arith.constant 16 : index
    %c0_38 = arith.constant 0 : index
    %117 = vector.load %arg7[%c16_37, %c0_38] : memref<64x128xf32, #tpu.memory_space<vmem>>, vector<8x128xf32>
    tpu.vector_store %arg7[%c16_37, %c0_38], %116 {strides = array<i32>} : memref<64x128xf32, #tpu.memory_space<vmem>>, vector<8x128xf32>,
    %c24 = arith.constant 24 : index
    %c0_39 = arith.constant 0 : index
    %118 = vector.load %arg6[%c24, %c0_39] : memref<64x128xf32, #tpu.memory_space<vmem>>, vector<8x128xf32>
    %cst_40 = arith.constant dense<0.000000e+00> : vector<8x128xf32>
    %119 = tpu.matmul %113, %17, %cst_40 {dimension_numbers = #tpu.dot_dimension_numbers<[1], [0], [0], [1], [0, 0, 1, 1], [], []>} : vector<8x32xbf16>, vector<32x128xbf16>, vector<8x128xf32> -> vector<8x128xf32>
    %120 = arith.addf %118, %119 : vector<8x128xf32>
    %121 = vector.extract_strided_slice %120 {offsets = [0, 0], sizes = [8, 32], strides = [1, 1]} : vector<8x128xf32> to vector<8x32xf32>
    %122 = arith.negf %121 : vector<8x32xf32>
    %123 = math.exp %122 : vector<8x32xf32>
    %cst_41 = arith.constant 1.000000e+00 : f32
    %124 = vector.broadcast %cst_41 : f32 to vector<8x32xf32>
    %125 = arith.addf %124, %123 : vector<8x32xf32>
    %126 = arith.divf %124, %125 : vector<8x32xf32>
    %127 = vector.extract_strided_slice %120 {offsets = [0, 32], sizes = [8, 32], strides = [1, 1]} : vector<8x128xf32> to vector<8x32xf32>
    %128 = arith.negf %127 : vector<8x32xf32>
    %129 = math.exp %128 : vector<8x32xf32>
    %cst_42 = arith.constant 1.000000e+00 : f32
    %130 = vector.broadcast %cst_42 : f32 to vector<8x32xf32>
    %131 = arith.addf %130, %129 : vector<8x32xf32>
    %132 = arith.divf %130, %131 : vector<8x32xf32>
    %133 = vector.extract_strided_slice %120 {offsets = [0, 64], sizes = [8, 32], strides = [1, 1]} : vector<8x128xf32> to vector<8x32xf32>
    %134 = math.tanh %133 : vector<8x32xf32>
    %135 = vector.extract_strided_slice %120 {offsets = [0, 96], sizes = [8, 32], strides = [1, 1]} : vector<8x128xf32> to vector<8x32xf32>
    %136 = arith.negf %135 : vector<8x32xf32>
    %137 = math.exp %136 : vector<8x32xf32>
    %cst_43 = arith.constant 1.000000e+00 : f32
    %138 = vector.broadcast %cst_43 : f32 to vector<8x32xf32>
    %139 = arith.addf %138, %137 : vector<8x32xf32>
    %140 = arith.divf %138, %139 : vector<8x32xf32>
    %141 = arith.mulf %132, %110 : vector<8x32xf32>
    %142 = arith.mulf %126, %134 : vector<8x32xf32>
    %143 = arith.addf %141, %142 : vector<8x32xf32>
    %144 = math.tanh %143 : vector<8x32xf32>
    %145 = arith.mulf %140, %144 : vector<8x32xf32>
    %146 = arith.truncf %145 : vector<8x32xf32> to vector<8x32xbf16>
    %cst_44 = arith.constant dense<0.000000e+00> : vector<8x128xf32>
    %147 = tpu.matmul %146, %14, %cst_44 {dimension_numbers = #tpu.dot_dimension_numbers<[1], [0], [0], [1], [0, 0, 1, 1], [], []>} : vector<8x32xbf16>, vector<32x128xbf16>, vector<8x128xf32> -> vector<8x128xf32>
    %148 = vector.broadcast %15 : vector<1x128xf32> to vector<8x128xf32>
    %149 = arith.addf %147, %148 : vector<8x128xf32>
    %c24_45 = arith.constant 24 : index
    %c0_46 = arith.constant 0 : index
    %150 = vector.load %arg7[%c24_45, %c0_46] : memref<64x128xf32, #tpu.memory_space<vmem>>, vector<8x128xf32>
    tpu.vector_store %arg7[%c24_45, %c0_46], %149 {strides = array<i32>} : memref<64x128xf32, #tpu.memory_space<vmem>>, vector<8x128xf32>,
    %c32_47 = arith.constant 32 : index
    %c0_48 = arith.constant 0 : index
    %151 = vector.load %arg6[%c32_47, %c0_48] : memref<64x128xf32, #tpu.memory_space<vmem>>, vector<8x128xf32>
    %cst_49 = arith.constant dense<0.000000e+00> : vector<8x128xf32>
    %152 = tpu.matmul %146, %17, %cst_49 {dimension_numbers = #tpu.dot_dimension_numbers<[1], [0], [0], [1], [0, 0, 1, 1], [], []>} : vector<8x32xbf16>, vector<32x128xbf16>, vector<8x128xf32> -> vector<8x128xf32>
    %153 = arith.addf %151, %152 : vector<8x128xf32>
    %154 = vector.extract_strided_slice %153 {offsets = [0, 0], sizes = [8, 32], strides = [1, 1]} : vector<8x128xf32> to vector<8x32xf32>
    %155 = arith.negf %154 : vector<8x32xf32>
    %156 = math.exp %155 : vector<8x32xf32>
    %cst_50 = arith.constant 1.000000e+00 : f32
    %157 = vector.broadcast %cst_50 : f32 to vector<8x32xf32>
    %158 = arith.addf %157, %156 : vector<8x32xf32>
    %159 = arith.divf %157, %158 : vector<8x32xf32>
    %160 = vector.extract_strided_slice %153 {offsets = [0, 32], sizes = [8, 32], strides = [1, 1]} : vector<8x128xf32> to vector<8x32xf32>
    %161 = arith.negf %160 : vector<8x32xf32>
    %162 = math.exp %161 : vector<8x32xf32>
    %cst_51 = arith.constant 1.000000e+00 : f32
    %163 = vector.broadcast %cst_51 : f32 to vector<8x32xf32>
    %164 = arith.addf %163, %162 : vector<8x32xf32>
    %165 = arith.divf %163, %164 : vector<8x32xf32>
    %166 = vector.extract_strided_slice %153 {offsets = [0, 64], sizes = [8, 32], strides = [1, 1]} : vector<8x128xf32> to vector<8x32xf32>
    %167 = math.tanh %166 : vector<8x32xf32>
    %168 = vector.extract_strided_slice %153 {offsets = [0, 96], sizes = [8, 32], strides = [1, 1]} : vector<8x128xf32> to vector<8x32xf32>
    %169 = arith.negf %168 : vector<8x32xf32>
    %170 = math.exp %169 : vector<8x32xf32>
    %cst_52 = arith.constant 1.000000e+00 : f32
    %171 = vector.broadcast %cst_52 : f32 to vector<8x32xf32>
    %172 = arith.addf %171, %170 : vector<8x32xf32>
    %173 = arith.divf %171, %172 : vector<8x32xf32>
    %174 = arith.mulf %165, %143 : vector<8x32xf32>
    %175 = arith.mulf %159, %167 : vector<8x32xf32>
    %176 = arith.addf %174, %175 : vector<8x32xf32>
    %177 = math.tanh %176 : vector<8x32xf32>
    %178 = arith.mulf %173, %177 : vector<8x32xf32>
    %179 = arith.truncf %178 : vector<8x32xf32> to vector<8x32xbf16>
    %cst_53 = arith.constant dense<0.000000e+00> : vector<8x128xf32>
    %180 = tpu.matmul %179, %14, %cst_53 {dimension_numbers = #tpu.dot_dimension_numbers<[1], [0], [0], [1], [0, 0, 1, 1], [], []>} : vector<8x32xbf16>, vector<32x128xbf16>, vector<8x128xf32> -> vector<8x128xf32>
    %181 = vector.broadcast %15 : vector<1x128xf32> to vector<8x128xf32>
    %182 = arith.addf %180, %181 : vector<8x128xf32>
    %c32_54 = arith.constant 32 : index
    %c0_55 = arith.constant 0 : index
    %183 = vector.load %arg7[%c32_54, %c0_55] : memref<64x128xf32, #tpu.memory_space<vmem>>, vector<8x128xf32>
    tpu.vector_store %arg7[%c32_54, %c0_55], %182 {strides = array<i32>} : memref<64x128xf32, #tpu.memory_space<vmem>>, vector<8x128xf32>,
    %c40 = arith.constant 40 : index
    %c0_56 = arith.constant 0 : index
    %184 = vector.load %arg6[%c40, %c0_56] : memref<64x128xf32, #tpu.memory_space<vmem>>, vector<8x128xf32>
    %cst_57 = arith.constant dense<0.000000e+00> : vector<8x128xf32>
    %185 = tpu.matmul %179, %17, %cst_57 {dimension_numbers = #tpu.dot_dimension_numbers<[1], [0], [0], [1], [0, 0, 1, 1], [], []>} : vector<8x32xbf16>, vector<32x128xbf16>, vector<8x128xf32> -> vector<8x128xf32>
    %186 = arith.addf %184, %185 : vector<8x128xf32>
    %187 = vector.extract_strided_slice %186 {offsets = [0, 0], sizes = [8, 32], strides = [1, 1]} : vector<8x128xf32> to vector<8x32xf32>
    %188 = arith.negf %187 : vector<8x32xf32>
    %189 = math.exp %188 : vector<8x32xf32>
    %cst_58 = arith.constant 1.000000e+00 : f32
    %190 = vector.broadcast %cst_58 : f32 to vector<8x32xf32>
    %191 = arith.addf %190, %189 : vector<8x32xf32>
    %192 = arith.divf %190, %191 : vector<8x32xf32>
    %193 = vector.extract_strided_slice %186 {offsets = [0, 32], sizes = [8, 32], strides = [1, 1]} : vector<8x128xf32> to vector<8x32xf32>
    %194 = arith.negf %193 : vector<8x32xf32>
    %195 = math.exp %194 : vector<8x32xf32>
    %cst_59 = arith.constant 1.000000e+00 : f32
    %196 = vector.broadcast %cst_59 : f32 to vector<8x32xf32>
    %197 = arith.addf %196, %195 : vector<8x32xf32>
    %198 = arith.divf %196, %197 : vector<8x32xf32>
    %199 = vector.extract_strided_slice %186 {offsets = [0, 64], sizes = [8, 32], strides = [1, 1]} : vector<8x128xf32> to vector<8x32xf32>
    %200 = math.tanh %199 : vector<8x32xf32>
    %201 = vector.extract_strided_slice %186 {offsets = [0, 96], sizes = [8, 32], strides = [1, 1]} : vector<8x128xf32> to vector<8x32xf32>
    %202 = arith.negf %201 : vector<8x32xf32>
    %203 = math.exp %202 : vector<8x32xf32>
    %cst_60 = arith.constant 1.000000e+00 : f32
    %204 = vector.broadcast %cst_60 : f32 to vector<8x32xf32>
    %205 = arith.addf %204, %203 : vector<8x32xf32>
    %206 = arith.divf %204, %205 : vector<8x32xf32>
    %207 = arith.mulf %198, %176 : vector<8x32xf32>
    %208 = arith.mulf %192, %200 : vector<8x32xf32>
    %209 = arith.addf %207, %208 : vector<8x32xf32>
    %210 = math.tanh %209 : vector<8x32xf32>
    %211 = arith.mulf %206, %210 : vector<8x32xf32>
    %212 = arith.truncf %211 : vector<8x32xf32> to vector<8x32xbf16>
    %cst_61 = arith.constant dense<0.000000e+00> : vector<8x128xf32>
    %213 = tpu.matmul %212, %14, %cst_61 {dimension_numbers = #tpu.dot_dimension_numbers<[1], [0], [0], [1], [0, 0, 1, 1], [], []>} : vector<8x32xbf16>, vector<32x128xbf16>, vector<8x128xf32> -> vector<8x128xf32>
    %214 = vector.broadcast %15 : vector<1x128xf32> to vector<8x128xf32>
    %215 = arith.addf %213, %214 : vector<8x128xf32>
    %c40_62 = arith.constant 40 : index
    %c0_63 = arith.constant 0 : index
    %216 = vector.load %arg7[%c40_62, %c0_63] : memref<64x128xf32, #tpu.memory_space<vmem>>, vector<8x128xf32>
    tpu.vector_store %arg7[%c40_62, %c0_63], %215 {strides = array<i32>} : memref<64x128xf32, #tpu.memory_space<vmem>>, vector<8x128xf32>,
    %c48_64 = arith.constant 48 : index
    %c0_65 = arith.constant 0 : index
    %217 = vector.load %arg6[%c48_64, %c0_65] : memref<64x128xf32, #tpu.memory_space<vmem>>, vector<8x128xf32>
    %cst_66 = arith.constant dense<0.000000e+00> : vector<8x128xf32>
    %218 = tpu.matmul %212, %17, %cst_66 {dimension_numbers = #tpu.dot_dimension_numbers<[1], [0], [0], [1], [0, 0, 1, 1], [], []>} : vector<8x32xbf16>, vector<32x128xbf16>, vector<8x128xf32> -> vector<8x128xf32>
    %219 = arith.addf %217, %218 : vector<8x128xf32>
    %220 = vector.extract_strided_slice %219 {offsets = [0, 0], sizes = [8, 32], strides = [1, 1]} : vector<8x128xf32> to vector<8x32xf32>
    %221 = arith.negf %220 : vector<8x32xf32>
    %222 = math.exp %221 : vector<8x32xf32>
    %cst_67 = arith.constant 1.000000e+00 : f32
    %223 = vector.broadcast %cst_67 : f32 to vector<8x32xf32>
    %224 = arith.addf %223, %222 : vector<8x32xf32>
    %225 = arith.divf %223, %224 : vector<8x32xf32>
    %226 = vector.extract_strided_slice %219 {offsets = [0, 32], sizes = [8, 32], strides = [1, 1]} : vector<8x128xf32> to vector<8x32xf32>
    %227 = arith.negf %226 : vector<8x32xf32>
    %228 = math.exp %227 : vector<8x32xf32>
    %cst_68 = arith.constant 1.000000e+00 : f32
    %229 = vector.broadcast %cst_68 : f32 to vector<8x32xf32>
    %230 = arith.addf %229, %228 : vector<8x32xf32>
    %231 = arith.divf %229, %230 : vector<8x32xf32>
    %232 = vector.extract_strided_slice %219 {offsets = [0, 64], sizes = [8, 32], strides = [1, 1]} : vector<8x128xf32> to vector<8x32xf32>
    %233 = math.tanh %232 : vector<8x32xf32>
    %234 = vector.extract_strided_slice %219 {offsets = [0, 96], sizes = [8, 32], strides = [1, 1]} : vector<8x128xf32> to vector<8x32xf32>
    %235 = arith.negf %234 : vector<8x32xf32>
    %236 = math.exp %235 : vector<8x32xf32>
    %cst_69 = arith.constant 1.000000e+00 : f32
    %237 = vector.broadcast %cst_69 : f32 to vector<8x32xf32>
    %238 = arith.addf %237, %236 : vector<8x32xf32>
    %239 = arith.divf %237, %238 : vector<8x32xf32>
    %240 = arith.mulf %231, %209 : vector<8x32xf32>
    %241 = arith.mulf %225, %233 : vector<8x32xf32>
    %242 = arith.addf %240, %241 : vector<8x32xf32>
    %243 = math.tanh %242 : vector<8x32xf32>
    %244 = arith.mulf %239, %243 : vector<8x32xf32>
    %245 = arith.truncf %244 : vector<8x32xf32> to vector<8x32xbf16>
    %cst_70 = arith.constant dense<0.000000e+00> : vector<8x128xf32>
    %246 = tpu.matmul %245, %14, %cst_70 {dimension_numbers = #tpu.dot_dimension_numbers<[1], [0], [0], [1], [0, 0, 1, 1], [], []>} : vector<8x32xbf16>, vector<32x128xbf16>, vector<8x128xf32> -> vector<8x128xf32>
    %247 = vector.broadcast %15 : vector<1x128xf32> to vector<8x128xf32>
    %248 = arith.addf %246, %247 : vector<8x128xf32>
    %c48_71 = arith.constant 48 : index
    %c0_72 = arith.constant 0 : index
    %249 = vector.load %arg7[%c48_71, %c0_72] : memref<64x128xf32, #tpu.memory_space<vmem>>, vector<8x128xf32>
    tpu.vector_store %arg7[%c48_71, %c0_72], %248 {strides = array<i32>} : memref<64x128xf32, #tpu.memory_space<vmem>>, vector<8x128xf32>,
    %c56 = arith.constant 56 : index
    %c0_73 = arith.constant 0 : index
    %250 = vector.load %arg6[%c56, %c0_73] : memref<64x128xf32, #tpu.memory_space<vmem>>, vector<8x128xf32>
    %cst_74 = arith.constant dense<0.000000e+00> : vector<8x128xf32>
    %251 = tpu.matmul %245, %17, %cst_74 {dimension_numbers = #tpu.dot_dimension_numbers<[1], [0], [0], [1], [0, 0, 1, 1], [], []>} : vector<8x32xbf16>, vector<32x128xbf16>, vector<8x128xf32> -> vector<8x128xf32>
    %252 = arith.addf %250, %251 : vector<8x128xf32>
    %253 = vector.extract_strided_slice %252 {offsets = [0, 0], sizes = [8, 32], strides = [1, 1]} : vector<8x128xf32> to vector<8x32xf32>
    %254 = arith.negf %253 : vector<8x32xf32>
    %255 = math.exp %254 : vector<8x32xf32>
    %cst_75 = arith.constant 1.000000e+00 : f32
    %256 = vector.broadcast %cst_75 : f32 to vector<8x32xf32>
    %257 = arith.addf %256, %255 : vector<8x32xf32>
    %258 = arith.divf %256, %257 : vector<8x32xf32>
    %259 = vector.extract_strided_slice %252 {offsets = [0, 32], sizes = [8, 32], strides = [1, 1]} : vector<8x128xf32> to vector<8x32xf32>
    %260 = arith.negf %259 : vector<8x32xf32>
    %261 = math.exp %260 : vector<8x32xf32>
    %cst_76 = arith.constant 1.000000e+00 : f32
    %262 = vector.broadcast %cst_76 : f32 to vector<8x32xf32>
    %263 = arith.addf %262, %261 : vector<8x32xf32>
    %264 = arith.divf %262, %263 : vector<8x32xf32>
    %265 = vector.extract_strided_slice %252 {offsets = [0, 64], sizes = [8, 32], strides = [1, 1]} : vector<8x128xf32> to vector<8x32xf32>
    %266 = math.tanh %265 : vector<8x32xf32>
    %267 = vector.extract_strided_slice %252 {offsets = [0, 96], sizes = [8, 32], strides = [1, 1]} : vector<8x128xf32> to vector<8x32xf32>
    %268 = arith.negf %267 : vector<8x32xf32>
    %269 = math.exp %268 : vector<8x32xf32>
    %cst_77 = arith.constant 1.000000e+00 : f32
    %270 = vector.broadcast %cst_77 : f32 to vector<8x32xf32>
    %271 = arith.addf %270, %269 : vector<8x32xf32>
    %272 = arith.divf %270, %271 : vector<8x32xf32>
    %273 = arith.mulf %264, %242 : vector<8x32xf32>
    %274 = arith.mulf %258, %266 : vector<8x32xf32>
    %275 = arith.addf %273, %274 : vector<8x32xf32>
    %276 = math.tanh %275 : vector<8x32xf32>
    %277 = arith.mulf %272, %276 : vector<8x32xf32>
    %278 = arith.truncf %277 : vector<8x32xf32> to vector<8x32xbf16>
    %cst_78 = arith.constant dense<0.000000e+00> : vector<8x128xf32>
    %279 = tpu.matmul %278, %14, %cst_78 {dimension_numbers = #tpu.dot_dimension_numbers<[1], [0], [0], [1], [0, 0, 1, 1], [], []>} : vector<8x32xbf16>, vector<32x128xbf16>, vector<8x128xf32> -> vector<8x128xf32>
    %280 = vector.broadcast %15 : vector<1x128xf32> to vector<8x128xf32>
    %281 = arith.addf %279, %280 : vector<8x128xf32>
    %c56_79 = arith.constant 56 : index
    %c0_80 = arith.constant 0 : index
    %282 = vector.load %arg7[%c56_79, %c0_80] : memref<64x128xf32, #tpu.memory_space<vmem>>, vector<8x128xf32>
    tpu.vector_store %arg7[%c56_79, %c0_80], %281 {strides = array<i32>} : memref<64x128xf32, #tpu.memory_space<vmem>>, vector<8x128xf32>,
    %c112 = arith.constant 112 : index
    %c0_81 = arith.constant 0 : index
    %283 = vector.load %arg2[%c112, %c0_81] : memref<480x128xbf16, #tpu.memory_space<vmem>>, vector<32x128xbf16>
    %284 = arith.truncf %16 : vector<8x32xf32> to vector<8x32xbf16>
    %c0_82 = arith.constant 0 : index
    %c0_83 = arith.constant 0 : index
    %285 = vector.load %arg7[%c0_82, %c0_83] : memref<64x128xf32, #tpu.memory_space<vmem>>, vector<8x128xf32>
    %cst_84 = arith.constant dense<0.000000e+00> : vector<8x128xf32>
    %286 = tpu.matmul %284, %283, %cst_84 {dimension_numbers = #tpu.dot_dimension_numbers<[1], [0], [0], [1], [0, 0, 1, 1], [], []>} : vector<8x32xbf16>, vector<32x128xbf16>, vector<8x128xf32> -> vector<8x128xf32>
    %287 = arith.addf %285, %286 : vector<8x128xf32>
    %288 = vector.extract_strided_slice %287 {offsets = [0, 0], sizes = [8, 32], strides = [1, 1]} : vector<8x128xf32> to vector<8x32xf32>
    %289 = arith.negf %288 : vector<8x32xf32>
    %290 = math.exp %289 : vector<8x32xf32>
    %cst_85 = arith.constant 1.000000e+00 : f32
    %291 = vector.broadcast %cst_85 : f32 to vector<8x32xf32>
    %292 = arith.addf %291, %290 : vector<8x32xf32>
    %293 = arith.divf %291, %292 : vector<8x32xf32>
    %294 = vector.extract_strided_slice %287 {offsets = [0, 32], sizes = [8, 32], strides = [1, 1]} : vector<8x128xf32> to vector<8x32xf32>
    %295 = arith.negf %294 : vector<8x32xf32>
    %296 = math.exp %295 : vector<8x32xf32>
    %cst_86 = arith.constant 1.000000e+00 : f32
    %297 = vector.broadcast %cst_86 : f32 to vector<8x32xf32>
    %298 = arith.addf %297, %296 : vector<8x32xf32>
    %299 = arith.divf %297, %298 : vector<8x32xf32>
    %300 = vector.extract_strided_slice %287 {offsets = [0, 64], sizes = [8, 32], strides = [1, 1]} : vector<8x128xf32> to vector<8x32xf32>
    %301 = math.tanh %300 : vector<8x32xf32>
    %302 = vector.extract_strided_slice %287 {offsets = [0, 96], sizes = [8, 32], strides = [1, 1]} : vector<8x128xf32> to vector<8x32xf32>
    %303 = arith.negf %302 : vector<8x32xf32>
    %304 = math.exp %303 : vector<8x32xf32>
    %cst_87 = arith.constant 1.000000e+00 : f32
    %305 = vector.broadcast %cst_87 : f32 to vector<8x32xf32>
    %306 = arith.addf %305, %304 : vector<8x32xf32>
    %307 = arith.divf %305, %306 : vector<8x32xf32>
    %308 = arith.mulf %299, %16 : vector<8x32xf32>
    %309 = arith.mulf %293, %301 : vector<8x32xf32>
    %310 = arith.addf %308, %309 : vector<8x32xf32>
    %311 = math.tanh %310 : vector<8x32xf32>
    %312 = arith.mulf %307, %311 : vector<8x32xf32>
    %313 = arith.truncf %312 : vector<8x32xf32> to vector<8x32xbf16>
    %c8_88 = arith.constant 8 : index
    %c0_89 = arith.constant 0 : index
    %314 = vector.load %arg7[%c8_88, %c0_89] : memref<64x128xf32, #tpu.memory_space<vmem>>, vector<8x128xf32>
    %cst_90 = arith.constant dense<0.000000e+00> : vector<8x128xf32>
    %315 = tpu.matmul %313, %283, %cst_90 {dimension_numbers = #tpu.dot_dimension_numbers<[1], [0], [0], [1], [0, 0, 1, 1], [], []>} : vector<8x32xbf16>, vector<32x128xbf16>, vector<8x128xf32> -> vector<8x128xf32>
    %316 = arith.addf %314, %315 : vector<8x128xf32>
    %317 = vector.extract_strided_slice %316 {offsets = [0, 0], sizes = [8, 32], strides = [1, 1]} : vector<8x128xf32> to vector<8x32xf32>
    %318 = arith.negf %317 : vector<8x32xf32>
    %319 = math.exp %318 : vector<8x32xf32>
    %cst_91 = arith.constant 1.000000e+00 : f32
    %320 = vector.broadcast %cst_91 : f32 to vector<8x32xf32>
    %321 = arith.addf %320, %319 : vector<8x32xf32>
    %322 = arith.divf %320, %321 : vector<8x32xf32>
    %323 = vector.extract_strided_slice %316 {offsets = [0, 32], sizes = [8, 32], strides = [1, 1]} : vector<8x128xf32> to vector<8x32xf32>
    %324 = arith.negf %323 : vector<8x32xf32>
    %325 = math.exp %324 : vector<8x32xf32>
    %cst_92 = arith.constant 1.000000e+00 : f32
    %326 = vector.broadcast %cst_92 : f32 to vector<8x32xf32>
    %327 = arith.addf %326, %325 : vector<8x32xf32>
    %328 = arith.divf %326, %327 : vector<8x32xf32>
    %329 = vector.extract_strided_slice %316 {offsets = [0, 64], sizes = [8, 32], strides = [1, 1]} : vector<8x128xf32> to vector<8x32xf32>
    %330 = math.tanh %329 : vector<8x32xf32>
    %331 = vector.extract_strided_slice %316 {offsets = [0, 96], sizes = [8, 32], strides = [1, 1]} : vector<8x128xf32> to vector<8x32xf32>
    %332 = arith.negf %331 : vector<8x32xf32>
    %333 = math.exp %332 : vector<8x32xf32>
    %cst_93 = arith.constant 1.000000e+00 : f32
    %334 = vector.broadcast %cst_93 : f32 to vector<8x32xf32>
    %335 = arith.addf %334, %333 : vector<8x32xf32>
    %336 = arith.divf %334, %335 : vector<8x32xf32>
    %337 = arith.mulf %328, %310 : vector<8x32xf32>
    %338 = arith.mulf %322, %330 : vector<8x32xf32>
    %339 = arith.addf %337, %338 : vector<8x32xf32>
    %340 = math.tanh %339 : vector<8x32xf32>
    %341 = arith.mulf %336, %340 : vector<8x32xf32>
    %342 = arith.truncf %341 : vector<8x32xf32> to vector<8x32xbf16>
    %c16_94 = arith.constant 16 : index
    %c0_95 = arith.constant 0 : index
    %343 = vector.load %arg7[%c16_94, %c0_95] : memref<64x128xf32, #tpu.memory_space<vmem>>, vector<8x128xf32>
    %cst_96 = arith.constant dense<0.000000e+00> : vector<8x128xf32>
    %344 = tpu.matmul %342, %283, %cst_96 {dimension_numbers = #tpu.dot_dimension_numbers<[1], [0], [0], [1], [0, 0, 1, 1], [], []>} : vector<8x32xbf16>, vector<32x128xbf16>, vector<8x128xf32> -> vector<8x128xf32>
    %345 = arith.addf %343, %344 : vector<8x128xf32>
    %346 = vector.extract_strided_slice %345 {offsets = [0, 0], sizes = [8, 32], strides = [1, 1]} : vector<8x128xf32> to vector<8x32xf32>
    %347 = arith.negf %346 : vector<8x32xf32>
    %348 = math.exp %347 : vector<8x32xf32>
    %cst_97 = arith.constant 1.000000e+00 : f32
    %349 = vector.broadcast %cst_97 : f32 to vector<8x32xf32>
    %350 = arith.addf %349, %348 : vector<8x32xf32>
    %351 = arith.divf %349, %350 : vector<8x32xf32>
    %352 = vector.extract_strided_slice %345 {offsets = [0, 32], sizes = [8, 32], strides = [1, 1]} : vector<8x128xf32> to vector<8x32xf32>
    %353 = arith.negf %352 : vector<8x32xf32>
    %354 = math.exp %353 : vector<8x32xf32>
    %cst_98 = arith.constant 1.000000e+00 : f32
    %355 = vector.broadcast %cst_98 : f32 to vector<8x32xf32>
    %356 = arith.addf %355, %354 : vector<8x32xf32>
    %357 = arith.divf %355, %356 : vector<8x32xf32>
    %358 = vector.extract_strided_slice %345 {offsets = [0, 64], sizes = [8, 32], strides = [1, 1]} : vector<8x128xf32> to vector<8x32xf32>
    %359 = math.tanh %358 : vector<8x32xf32>
    %360 = vector.extract_strided_slice %345 {offsets = [0, 96], sizes = [8, 32], strides = [1, 1]} : vector<8x128xf32> to vector<8x32xf32>
    %361 = arith.negf %360 : vector<8x32xf32>
    %362 = math.exp %361 : vector<8x32xf32>
    %cst_99 = arith.constant 1.000000e+00 : f32
    %363 = vector.broadcast %cst_99 : f32 to vector<8x32xf32>
    %364 = arith.addf %363, %362 : vector<8x32xf32>
    %365 = arith.divf %363, %364 : vector<8x32xf32>
    %366 = arith.mulf %357, %339 : vector<8x32xf32>
    %367 = arith.mulf %351, %359 : vector<8x32xf32>
    %368 = arith.addf %366, %367 : vector<8x32xf32>
    %369 = math.tanh %368 : vector<8x32xf32>
    %370 = arith.mulf %365, %369 : vector<8x32xf32>
    %371 = arith.truncf %370 : vector<8x32xf32> to vector<8x32xbf16>
    %c24_100 = arith.constant 24 : index
    %c0_101 = arith.constant 0 : index
    %372 = vector.load %arg7[%c24_100, %c0_101] : memref<64x128xf32, #tpu.memory_space<vmem>>, vector<8x128xf32>
    %cst_102 = arith.constant dense<0.000000e+00> : vector<8x128xf32>
    %373 = tpu.matmul %371, %283, %cst_102 {dimension_numbers = #tpu.dot_dimension_numbers<[1], [0], [0], [1], [0, 0, 1, 1], [], []>} : vector<8x32xbf16>, vector<32x128xbf16>, vector<8x128xf32> -> vector<8x128xf32>
    %374 = arith.addf %372, %373 : vector<8x128xf32>
    %375 = vector.extract_strided_slice %374 {offsets = [0, 0], sizes = [8, 32], strides = [1, 1]} : vector<8x128xf32> to vector<8x32xf32>
    %376 = arith.negf %375 : vector<8x32xf32>
    %377 = math.exp %376 : vector<8x32xf32>
    %cst_103 = arith.constant 1.000000e+00 : f32
    %378 = vector.broadcast %cst_103 : f32 to vector<8x32xf32>
    %379 = arith.addf %378, %377 : vector<8x32xf32>
    %380 = arith.divf %378, %379 : vector<8x32xf32>
    %381 = vector.extract_strided_slice %374 {offsets = [0, 32], sizes = [8, 32], strides = [1, 1]} : vector<8x128xf32> to vector<8x32xf32>
    %382 = arith.negf %381 : vector<8x32xf32>
    %383 = math.exp %382 : vector<8x32xf32>
    %cst_104 = arith.constant 1.000000e+00 : f32
    %384 = vector.broadcast %cst_104 : f32 to vector<8x32xf32>
    %385 = arith.addf %384, %383 : vector<8x32xf32>
    %386 = arith.divf %384, %385 : vector<8x32xf32>
    %387 = vector.extract_strided_slice %374 {offsets = [0, 64], sizes = [8, 32], strides = [1, 1]} : vector<8x128xf32> to vector<8x32xf32>
    %388 = math.tanh %387 : vector<8x32xf32>
    %389 = vector.extract_strided_slice %374 {offsets = [0, 96], sizes = [8, 32], strides = [1, 1]} : vector<8x128xf32> to vector<8x32xf32>
    %390 = arith.negf %389 : vector<8x32xf32>
    %391 = math.exp %390 : vector<8x32xf32>
    %cst_105 = arith.constant 1.000000e+00 : f32
    %392 = vector.broadcast %cst_105 : f32 to vector<8x32xf32>
    %393 = arith.addf %392, %391 : vector<8x32xf32>
    %394 = arith.divf %392, %393 : vector<8x32xf32>
    %395 = arith.mulf %386, %368 : vector<8x32xf32>
    %396 = arith.mulf %380, %388 : vector<8x32xf32>
    %397 = arith.addf %395, %396 : vector<8x32xf32>
    %398 = math.tanh %397 : vector<8x32xf32>
    %399 = arith.mulf %394, %398 : vector<8x32xf32>
    %400 = arith.truncf %399 : vector<8x32xf32> to vector<8x32xbf16>
    %c32_106 = arith.constant 32 : index
    %c0_107 = arith.constant 0 : index
    %401 = vector.load %arg7[%c32_106, %c0_107] : memref<64x128xf32, #tpu.memory_space<vmem>>, vector<8x128xf32>
    %cst_108 = arith.constant dense<0.000000e+00> : vector<8x128xf32>
    %402 = tpu.matmul %400, %283, %cst_108 {dimension_numbers = #tpu.dot_dimension_numbers<[1], [0], [0], [1], [0, 0, 1, 1], [], []>} : vector<8x32xbf16>, vector<32x128xbf16>, vector<8x128xf32> -> vector<8x128xf32>
    %403 = arith.addf %401, %402 : vector<8x128xf32>
    %404 = vector.extract_strided_slice %403 {offsets = [0, 0], sizes = [8, 32], strides = [1, 1]} : vector<8x128xf32> to vector<8x32xf32>
    %405 = arith.negf %404 : vector<8x32xf32>
    %406 = math.exp %405 : vector<8x32xf32>
    %cst_109 = arith.constant 1.000000e+00 : f32
    %407 = vector.broadcast %cst_109 : f32 to vector<8x32xf32>
    %408 = arith.addf %407, %406 : vector<8x32xf32>
    %409 = arith.divf %407, %408 : vector<8x32xf32>
    %410 = vector.extract_strided_slice %403 {offsets = [0, 32], sizes = [8, 32], strides = [1, 1]} : vector<8x128xf32> to vector<8x32xf32>
    %411 = arith.negf %410 : vector<8x32xf32>
    %412 = math.exp %411 : vector<8x32xf32>
    %cst_110 = arith.constant 1.000000e+00 : f32
    %413 = vector.broadcast %cst_110 : f32 to vector<8x32xf32>
    %414 = arith.addf %413, %412 : vector<8x32xf32>
    %415 = arith.divf %413, %414 : vector<8x32xf32>
    %416 = vector.extract_strided_slice %403 {offsets = [0, 64], sizes = [8, 32], strides = [1, 1]} : vector<8x128xf32> to vector<8x32xf32>
    %417 = math.tanh %416 : vector<8x32xf32>
    %418 = vector.extract_strided_slice %403 {offsets = [0, 96], sizes = [8, 32], strides = [1, 1]} : vector<8x128xf32> to vector<8x32xf32>
    %419 = arith.negf %418 : vector<8x32xf32>
    %420 = math.exp %419 : vector<8x32xf32>
    %cst_111 = arith.constant 1.000000e+00 : f32
    %421 = vector.broadcast %cst_111 : f32 to vector<8x32xf32>
    %422 = arith.addf %421, %420 : vector<8x32xf32>
    %423 = arith.divf %421, %422 : vector<8x32xf32>
    %424 = arith.mulf %415, %397 : vector<8x32xf32>
    %425 = arith.mulf %409, %417 : vector<8x32xf32>
    %426 = arith.addf %424, %425 : vector<8x32xf32>
    %427 = math.tanh %426 : vector<8x32xf32>
    %428 = arith.mulf %423, %427 : vector<8x32xf32>
    %429 = arith.truncf %428 : vector<8x32xf32> to vector<8x32xbf16>
    %c40_112 = arith.constant 40 : index
    %c0_113 = arith.constant 0 : index
    %430 = vector.load %arg7[%c40_112, %c0_113] : memref<64x128xf32, #tpu.memory_space<vmem>>, vector<8x128xf32>
    %cst_114 = arith.constant dense<0.000000e+00> : vector<8x128xf32>
    %431 = tpu.matmul %429, %283, %cst_114 {dimension_numbers = #tpu.dot_dimension_numbers<[1], [0], [0], [1], [0, 0, 1, 1], [], []>} : vector<8x32xbf16>, vector<32x128xbf16>, vector<8x128xf32> -> vector<8x128xf32>
    %432 = arith.addf %430, %431 : vector<8x128xf32>
    %433 = vector.extract_strided_slice %432 {offsets = [0, 0], sizes = [8, 32], strides = [1, 1]} : vector<8x128xf32> to vector<8x32xf32>
    %434 = arith.negf %433 : vector<8x32xf32>
    %435 = math.exp %434 : vector<8x32xf32>
    %cst_115 = arith.constant 1.000000e+00 : f32
    %436 = vector.broadcast %cst_115 : f32 to vector<8x32xf32>
    %437 = arith.addf %436, %435 : vector<8x32xf32>
    %438 = arith.divf %436, %437 : vector<8x32xf32>
    %439 = vector.extract_strided_slice %432 {offsets = [0, 32], sizes = [8, 32], strides = [1, 1]} : vector<8x128xf32> to vector<8x32xf32>
    %440 = arith.negf %439 : vector<8x32xf32>
    %441 = math.exp %440 : vector<8x32xf32>
    %cst_116 = arith.constant 1.000000e+00 : f32
    %442 = vector.broadcast %cst_116 : f32 to vector<8x32xf32>
    %443 = arith.addf %442, %441 : vector<8x32xf32>
    %444 = arith.divf %442, %443 : vector<8x32xf32>
    %445 = vector.extract_strided_slice %432 {offsets = [0, 64], sizes = [8, 32], strides = [1, 1]} : vector<8x128xf32> to vector<8x32xf32>
    %446 = math.tanh %445 : vector<8x32xf32>
    %447 = vector.extract_strided_slice %432 {offsets = [0, 96], sizes = [8, 32], strides = [1, 1]} : vector<8x128xf32> to vector<8x32xf32>
    %448 = arith.negf %447 : vector<8x32xf32>
    %449 = math.exp %448 : vector<8x32xf32>
    %cst_117 = arith.constant 1.000000e+00 : f32
    %450 = vector.broadcast %cst_117 : f32 to vector<8x32xf32>
    %451 = arith.addf %450, %449 : vector<8x32xf32>
    %452 = arith.divf %450, %451 : vector<8x32xf32>
    %453 = arith.mulf %444, %426 : vector<8x32xf32>
    %454 = arith.mulf %438, %446 : vector<8x32xf32>
    %455 = arith.addf %453, %454 : vector<8x32xf32>
    %456 = math.tanh %455 : vector<8x32xf32>
    %457 = arith.mulf %452, %456 : vector<8x32xf32>
    %458 = arith.truncf %457 : vector<8x32xf32> to vector<8x32xbf16>
    %c48_118 = arith.constant 48 : index
    %c0_119 = arith.constant 0 : index
    %459 = vector.load %arg7[%c48_118, %c0_119] : memref<64x128xf32, #tpu.memory_space<vmem>>, vector<8x128xf32>
    %cst_120 = arith.constant dense<0.000000e+00> : vector<8x128xf32>
    %460 = tpu.matmul %458, %283, %cst_120 {dimension_numbers = #tpu.dot_dimension_numbers<[1], [0], [0], [1], [0, 0, 1, 1], [], []>} : vector<8x32xbf16>, vector<32x128xbf16>, vector<8x128xf32> -> vector<8x128xf32>
    %461 = arith.addf %459, %460 : vector<8x128xf32>
    %462 = vector.extract_strided_slice %461 {offsets = [0, 0], sizes = [8, 32], strides = [1, 1]} : vector<8x128xf32> to vector<8x32xf32>
    %463 = arith.negf %462 : vector<8x32xf32>
    %464 = math.exp %463 : vector<8x32xf32>
    %cst_121 = arith.constant 1.000000e+00 : f32
    %465 = vector.broadcast %cst_121 : f32 to vector<8x32xf32>
    %466 = arith.addf %465, %464 : vector<8x32xf32>
    %467 = arith.divf %465, %466 : vector<8x32xf32>
    %468 = vector.extract_strided_slice %461 {offsets = [0, 32], sizes = [8, 32], strides = [1, 1]} : vector<8x128xf32> to vector<8x32xf32>
    %469 = arith.negf %468 : vector<8x32xf32>
    %470 = math.exp %469 : vector<8x32xf32>
    %cst_122 = arith.constant 1.000000e+00 : f32
    %471 = vector.broadcast %cst_122 : f32 to vector<8x32xf32>
    %472 = arith.addf %471, %470 : vector<8x32xf32>
    %473 = arith.divf %471, %472 : vector<8x32xf32>
    %474 = vector.extract_strided_slice %461 {offsets = [0, 64], sizes = [8, 32], strides = [1, 1]} : vector<8x128xf32> to vector<8x32xf32>
    %475 = math.tanh %474 : vector<8x32xf32>
    %476 = vector.extract_strided_slice %461 {offsets = [0, 96], sizes = [8, 32], strides = [1, 1]} : vector<8x128xf32> to vector<8x32xf32>
    %477 = arith.negf %476 : vector<8x32xf32>
    %478 = math.exp %477 : vector<8x32xf32>
    %cst_123 = arith.constant 1.000000e+00 : f32
    %479 = vector.broadcast %cst_123 : f32 to vector<8x32xf32>
    %480 = arith.addf %479, %478 : vector<8x32xf32>
    %481 = arith.divf %479, %480 : vector<8x32xf32>
    %482 = arith.mulf %473, %455 : vector<8x32xf32>
    %483 = arith.mulf %467, %475 : vector<8x32xf32>
    %484 = arith.addf %482, %483 : vector<8x32xf32>
    %485 = math.tanh %484 : vector<8x32xf32>
    %486 = arith.mulf %481, %485 : vector<8x32xf32>
    %487 = arith.truncf %486 : vector<8x32xf32> to vector<8x32xbf16>
    %c56_124 = arith.constant 56 : index
    %c0_125 = arith.constant 0 : index
    %488 = vector.load %arg7[%c56_124, %c0_125] : memref<64x128xf32, #tpu.memory_space<vmem>>, vector<8x128xf32>
    %cst_126 = arith.constant dense<0.000000e+00> : vector<8x128xf32>
    %489 = tpu.matmul %487, %283, %cst_126 {dimension_numbers = #tpu.dot_dimension_numbers<[1], [0], [0], [1], [0, 0, 1, 1], [], []>} : vector<8x32xbf16>, vector<32x128xbf16>, vector<8x128xf32> -> vector<8x128xf32>
    %490 = arith.addf %488, %489 : vector<8x128xf32>
    %491 = vector.extract_strided_slice %490 {offsets = [0, 0], sizes = [8, 32], strides = [1, 1]} : vector<8x128xf32> to vector<8x32xf32>
    %492 = arith.negf %491 : vector<8x32xf32>
    %493 = math.exp %492 : vector<8x32xf32>
    %cst_127 = arith.constant 1.000000e+00 : f32
    %494 = vector.broadcast %cst_127 : f32 to vector<8x32xf32>
    %495 = arith.addf %494, %493 : vector<8x32xf32>
    %496 = arith.divf %494, %495 : vector<8x32xf32>
    %497 = vector.extract_strided_slice %490 {offsets = [0, 32], sizes = [8, 32], strides = [1, 1]} : vector<8x128xf32> to vector<8x32xf32>
    %498 = arith.negf %497 : vector<8x32xf32>
    %499 = math.exp %498 : vector<8x32xf32>
    %cst_128 = arith.constant 1.000000e+00 : f32
    %500 = vector.broadcast %cst_128 : f32 to vector<8x32xf32>
    %501 = arith.addf %500, %499 : vector<8x32xf32>
    %502 = arith.divf %500, %501 : vector<8x32xf32>
    %503 = vector.extract_strided_slice %490 {offsets = [0, 64], sizes = [8, 32], strides = [1, 1]} : vector<8x128xf32> to vector<8x32xf32>
    %504 = math.tanh %503 : vector<8x32xf32>
    %505 = vector.extract_strided_slice %490 {offsets = [0, 96], sizes = [8, 32], strides = [1, 1]} : vector<8x128xf32> to vector<8x32xf32>
    %506 = arith.negf %505 : vector<8x32xf32>
    %507 = math.exp %506 : vector<8x32xf32>
    %cst_129 = arith.constant 1.000000e+00 : f32
    %508 = vector.broadcast %cst_129 : f32 to vector<8x32xf32>
    %509 = arith.addf %508, %507 : vector<8x32xf32>
    %510 = arith.divf %508, %509 : vector<8x32xf32>
    %511 = arith.mulf %502, %484 : vector<8x32xf32>
    %512 = arith.mulf %496, %504 : vector<8x32xf32>
    %513 = arith.addf %511, %512 : vector<8x32xf32>
    %514 = math.tanh %513 : vector<8x32xf32>
    %515 = arith.mulf %510, %514 : vector<8x32xf32>
    %c144 = arith.constant 144 : index
    %c0_130 = arith.constant 0 : index
    %516 = vector.load %arg2[%c144, %c0_130] : memref<480x128xbf16, #tpu.memory_space<vmem>>, vector<32x16xbf16>
    %517 = arith.truncf %515 : vector<8x32xf32> to vector<8x32xbf16>
    %cst_131 = arith.constant dense<0.000000e+00> : vector<8x16xf32>
    %518 = tpu.matmul %517, %516, %cst_131 {dimension_numbers = #tpu.dot_dimension_numbers<[1], [0], [0], [1], [0, 0, 1, 1], [], []>} : vector<8x32xbf16>, vector<32x16xbf16>, vector<8x16xf32> -> vector<8x16xf32>
    %c3 = arith.constant 3 : index
    %c0_132 = arith.constant 0 : index
    %519 = vector.load %arg3[%c3, %c0_132] : memref<10x128xf32, #tpu.memory_space<vmem>>, vector<1x16xf32>
    %520 = vector.broadcast %519 : vector<1x16xf32> to vector<8x16xf32>
    %521 = arith.addf %518, %520 : vector<8x16xf32>
    %c0_133 = arith.constant 0 : index
    %c0_134 = arith.constant 0 : index
    %522 = vector.load %arg4[%c0_133, %c0_134] : memref<8x16xf32, #tpu.memory_space<vmem>>, vector<8x16xf32>
    tpu.vector_store %arg4[%c0_133, %c0_134], %521 {strides = array<i32>} : memref<8x16xf32, #tpu.memory_space<vmem>>, vector<8x16xf32>,
    %523 = vector.extract_strided_slice %521 {offsets = [0, 0], sizes = [8, 8], strides = [1, 1]} : vector<8x16xf32> to vector<8x8xf32>
    %524 = vector.extract_strided_slice %521 {offsets = [0, 8], sizes = [8, 8], strides = [1, 1]} : vector<8x16xf32> to vector<8x8xf32>
    %cst_135 = arith.constant 5.000000e-01 : f32
    %525 = vector.broadcast %cst_135 : f32 to vector<8x8xf32>
    %526 = arith.mulf %525, %524 : vector<8x8xf32>
    %527 = math.exp %526 : vector<8x8xf32>
    %c0_136 = arith.constant 0 : index
    %c0_137 = arith.constant 0 : index
    %528 = vector.load %arg1[%c0_136, %c0_137] : memref<8x8xf32, #tpu.memory_space<vmem>>, vector<8x8xf32>
    %529 = arith.mulf %527, %528 : vector<8x8xf32>
    %530 = arith.addf %523, %529 : vector<8x8xf32>
    %531 = vector.extract_strided_slice %0 {offsets = [0, 16], sizes = [8, 4], strides = [1, 1]} : vector<64x20xf32> to vector<8x4xf32>
    %c176 = arith.constant 176 : index
    %c0_138 = arith.constant 0 : index
    %532 = vector.load %arg2[%c176, %c0_138] : memref<480x128xbf16, #tpu.memory_space<vmem>>, vector<8x20xbf16>
    %533 = arith.truncf %530 : vector<8x8xf32> to vector<8x8xbf16>
    %cst_139 = arith.constant dense<0.000000e+00> : vector<8x20xf32>
    %534 = tpu.matmul %533, %532, %cst_139 {dimension_numbers = #tpu.dot_dimension_numbers<[1], [0], [0], [1], [0, 0, 1, 1], [], []>} : vector<8x8xbf16>, vector<8x20xbf16>, vector<8x20xf32> -> vector<8x20xf32>
    %c192 = arith.constant 192 : index
    %c0_140 = arith.constant 0 : index
    %535 = vector.load %arg2[%c192, %c0_140] : memref<480x128xbf16, #tpu.memory_space<vmem>>, vector<4x20xbf16>
    %536 = arith.truncf %531 : vector<8x4xf32> to vector<8x4xbf16>
    %cst_141 = arith.constant dense<0.000000e+00> : vector<8x20xf32>
    %537 = tpu.matmul %536, %535, %cst_141 {dimension_numbers = #tpu.dot_dimension_numbers<[1], [0], [0], [1], [0, 0, 1, 1], [], []>} : vector<8x4xbf16>, vector<4x20xbf16>, vector<8x20xf32> -> vector<8x20xf32>
    %538 = arith.addf %534, %537 : vector<8x20xf32>
    %c4 = arith.constant 4 : index
    %c0_142 = arith.constant 0 : index
    %539 = vector.load %arg3[%c4, %c0_142] : memref<10x128xf32, #tpu.memory_space<vmem>>, vector<1x20xf32>
    %540 = vector.broadcast %539 : vector<1x20xf32> to vector<8x20xf32>
    %541 = arith.addf %538, %540 : vector<8x20xf32>
    %542 = vector.extract_strided_slice %541 {offsets = [0, 16], sizes = [8, 1], strides = [1, 1]} : vector<8x20xf32> to vector<8x1xf32>
    %543 = vector.shape_cast %542 : vector<8x1xf32> to vector<8x1xf32>
    %544 = vector.broadcast %543 : vector<8x1xf32> to vector<8x32xf32>
    %c256 = arith.constant 256 : index
    %c0_143 = arith.constant 0 : index
    %545 = vector.load %arg2[%c256, %c0_143] : memref<480x128xbf16, #tpu.memory_space<vmem>>, vector<8x128xbf16>
    %546 = arith.truncf %530 : vector<8x8xf32> to vector<8x8xbf16>
    %cst_144 = arith.constant dense<0.000000e+00> : vector<8x128xf32>
    %547 = tpu.matmul %546, %545, %cst_144 {dimension_numbers = #tpu.dot_dimension_numbers<[1], [0], [0], [1], [0, 0, 1, 1], [], []>} : vector<8x8xbf16>, vector<8x128xbf16>, vector<8x128xf32> -> vector<8x128xf32>
    %c272 = arith.constant 272 : index
    %c0_145 = arith.constant 0 : index
    %548 = vector.load %arg2[%c272, %c0_145] : memref<480x128xbf16, #tpu.memory_space<vmem>>, vector<4x128xbf16>
    %549 = arith.truncf %531 : vector<8x4xf32> to vector<8x4xbf16>
    %cst_146 = arith.constant dense<0.000000e+00> : vector<8x128xf32>
    %550 = tpu.matmul %549, %548, %cst_146 {dimension_numbers = #tpu.dot_dimension_numbers<[1], [0], [0], [1], [0, 0, 1, 1], [], []>} : vector<8x4xbf16>, vector<4x128xbf16>, vector<8x128xf32> -> vector<8x128xf32>
    %551 = arith.addf %547, %550 : vector<8x128xf32>
    %c6 = arith.constant 6 : index
    %c0_147 = arith.constant 0 : index
    %552 = vector.load %arg3[%c6, %c0_147] : memref<10x128xf32, #tpu.memory_space<vmem>>, vector<1x128xf32>
    %553 = vector.broadcast %552 : vector<1x128xf32> to vector<8x128xf32>
    %554 = arith.addf %551, %553 : vector<8x128xf32>
    %c208 = arith.constant 208 : index
    %c0_148 = arith.constant 0 : index
    %555 = vector.load %arg2[%c208, %c0_148] : memref<480x128xbf16, #tpu.memory_space<vmem>>, vector<20x16xbf16>
    %c5 = arith.constant 5 : index
    %c0_149 = arith.constant 0 : index
    %556 = vector.load %arg3[%c5, %c0_149] : memref<10x128xf32, #tpu.memory_space<vmem>>, vector<1x16xf32>
    %c240 = arith.constant 240 : index
    %c0_150 = arith.constant 0 : index
    %557 = vector.load %arg2[%c240, %c0_150] : memref<480x128xbf16, #tpu.memory_space<vmem>>, vector<16x128xbf16>
    %558 = arith.truncf %541 : vector<8x20xf32> to vector<8x20xbf16>
    %cst_151 = arith.constant dense<0.000000e+00> : vector<8x16xf32>
    %559 = tpu.matmul %558, %555, %cst_151 {dimension_numbers = #tpu.dot_dimension_numbers<[1], [0], [0], [1], [0, 0, 1, 1], [], []>} : vector<8x20xbf16>, vector<20x16xbf16>, vector<8x16xf32> -> vector<8x16xf32>
    %560 = vector.broadcast %556 : vector<1x16xf32> to vector<8x16xf32>
    %561 = arith.addf %559, %560 : vector<8x16xf32>
    %562 = arith.truncf %561 : vector<8x16xf32> to vector<8x16xbf16>
    %cst_152 = arith.constant dense<0.000000e+00> : vector<8x128xf32>
    %563 = tpu.matmul %562, %557, %cst_152 {dimension_numbers = #tpu.dot_dimension_numbers<[1], [0], [0], [1], [0, 0, 1, 1], [], []>} : vector<8x16xbf16>, vector<16x128xbf16>, vector<8x128xf32> -> vector<8x128xf32>
    %564 = arith.addf %563, %554 : vector<8x128xf32>
    %c0_153 = arith.constant 0 : index
    %c0_154 = arith.constant 0 : index
    %565 = vector.load %arg6[%c0_153, %c0_154] : memref<64x128xf32, #tpu.memory_space<vmem>>, vector<8x128xf32>
    tpu.vector_store %arg6[%c0_153, %c0_154], %564 {strides = array<i32>} : memref<64x128xf32, #tpu.memory_space<vmem>>, vector<8x128xf32>,
    %566 = vector.extract_strided_slice %0 {offsets = [0, 0], sizes = [56, 20], strides = [1, 1]} : vector<64x20xf32> to vector<56x20xf32>
    %567 = arith.truncf %566 : vector<56x20xf32> to vector<56x20xbf16>
    %cst_155 = arith.constant dense<0.000000e+00> : vector<56x16xf32>
    %568 = tpu.matmul %567, %555, %cst_155 {dimension_numbers = #tpu.dot_dimension_numbers<[1], [0], [0], [1], [0, 0, 1, 1], [], []>} : vector<56x20xbf16>, vector<20x16xbf16>, vector<56x16xf32> -> vector<56x16xf32>
    %569 = vector.broadcast %556 : vector<1x16xf32> to vector<56x16xf32>
    %570 = arith.addf %568, %569 : vector<56x16xf32>
    %571 = arith.truncf %570 : vector<56x16xf32> to vector<56x16xbf16>
    %cst_156 = arith.constant dense<0.000000e+00> : vector<56x128xf32>
    %572 = tpu.matmul %571, %557, %cst_156 {dimension_numbers = #tpu.dot_dimension_numbers<[1], [0], [0], [1], [0, 0, 1, 1], [], []>} : vector<56x16xbf16>, vector<16x128xbf16>, vector<56x128xf32> -> vector<56x128xf32>
    %573 = vector.extract_strided_slice %572 {offsets = [0, 0], sizes = [8, 128], strides = [1, 1]} : vector<56x128xf32> to vector<8x128xf32>
    %574 = arith.addf %573, %554 : vector<8x128xf32>
    %c8_157 = arith.constant 8 : index
    %c0_158 = arith.constant 0 : index
    %575 = vector.load %arg6[%c8_157, %c0_158] : memref<64x128xf32, #tpu.memory_space<vmem>>, vector<8x128xf32>
    tpu.vector_store %arg6[%c8_157, %c0_158], %574 {strides = array<i32>} : memref<64x128xf32, #tpu.memory_space<vmem>>, vector<8x128xf32>,
    %576 = vector.extract_strided_slice %572 {offsets = [8, 0], sizes = [8, 128], strides = [1, 1]} : vector<56x128xf32> to vector<8x128xf32>
    %577 = arith.addf %576, %554 : vector<8x128xf32>
    %c16_159 = arith.constant 16 : index
    %c0_160 = arith.constant 0 : index
    %578 = vector.load %arg6[%c16_159, %c0_160] : memref<64x128xf32, #tpu.memory_space<vmem>>, vector<8x128xf32>
    tpu.vector_store %arg6[%c16_159, %c0_160], %577 {strides = array<i32>} : memref<64x128xf32, #tpu.memory_space<vmem>>, vector<8x128xf32>,
    %579 = vector.extract_strided_slice %572 {offsets = [16, 0], sizes = [8, 128], strides = [1, 1]} : vector<56x128xf32> to vector<8x128xf32>
    %580 = arith.addf %579, %554 : vector<8x128xf32>
    %c24_161 = arith.constant 24 : index
    %c0_162 = arith.constant 0 : index
    %581 = vector.load %arg6[%c24_161, %c0_162] : memref<64x128xf32, #tpu.memory_space<vmem>>, vector<8x128xf32>
    tpu.vector_store %arg6[%c24_161, %c0_162], %580 {strides = array<i32>} : memref<64x128xf32, #tpu.memory_space<vmem>>, vector<8x128xf32>,
    %582 = vector.extract_strided_slice %572 {offsets = [24, 0], sizes = [8, 128], strides = [1, 1]} : vector<56x128xf32> to vector<8x128xf32>
    %583 = arith.addf %582, %554 : vector<8x128xf32>
    %c32_163 = arith.constant 32 : index
    %c0_164 = arith.constant 0 : index
    %584 = vector.load %arg6[%c32_163, %c0_164] : memref<64x128xf32, #tpu.memory_space<vmem>>, vector<8x128xf32>
    tpu.vector_store %arg6[%c32_163, %c0_164], %583 {strides = array<i32>} : memref<64x128xf32, #tpu.memory_space<vmem>>, vector<8x128xf32>,
    %585 = vector.extract_strided_slice %572 {offsets = [32, 0], sizes = [8, 128], strides = [1, 1]} : vector<56x128xf32> to vector<8x128xf32>
    %586 = arith.addf %585, %554 : vector<8x128xf32>
    %c40_165 = arith.constant 40 : index
    %c0_166 = arith.constant 0 : index
    %587 = vector.load %arg6[%c40_165, %c0_166] : memref<64x128xf32, #tpu.memory_space<vmem>>, vector<8x128xf32>
    tpu.vector_store %arg6[%c40_165, %c0_166], %586 {strides = array<i32>} : memref<64x128xf32, #tpu.memory_space<vmem>>, vector<8x128xf32>,
    %588 = vector.extract_strided_slice %572 {offsets = [40, 0], sizes = [8, 128], strides = [1, 1]} : vector<56x128xf32> to vector<8x128xf32>
    %589 = arith.addf %588, %554 : vector<8x128xf32>
    %c48_167 = arith.constant 48 : index
    %c0_168 = arith.constant 0 : index
    %590 = vector.load %arg6[%c48_167, %c0_168] : memref<64x128xf32, #tpu.memory_space<vmem>>, vector<8x128xf32>
    tpu.vector_store %arg6[%c48_167, %c0_168], %589 {strides = array<i32>} : memref<64x128xf32, #tpu.memory_space<vmem>>, vector<8x128xf32>,
    %591 = vector.extract_strided_slice %572 {offsets = [48, 0], sizes = [8, 128], strides = [1, 1]} : vector<56x128xf32> to vector<8x128xf32>
    %592 = arith.addf %591, %554 : vector<8x128xf32>
    %c56_169 = arith.constant 56 : index
    %c0_170 = arith.constant 0 : index
    %593 = vector.load %arg6[%c56_169, %c0_170] : memref<64x128xf32, #tpu.memory_space<vmem>>, vector<8x128xf32>
    tpu.vector_store %arg6[%c56_169, %c0_170], %592 {strides = array<i32>} : memref<64x128xf32, #tpu.memory_space<vmem>>, vector<8x128xf32>,
    %c320 = arith.constant 320 : index
    %c0_171 = arith.constant 0 : index
    %594 = vector.load %arg2[%c320, %c0_171] : memref<480x128xbf16, #tpu.memory_space<vmem>>, vector<32x128xbf16>
    %c7 = arith.constant 7 : index
    %c0_172 = arith.constant 0 : index
    %595 = vector.load %arg3[%c7, %c0_172] : memref<10x128xf32, #tpu.memory_space<vmem>>, vector<1x128xf32>
    %c288 = arith.constant 288 : index
    %c0_173 = arith.constant 0 : index
    %596 = vector.load %arg2[%c288, %c0_173] : memref<480x128xbf16, #tpu.memory_space<vmem>>, vector<32x128xbf16>
    %597 = arith.truncf %544 : vector<8x32xf32> to vector<8x32xbf16>
    %c0_174 = arith.constant 0 : index
    %c0_175 = arith.constant 0 : index
    %598 = vector.load %arg6[%c0_174, %c0_175] : memref<64x128xf32, #tpu.memory_space<vmem>>, vector<8x128xf32>
    %cst_176 = arith.constant dense<0.000000e+00> : vector<8x128xf32>
    %599 = tpu.matmul %597, %596, %cst_176 {dimension_numbers = #tpu.dot_dimension_numbers<[1], [0], [0], [1], [0, 0, 1, 1], [], []>} : vector<8x32xbf16>, vector<32x128xbf16>, vector<8x128xf32> -> vector<8x128xf32>
    %600 = arith.addf %598, %599 : vector<8x128xf32>
    %601 = vector.extract_strided_slice %600 {offsets = [0, 0], sizes = [8, 32], strides = [1, 1]} : vector<8x128xf32> to vector<8x32xf32>
    %602 = arith.negf %601 : vector<8x32xf32>
    %603 = math.exp %602 : vector<8x32xf32>
    %cst_177 = arith.constant 1.000000e+00 : f32
    %604 = vector.broadcast %cst_177 : f32 to vector<8x32xf32>
    %605 = arith.addf %604, %603 : vector<8x32xf32>
    %606 = arith.divf %604, %605 : vector<8x32xf32>
    %607 = vector.extract_strided_slice %600 {offsets = [0, 32], sizes = [8, 32], strides = [1, 1]} : vector<8x128xf32> to vector<8x32xf32>
    %608 = arith.negf %607 : vector<8x32xf32>
    %609 = math.exp %608 : vector<8x32xf32>
    %cst_178 = arith.constant 1.000000e+00 : f32
    %610 = vector.broadcast %cst_178 : f32 to vector<8x32xf32>
    %611 = arith.addf %610, %609 : vector<8x32xf32>
    %612 = arith.divf %610, %611 : vector<8x32xf32>
    %613 = vector.extract_strided_slice %600 {offsets = [0, 64], sizes = [8, 32], strides = [1, 1]} : vector<8x128xf32> to vector<8x32xf32>
    %614 = math.tanh %613 : vector<8x32xf32>
    %615 = vector.extract_strided_slice %600 {offsets = [0, 96], sizes = [8, 32], strides = [1, 1]} : vector<8x128xf32> to vector<8x32xf32>
    %616 = arith.negf %615 : vector<8x32xf32>
    %617 = math.exp %616 : vector<8x32xf32>
    %cst_179 = arith.constant 1.000000e+00 : f32
    %618 = vector.broadcast %cst_179 : f32 to vector<8x32xf32>
    %619 = arith.addf %618, %617 : vector<8x32xf32>
    %620 = arith.divf %618, %619 : vector<8x32xf32>
    %621 = arith.mulf %612, %544 : vector<8x32xf32>
    %622 = arith.mulf %606, %614 : vector<8x32xf32>
    %623 = arith.addf %621, %622 : vector<8x32xf32>
    %624 = math.tanh %623 : vector<8x32xf32>
    %625 = arith.mulf %620, %624 : vector<8x32xf32>
    %626 = arith.truncf %625 : vector<8x32xf32> to vector<8x32xbf16>
    %cst_180 = arith.constant dense<0.000000e+00> : vector<8x128xf32>
    %627 = tpu.matmul %626, %594, %cst_180 {dimension_numbers = #tpu.dot_dimension_numbers<[1], [0], [0], [1], [0, 0, 1, 1], [], []>} : vector<8x32xbf16>, vector<32x128xbf16>, vector<8x128xf32> -> vector<8x128xf32>
    %628 = vector.broadcast %595 : vector<1x128xf32> to vector<8x128xf32>
    %629 = arith.addf %627, %628 : vector<8x128xf32>
    %c0_181 = arith.constant 0 : index
    %c0_182 = arith.constant 0 : index
    %630 = vector.load %arg7[%c0_181, %c0_182] : memref<64x128xf32, #tpu.memory_space<vmem>>, vector<8x128xf32>
    tpu.vector_store %arg7[%c0_181, %c0_182], %629 {strides = array<i32>} : memref<64x128xf32, #tpu.memory_space<vmem>>, vector<8x128xf32>,
    %c8_183 = arith.constant 8 : index
    %c0_184 = arith.constant 0 : index
    %631 = vector.load %arg6[%c8_183, %c0_184] : memref<64x128xf32, #tpu.memory_space<vmem>>, vector<8x128xf32>
    %cst_185 = arith.constant dense<0.000000e+00> : vector<8x128xf32>
    %632 = tpu.matmul %626, %596, %cst_185 {dimension_numbers = #tpu.dot_dimension_numbers<[1], [0], [0], [1], [0, 0, 1, 1], [], []>} : vector<8x32xbf16>, vector<32x128xbf16>, vector<8x128xf32> -> vector<8x128xf32>
    %633 = arith.addf %631, %632 : vector<8x128xf32>
    %634 = vector.extract_strided_slice %633 {offsets = [0, 0], sizes = [8, 32], strides = [1, 1]} : vector<8x128xf32> to vector<8x32xf32>
    %635 = arith.negf %634 : vector<8x32xf32>
    %636 = math.exp %635 : vector<8x32xf32>
    %cst_186 = arith.constant 1.000000e+00 : f32
    %637 = vector.broadcast %cst_186 : f32 to vector<8x32xf32>
    %638 = arith.addf %637, %636 : vector<8x32xf32>
    %639 = arith.divf %637, %638 : vector<8x32xf32>
    %640 = vector.extract_strided_slice %633 {offsets = [0, 32], sizes = [8, 32], strides = [1, 1]} : vector<8x128xf32> to vector<8x32xf32>
    %641 = arith.negf %640 : vector<8x32xf32>
    %642 = math.exp %641 : vector<8x32xf32>
    %cst_187 = arith.constant 1.000000e+00 : f32
    %643 = vector.broadcast %cst_187 : f32 to vector<8x32xf32>
    %644 = arith.addf %643, %642 : vector<8x32xf32>
    %645 = arith.divf %643, %644 : vector<8x32xf32>
    %646 = vector.extract_strided_slice %633 {offsets = [0, 64], sizes = [8, 32], strides = [1, 1]} : vector<8x128xf32> to vector<8x32xf32>
    %647 = math.tanh %646 : vector<8x32xf32>
    %648 = vector.extract_strided_slice %633 {offsets = [0, 96], sizes = [8, 32], strides = [1, 1]} : vector<8x128xf32> to vector<8x32xf32>
    %649 = arith.negf %648 : vector<8x32xf32>
    %650 = math.exp %649 : vector<8x32xf32>
    %cst_188 = arith.constant 1.000000e+00 : f32
    %651 = vector.broadcast %cst_188 : f32 to vector<8x32xf32>
    %652 = arith.addf %651, %650 : vector<8x32xf32>
    %653 = arith.divf %651, %652 : vector<8x32xf32>
    %654 = arith.mulf %645, %623 : vector<8x32xf32>
    %655 = arith.mulf %639, %647 : vector<8x32xf32>
    %656 = arith.addf %654, %655 : vector<8x32xf32>
    %657 = math.tanh %656 : vector<8x32xf32>
    %658 = arith.mulf %653, %657 : vector<8x32xf32>
    %659 = arith.truncf %658 : vector<8x32xf32> to vector<8x32xbf16>
    %cst_189 = arith.constant dense<0.000000e+00> : vector<8x128xf32>
    %660 = tpu.matmul %659, %594, %cst_189 {dimension_numbers = #tpu.dot_dimension_numbers<[1], [0], [0], [1], [0, 0, 1, 1], [], []>} : vector<8x32xbf16>, vector<32x128xbf16>, vector<8x128xf32> -> vector<8x128xf32>
    %661 = vector.broadcast %595 : vector<1x128xf32> to vector<8x128xf32>
    %662 = arith.addf %660, %661 : vector<8x128xf32>
    %c8_190 = arith.constant 8 : index
    %c0_191 = arith.constant 0 : index
    %663 = vector.load %arg7[%c8_190, %c0_191] : memref<64x128xf32, #tpu.memory_space<vmem>>, vector<8x128xf32>
    tpu.vector_store %arg7[%c8_190, %c0_191], %662 {strides = array<i32>} : memref<64x128xf32, #tpu.memory_space<vmem>>, vector<8x128xf32>,
    %c16_192 = arith.constant 16 : index
    %c0_193 = arith.constant 0 : index
    %664 = vector.load %arg6[%c16_192, %c0_193] : memref<64x128xf32, #tpu.memory_space<vmem>>, vector<8x128xf32>
    %cst_194 = arith.constant dense<0.000000e+00> : vector<8x128xf32>
    %665 = tpu.matmul %659, %596, %cst_194 {dimension_numbers = #tpu.dot_dimension_numbers<[1], [0], [0], [1], [0, 0, 1, 1], [], []>} : vector<8x32xbf16>, vector<32x128xbf16>, vector<8x128xf32> -> vector<8x128xf32>
    %666 = arith.addf %664, %665 : vector<8x128xf32>
    %667 = vector.extract_strided_slice %666 {offsets = [0, 0], sizes = [8, 32], strides = [1, 1]} : vector<8x128xf32> to vector<8x32xf32>
    %668 = arith.negf %667 : vector<8x32xf32>
    %669 = math.exp %668 : vector<8x32xf32>
    %cst_195 = arith.constant 1.000000e+00 : f32
    %670 = vector.broadcast %cst_195 : f32 to vector<8x32xf32>
    %671 = arith.addf %670, %669 : vector<8x32xf32>
    %672 = arith.divf %670, %671 : vector<8x32xf32>
    %673 = vector.extract_strided_slice %666 {offsets = [0, 32], sizes = [8, 32], strides = [1, 1]} : vector<8x128xf32> to vector<8x32xf32>
    %674 = arith.negf %673 : vector<8x32xf32>
    %675 = math.exp %674 : vector<8x32xf32>
    %cst_196 = arith.constant 1.000000e+00 : f32
    %676 = vector.broadcast %cst_196 : f32 to vector<8x32xf32>
    %677 = arith.addf %676, %675 : vector<8x32xf32>
    %678 = arith.divf %676, %677 : vector<8x32xf32>
    %679 = vector.extract_strided_slice %666 {offsets = [0, 64], sizes = [8, 32], strides = [1, 1]} : vector<8x128xf32> to vector<8x32xf32>
    %680 = math.tanh %679 : vector<8x32xf32>
    %681 = vector.extract_strided_slice %666 {offsets = [0, 96], sizes = [8, 32], strides = [1, 1]} : vector<8x128xf32> to vector<8x32xf32>
    %682 = arith.negf %681 : vector<8x32xf32>
    %683 = math.exp %682 : vector<8x32xf32>
    %cst_197 = arith.constant 1.000000e+00 : f32
    %684 = vector.broadcast %cst_197 : f32 to vector<8x32xf32>
    %685 = arith.addf %684, %683 : vector<8x32xf32>
    %686 = arith.divf %684, %685 : vector<8x32xf32>
    %687 = arith.mulf %678, %656 : vector<8x32xf32>
    %688 = arith.mulf %672, %680 : vector<8x32xf32>
    %689 = arith.addf %687, %688 : vector<8x32xf32>
    %690 = math.tanh %689 : vector<8x32xf32>
    %691 = arith.mulf %686, %690 : vector<8x32xf32>
    %692 = arith.truncf %691 : vector<8x32xf32> to vector<8x32xbf16>
    %cst_198 = arith.constant dense<0.000000e+00> : vector<8x128xf32>
    %693 = tpu.matmul %692, %594, %cst_198 {dimension_numbers = #tpu.dot_dimension_numbers<[1], [0], [0], [1], [0, 0, 1, 1], [], []>} : vector<8x32xbf16>, vector<32x128xbf16>, vector<8x128xf32> -> vector<8x128xf32>
    %694 = vector.broadcast %595 : vector<1x128xf32> to vector<8x128xf32>
    %695 = arith.addf %693, %694 : vector<8x128xf32>
    %c16_199 = arith.constant 16 : index
    %c0_200 = arith.constant 0 : index
    %696 = vector.load %arg7[%c16_199, %c0_200] : memref<64x128xf32, #tpu.memory_space<vmem>>, vector<8x128xf32>
    tpu.vector_store %arg7[%c16_199, %c0_200], %695 {strides = array<i32>} : memref<64x128xf32, #tpu.memory_space<vmem>>, vector<8x128xf32>,
    %c24_201 = arith.constant 24 : index
    %c0_202 = arith.constant 0 : index
    %697 = vector.load %arg6[%c24_201, %c0_202] : memref<64x128xf32, #tpu.memory_space<vmem>>, vector<8x128xf32>
    %cst_203 = arith.constant dense<0.000000e+00> : vector<8x128xf32>
    %698 = tpu.matmul %692, %596, %cst_203 {dimension_numbers = #tpu.dot_dimension_numbers<[1], [0], [0], [1], [0, 0, 1, 1], [], []>} : vector<8x32xbf16>, vector<32x128xbf16>, vector<8x128xf32> -> vector<8x128xf32>
    %699 = arith.addf %697, %698 : vector<8x128xf32>
    %700 = vector.extract_strided_slice %699 {offsets = [0, 0], sizes = [8, 32], strides = [1, 1]} : vector<8x128xf32> to vector<8x32xf32>
    %701 = arith.negf %700 : vector<8x32xf32>
    %702 = math.exp %701 : vector<8x32xf32>
    %cst_204 = arith.constant 1.000000e+00 : f32
    %703 = vector.broadcast %cst_204 : f32 to vector<8x32xf32>
    %704 = arith.addf %703, %702 : vector<8x32xf32>
    %705 = arith.divf %703, %704 : vector<8x32xf32>
    %706 = vector.extract_strided_slice %699 {offsets = [0, 32], sizes = [8, 32], strides = [1, 1]} : vector<8x128xf32> to vector<8x32xf32>
    %707 = arith.negf %706 : vector<8x32xf32>
    %708 = math.exp %707 : vector<8x32xf32>
    %cst_205 = arith.constant 1.000000e+00 : f32
    %709 = vector.broadcast %cst_205 : f32 to vector<8x32xf32>
    %710 = arith.addf %709, %708 : vector<8x32xf32>
    %711 = arith.divf %709, %710 : vector<8x32xf32>
    %712 = vector.extract_strided_slice %699 {offsets = [0, 64], sizes = [8, 32], strides = [1, 1]} : vector<8x128xf32> to vector<8x32xf32>
    %713 = math.tanh %712 : vector<8x32xf32>
    %714 = vector.extract_strided_slice %699 {offsets = [0, 96], sizes = [8, 32], strides = [1, 1]} : vector<8x128xf32> to vector<8x32xf32>
    %715 = arith.negf %714 : vector<8x32xf32>
    %716 = math.exp %715 : vector<8x32xf32>
    %cst_206 = arith.constant 1.000000e+00 : f32
    %717 = vector.broadcast %cst_206 : f32 to vector<8x32xf32>
    %718 = arith.addf %717, %716 : vector<8x32xf32>
    %719 = arith.divf %717, %718 : vector<8x32xf32>
    %720 = arith.mulf %711, %689 : vector<8x32xf32>
    %721 = arith.mulf %705, %713 : vector<8x32xf32>
    %722 = arith.addf %720, %721 : vector<8x32xf32>
    %723 = math.tanh %722 : vector<8x32xf32>
    %724 = arith.mulf %719, %723 : vector<8x32xf32>
    %725 = arith.truncf %724 : vector<8x32xf32> to vector<8x32xbf16>
    %cst_207 = arith.constant dense<0.000000e+00> : vector<8x128xf32>
    %726 = tpu.matmul %725, %594, %cst_207 {dimension_numbers = #tpu.dot_dimension_numbers<[1], [0], [0], [1], [0, 0, 1, 1], [], []>} : vector<8x32xbf16>, vector<32x128xbf16>, vector<8x128xf32> -> vector<8x128xf32>
    %727 = vector.broadcast %595 : vector<1x128xf32> to vector<8x128xf32>
    %728 = arith.addf %726, %727 : vector<8x128xf32>
    %c24_208 = arith.constant 24 : index
    %c0_209 = arith.constant 0 : index
    %729 = vector.load %arg7[%c24_208, %c0_209] : memref<64x128xf32, #tpu.memory_space<vmem>>, vector<8x128xf32>
    tpu.vector_store %arg7[%c24_208, %c0_209], %728 {strides = array<i32>} : memref<64x128xf32, #tpu.memory_space<vmem>>, vector<8x128xf32>,
    %c32_210 = arith.constant 32 : index
    %c0_211 = arith.constant 0 : index
    %730 = vector.load %arg6[%c32_210, %c0_211] : memref<64x128xf32, #tpu.memory_space<vmem>>, vector<8x128xf32>
    %cst_212 = arith.constant dense<0.000000e+00> : vector<8x128xf32>
    %731 = tpu.matmul %725, %596, %cst_212 {dimension_numbers = #tpu.dot_dimension_numbers<[1], [0], [0], [1], [0, 0, 1, 1], [], []>} : vector<8x32xbf16>, vector<32x128xbf16>, vector<8x128xf32> -> vector<8x128xf32>
    %732 = arith.addf %730, %731 : vector<8x128xf32>
    %733 = vector.extract_strided_slice %732 {offsets = [0, 0], sizes = [8, 32], strides = [1, 1]} : vector<8x128xf32> to vector<8x32xf32>
    %734 = arith.negf %733 : vector<8x32xf32>
    %735 = math.exp %734 : vector<8x32xf32>
    %cst_213 = arith.constant 1.000000e+00 : f32
    %736 = vector.broadcast %cst_213 : f32 to vector<8x32xf32>
    %737 = arith.addf %736, %735 : vector<8x32xf32>
    %738 = arith.divf %736, %737 : vector<8x32xf32>
    %739 = vector.extract_strided_slice %732 {offsets = [0, 32], sizes = [8, 32], strides = [1, 1]} : vector<8x128xf32> to vector<8x32xf32>
    %740 = arith.negf %739 : vector<8x32xf32>
    %741 = math.exp %740 : vector<8x32xf32>
    %cst_214 = arith.constant 1.000000e+00 : f32
    %742 = vector.broadcast %cst_214 : f32 to vector<8x32xf32>
    %743 = arith.addf %742, %741 : vector<8x32xf32>
    %744 = arith.divf %742, %743 : vector<8x32xf32>
    %745 = vector.extract_strided_slice %732 {offsets = [0, 64], sizes = [8, 32], strides = [1, 1]} : vector<8x128xf32> to vector<8x32xf32>
    %746 = math.tanh %745 : vector<8x32xf32>
    %747 = vector.extract_strided_slice %732 {offsets = [0, 96], sizes = [8, 32], strides = [1, 1]} : vector<8x128xf32> to vector<8x32xf32>
    %748 = arith.negf %747 : vector<8x32xf32>
    %749 = math.exp %748 : vector<8x32xf32>
    %cst_215 = arith.constant 1.000000e+00 : f32
    %750 = vector.broadcast %cst_215 : f32 to vector<8x32xf32>
    %751 = arith.addf %750, %749 : vector<8x32xf32>
    %752 = arith.divf %750, %751 : vector<8x32xf32>
    %753 = arith.mulf %744, %722 : vector<8x32xf32>
    %754 = arith.mulf %738, %746 : vector<8x32xf32>
    %755 = arith.addf %753, %754 : vector<8x32xf32>
    %756 = math.tanh %755 : vector<8x32xf32>
    %757 = arith.mulf %752, %756 : vector<8x32xf32>
    %758 = arith.truncf %757 : vector<8x32xf32> to vector<8x32xbf16>
    %cst_216 = arith.constant dense<0.000000e+00> : vector<8x128xf32>
    %759 = tpu.matmul %758, %594, %cst_216 {dimension_numbers = #tpu.dot_dimension_numbers<[1], [0], [0], [1], [0, 0, 1, 1], [], []>} : vector<8x32xbf16>, vector<32x128xbf16>, vector<8x128xf32> -> vector<8x128xf32>
    %760 = vector.broadcast %595 : vector<1x128xf32> to vector<8x128xf32>
    %761 = arith.addf %759, %760 : vector<8x128xf32>
    %c32_217 = arith.constant 32 : index
    %c0_218 = arith.constant 0 : index
    %762 = vector.load %arg7[%c32_217, %c0_218] : memref<64x128xf32, #tpu.memory_space<vmem>>, vector<8x128xf32>
    tpu.vector_store %arg7[%c32_217, %c0_218], %761 {strides = array<i32>} : memref<64x128xf32, #tpu.memory_space<vmem>>, vector<8x128xf32>,
    %c40_219 = arith.constant 40 : index
    %c0_220 = arith.constant 0 : index
    %763 = vector.load %arg6[%c40_219, %c0_220] : memref<64x128xf32, #tpu.memory_space<vmem>>, vector<8x128xf32>
    %cst_221 = arith.constant dense<0.000000e+00> : vector<8x128xf32>
    %764 = tpu.matmul %758, %596, %cst_221 {dimension_numbers = #tpu.dot_dimension_numbers<[1], [0], [0], [1], [0, 0, 1, 1], [], []>} : vector<8x32xbf16>, vector<32x128xbf16>, vector<8x128xf32> -> vector<8x128xf32>
    %765 = arith.addf %763, %764 : vector<8x128xf32>
    %766 = vector.extract_strided_slice %765 {offsets = [0, 0], sizes = [8, 32], strides = [1, 1]} : vector<8x128xf32> to vector<8x32xf32>
    %767 = arith.negf %766 : vector<8x32xf32>
    %768 = math.exp %767 : vector<8x32xf32>
    %cst_222 = arith.constant 1.000000e+00 : f32
    %769 = vector.broadcast %cst_222 : f32 to vector<8x32xf32>
    %770 = arith.addf %769, %768 : vector<8x32xf32>
    %771 = arith.divf %769, %770 : vector<8x32xf32>
    %772 = vector.extract_strided_slice %765 {offsets = [0, 32], sizes = [8, 32], strides = [1, 1]} : vector<8x128xf32> to vector<8x32xf32>
    %773 = arith.negf %772 : vector<8x32xf32>
    %774 = math.exp %773 : vector<8x32xf32>
    %cst_223 = arith.constant 1.000000e+00 : f32
    %775 = vector.broadcast %cst_223 : f32 to vector<8x32xf32>
    %776 = arith.addf %775, %774 : vector<8x32xf32>
    %777 = arith.divf %775, %776 : vector<8x32xf32>
    %778 = vector.extract_strided_slice %765 {offsets = [0, 64], sizes = [8, 32], strides = [1, 1]} : vector<8x128xf32> to vector<8x32xf32>
    %779 = math.tanh %778 : vector<8x32xf32>
    %780 = vector.extract_strided_slice %765 {offsets = [0, 96], sizes = [8, 32], strides = [1, 1]} : vector<8x128xf32> to vector<8x32xf32>
    %781 = arith.negf %780 : vector<8x32xf32>
    %782 = math.exp %781 : vector<8x32xf32>
    %cst_224 = arith.constant 1.000000e+00 : f32
    %783 = vector.broadcast %cst_224 : f32 to vector<8x32xf32>
    %784 = arith.addf %783, %782 : vector<8x32xf32>
    %785 = arith.divf %783, %784 : vector<8x32xf32>
    %786 = arith.mulf %777, %755 : vector<8x32xf32>
    %787 = arith.mulf %771, %779 : vector<8x32xf32>
    %788 = arith.addf %786, %787 : vector<8x32xf32>
    %789 = math.tanh %788 : vector<8x32xf32>
    %790 = arith.mulf %785, %789 : vector<8x32xf32>
    %791 = arith.truncf %790 : vector<8x32xf32> to vector<8x32xbf16>
    %cst_225 = arith.constant dense<0.000000e+00> : vector<8x128xf32>
    %792 = tpu.matmul %791, %594, %cst_225 {dimension_numbers = #tpu.dot_dimension_numbers<[1], [0], [0], [1], [0, 0, 1, 1], [], []>} : vector<8x32xbf16>, vector<32x128xbf16>, vector<8x128xf32> -> vector<8x128xf32>
    %793 = vector.broadcast %595 : vector<1x128xf32> to vector<8x128xf32>
    %794 = arith.addf %792, %793 : vector<8x128xf32>
    %c40_226 = arith.constant 40 : index
    %c0_227 = arith.constant 0 : index
    %795 = vector.load %arg7[%c40_226, %c0_227] : memref<64x128xf32, #tpu.memory_space<vmem>>, vector<8x128xf32>
    tpu.vector_store %arg7[%c40_226, %c0_227], %794 {strides = array<i32>} : memref<64x128xf32, #tpu.memory_space<vmem>>, vector<8x128xf32>,
    %c48_228 = arith.constant 48 : index
    %c0_229 = arith.constant 0 : index
    %796 = vector.load %arg6[%c48_228, %c0_229] : memref<64x128xf32, #tpu.memory_space<vmem>>, vector<8x128xf32>
    %cst_230 = arith.constant dense<0.000000e+00> : vector<8x128xf32>
    %797 = tpu.matmul %791, %596, %cst_230 {dimension_numbers = #tpu.dot_dimension_numbers<[1], [0], [0], [1], [0, 0, 1, 1], [], []>} : vector<8x32xbf16>, vector<32x128xbf16>, vector<8x128xf32> -> vector<8x128xf32>
    %798 = arith.addf %796, %797 : vector<8x128xf32>
    %799 = vector.extract_strided_slice %798 {offsets = [0, 0], sizes = [8, 32], strides = [1, 1]} : vector<8x128xf32> to vector<8x32xf32>
    %800 = arith.negf %799 : vector<8x32xf32>
    %801 = math.exp %800 : vector<8x32xf32>
    %cst_231 = arith.constant 1.000000e+00 : f32
    %802 = vector.broadcast %cst_231 : f32 to vector<8x32xf32>
    %803 = arith.addf %802, %801 : vector<8x32xf32>
    %804 = arith.divf %802, %803 : vector<8x32xf32>
    %805 = vector.extract_strided_slice %798 {offsets = [0, 32], sizes = [8, 32], strides = [1, 1]} : vector<8x128xf32> to vector<8x32xf32>
    %806 = arith.negf %805 : vector<8x32xf32>
    %807 = math.exp %806 : vector<8x32xf32>
    %cst_232 = arith.constant 1.000000e+00 : f32
    %808 = vector.broadcast %cst_232 : f32 to vector<8x32xf32>
    %809 = arith.addf %808, %807 : vector<8x32xf32>
    %810 = arith.divf %808, %809 : vector<8x32xf32>
    %811 = vector.extract_strided_slice %798 {offsets = [0, 64], sizes = [8, 32], strides = [1, 1]} : vector<8x128xf32> to vector<8x32xf32>
    %812 = math.tanh %811 : vector<8x32xf32>
    %813 = vector.extract_strided_slice %798 {offsets = [0, 96], sizes = [8, 32], strides = [1, 1]} : vector<8x128xf32> to vector<8x32xf32>
    %814 = arith.negf %813 : vector<8x32xf32>
    %815 = math.exp %814 : vector<8x32xf32>
    %cst_233 = arith.constant 1.000000e+00 : f32
    %816 = vector.broadcast %cst_233 : f32 to vector<8x32xf32>
    %817 = arith.addf %816, %815 : vector<8x32xf32>
    %818 = arith.divf %816, %817 : vector<8x32xf32>
    %819 = arith.mulf %810, %788 : vector<8x32xf32>
    %820 = arith.mulf %804, %812 : vector<8x32xf32>
    %821 = arith.addf %819, %820 : vector<8x32xf32>
    %822 = math.tanh %821 : vector<8x32xf32>
    %823 = arith.mulf %818, %822 : vector<8x32xf32>
    %824 = arith.truncf %823 : vector<8x32xf32> to vector<8x32xbf16>
    %cst_234 = arith.constant dense<0.000000e+00> : vector<8x128xf32>
    %825 = tpu.matmul %824, %594, %cst_234 {dimension_numbers = #tpu.dot_dimension_numbers<[1], [0], [0], [1], [0, 0, 1, 1], [], []>} : vector<8x32xbf16>, vector<32x128xbf16>, vector<8x128xf32> -> vector<8x128xf32>
    %826 = vector.broadcast %595 : vector<1x128xf32> to vector<8x128xf32>
    %827 = arith.addf %825, %826 : vector<8x128xf32>
    %c48_235 = arith.constant 48 : index
    %c0_236 = arith.constant 0 : index
    %828 = vector.load %arg7[%c48_235, %c0_236] : memref<64x128xf32, #tpu.memory_space<vmem>>, vector<8x128xf32>
    tpu.vector_store %arg7[%c48_235, %c0_236], %827 {strides = array<i32>} : memref<64x128xf32, #tpu.memory_space<vmem>>, vector<8x128xf32>,
    %c56_237 = arith.constant 56 : index
    %c0_238 = arith.constant 0 : index
    %829 = vector.load %arg6[%c56_237, %c0_238] : memref<64x128xf32, #tpu.memory_space<vmem>>, vector<8x128xf32>
    %cst_239 = arith.constant dense<0.000000e+00> : vector<8x128xf32>
    %830 = tpu.matmul %824, %596, %cst_239 {dimension_numbers = #tpu.dot_dimension_numbers<[1], [0], [0], [1], [0, 0, 1, 1], [], []>} : vector<8x32xbf16>, vector<32x128xbf16>, vector<8x128xf32> -> vector<8x128xf32>
    %831 = arith.addf %829, %830 : vector<8x128xf32>
    %832 = vector.extract_strided_slice %831 {offsets = [0, 0], sizes = [8, 32], strides = [1, 1]} : vector<8x128xf32> to vector<8x32xf32>
    %833 = arith.negf %832 : vector<8x32xf32>
    %834 = math.exp %833 : vector<8x32xf32>
    %cst_240 = arith.constant 1.000000e+00 : f32
    %835 = vector.broadcast %cst_240 : f32 to vector<8x32xf32>
    %836 = arith.addf %835, %834 : vector<8x32xf32>
    %837 = arith.divf %835, %836 : vector<8x32xf32>
    %838 = vector.extract_strided_slice %831 {offsets = [0, 32], sizes = [8, 32], strides = [1, 1]} : vector<8x128xf32> to vector<8x32xf32>
    %839 = arith.negf %838 : vector<8x32xf32>
    %840 = math.exp %839 : vector<8x32xf32>
    %cst_241 = arith.constant 1.000000e+00 : f32
    %841 = vector.broadcast %cst_241 : f32 to vector<8x32xf32>
    %842 = arith.addf %841, %840 : vector<8x32xf32>
    %843 = arith.divf %841, %842 : vector<8x32xf32>
    %844 = vector.extract_strided_slice %831 {offsets = [0, 64], sizes = [8, 32], strides = [1, 1]} : vector<8x128xf32> to vector<8x32xf32>
    %845 = math.tanh %844 : vector<8x32xf32>
    %846 = vector.extract_strided_slice %831 {offsets = [0, 96], sizes = [8, 32], strides = [1, 1]} : vector<8x128xf32> to vector<8x32xf32>
    %847 = arith.negf %846 : vector<8x32xf32>
    %848 = math.exp %847 : vector<8x32xf32>
    %cst_242 = arith.constant 1.000000e+00 : f32
    %849 = vector.broadcast %cst_242 : f32 to vector<8x32xf32>
    %850 = arith.addf %849, %848 : vector<8x32xf32>
    %851 = arith.divf %849, %850 : vector<8x32xf32>
    %852 = arith.mulf %843, %821 : vector<8x32xf32>
    %853 = arith.mulf %837, %845 : vector<8x32xf32>
    %854 = arith.addf %852, %853 : vector<8x32xf32>
    %855 = math.tanh %854 : vector<8x32xf32>
    %856 = arith.mulf %851, %855 : vector<8x32xf32>
    %857 = arith.truncf %856 : vector<8x32xf32> to vector<8x32xbf16>
    %cst_243 = arith.constant dense<0.000000e+00> : vector<8x128xf32>
    %858 = tpu.matmul %857, %594, %cst_243 {dimension_numbers = #tpu.dot_dimension_numbers<[1], [0], [0], [1], [0, 0, 1, 1], [], []>} : vector<8x32xbf16>, vector<32x128xbf16>, vector<8x128xf32> -> vector<8x128xf32>
    %859 = vector.broadcast %595 : vector<1x128xf32> to vector<8x128xf32>
    %860 = arith.addf %858, %859 : vector<8x128xf32>
    %c56_244 = arith.constant 56 : index
    %c0_245 = arith.constant 0 : index
    %861 = vector.load %arg7[%c56_244, %c0_245] : memref<64x128xf32, #tpu.memory_space<vmem>>, vector<8x128xf32>
    tpu.vector_store %arg7[%c56_244, %c0_245], %860 {strides = array<i32>} : memref<64x128xf32, #tpu.memory_space<vmem>>, vector<8x128xf32>,
    %c384 = arith.constant 384 : index
    %c0_246 = arith.constant 0 : index
    %862 = vector.load %arg2[%c384, %c0_246] : memref<480x128xbf16, #tpu.memory_space<vmem>>, vector<32x128xbf16>
    %c8_247 = arith.constant 8 : index
    %c0_248 = arith.constant 0 : index
    %863 = vector.load %arg3[%c8_247, %c0_248] : memref<10x128xf32, #tpu.memory_space<vmem>>, vector<1x128xf32>
    %c352 = arith.constant 352 : index
    %c0_249 = arith.constant 0 : index
    %864 = vector.load %arg2[%c352, %c0_249] : memref<480x128xbf16, #tpu.memory_space<vmem>>, vector<32x128xbf16>
    %865 = arith.truncf %544 : vector<8x32xf32> to vector<8x32xbf16>
    %c0_250 = arith.constant 0 : index
    %c0_251 = arith.constant 0 : index
    %866 = vector.load %arg7[%c0_250, %c0_251] : memref<64x128xf32, #tpu.memory_space<vmem>>, vector<8x128xf32>
    %cst_252 = arith.constant dense<0.000000e+00> : vector<8x128xf32>
    %867 = tpu.matmul %865, %864, %cst_252 {dimension_numbers = #tpu.dot_dimension_numbers<[1], [0], [0], [1], [0, 0, 1, 1], [], []>} : vector<8x32xbf16>, vector<32x128xbf16>, vector<8x128xf32> -> vector<8x128xf32>
    %868 = arith.addf %866, %867 : vector<8x128xf32>
    %869 = vector.extract_strided_slice %868 {offsets = [0, 0], sizes = [8, 32], strides = [1, 1]} : vector<8x128xf32> to vector<8x32xf32>
    %870 = arith.negf %869 : vector<8x32xf32>
    %871 = math.exp %870 : vector<8x32xf32>
    %cst_253 = arith.constant 1.000000e+00 : f32
    %872 = vector.broadcast %cst_253 : f32 to vector<8x32xf32>
    %873 = arith.addf %872, %871 : vector<8x32xf32>
    %874 = arith.divf %872, %873 : vector<8x32xf32>
    %875 = vector.extract_strided_slice %868 {offsets = [0, 32], sizes = [8, 32], strides = [1, 1]} : vector<8x128xf32> to vector<8x32xf32>
    %876 = arith.negf %875 : vector<8x32xf32>
    %877 = math.exp %876 : vector<8x32xf32>
    %cst_254 = arith.constant 1.000000e+00 : f32
    %878 = vector.broadcast %cst_254 : f32 to vector<8x32xf32>
    %879 = arith.addf %878, %877 : vector<8x32xf32>
    %880 = arith.divf %878, %879 : vector<8x32xf32>
    %881 = vector.extract_strided_slice %868 {offsets = [0, 64], sizes = [8, 32], strides = [1, 1]} : vector<8x128xf32> to vector<8x32xf32>
    %882 = math.tanh %881 : vector<8x32xf32>
    %883 = vector.extract_strided_slice %868 {offsets = [0, 96], sizes = [8, 32], strides = [1, 1]} : vector<8x128xf32> to vector<8x32xf32>
    %884 = arith.negf %883 : vector<8x32xf32>
    %885 = math.exp %884 : vector<8x32xf32>
    %cst_255 = arith.constant 1.000000e+00 : f32
    %886 = vector.broadcast %cst_255 : f32 to vector<8x32xf32>
    %887 = arith.addf %886, %885 : vector<8x32xf32>
    %888 = arith.divf %886, %887 : vector<8x32xf32>
    %889 = arith.mulf %880, %544 : vector<8x32xf32>
    %890 = arith.mulf %874, %882 : vector<8x32xf32>
    %891 = arith.addf %889, %890 : vector<8x32xf32>
    %892 = math.tanh %891 : vector<8x32xf32>
    %893 = arith.mulf %888, %892 : vector<8x32xf32>
    %894 = arith.truncf %893 : vector<8x32xf32> to vector<8x32xbf16>
    %cst_256 = arith.constant dense<0.000000e+00> : vector<8x128xf32>
    %895 = tpu.matmul %894, %862, %cst_256 {dimension_numbers = #tpu.dot_dimension_numbers<[1], [0], [0], [1], [0, 0, 1, 1], [], []>} : vector<8x32xbf16>, vector<32x128xbf16>, vector<8x128xf32> -> vector<8x128xf32>
    %896 = vector.broadcast %863 : vector<1x128xf32> to vector<8x128xf32>
    %897 = arith.addf %895, %896 : vector<8x128xf32>
    %c0_257 = arith.constant 0 : index
    %c0_258 = arith.constant 0 : index
    %898 = vector.load %arg6[%c0_257, %c0_258] : memref<64x128xf32, #tpu.memory_space<vmem>>, vector<8x128xf32>
    tpu.vector_store %arg6[%c0_257, %c0_258], %897 {strides = array<i32>} : memref<64x128xf32, #tpu.memory_space<vmem>>, vector<8x128xf32>,
    %c8_259 = arith.constant 8 : index
    %c0_260 = arith.constant 0 : index
    %899 = vector.load %arg7[%c8_259, %c0_260] : memref<64x128xf32, #tpu.memory_space<vmem>>, vector<8x128xf32>
    %cst_261 = arith.constant dense<0.000000e+00> : vector<8x128xf32>
    %900 = tpu.matmul %894, %864, %cst_261 {dimension_numbers = #tpu.dot_dimension_numbers<[1], [0], [0], [1], [0, 0, 1, 1], [], []>} : vector<8x32xbf16>, vector<32x128xbf16>, vector<8x128xf32> -> vector<8x128xf32>
    %901 = arith.addf %899, %900 : vector<8x128xf32>
    %902 = vector.extract_strided_slice %901 {offsets = [0, 0], sizes = [8, 32], strides = [1, 1]} : vector<8x128xf32> to vector<8x32xf32>
    %903 = arith.negf %902 : vector<8x32xf32>
    %904 = math.exp %903 : vector<8x32xf32>
    %cst_262 = arith.constant 1.000000e+00 : f32
    %905 = vector.broadcast %cst_262 : f32 to vector<8x32xf32>
    %906 = arith.addf %905, %904 : vector<8x32xf32>
    %907 = arith.divf %905, %906 : vector<8x32xf32>
    %908 = vector.extract_strided_slice %901 {offsets = [0, 32], sizes = [8, 32], strides = [1, 1]} : vector<8x128xf32> to vector<8x32xf32>
    %909 = arith.negf %908 : vector<8x32xf32>
    %910 = math.exp %909 : vector<8x32xf32>
    %cst_263 = arith.constant 1.000000e+00 : f32
    %911 = vector.broadcast %cst_263 : f32 to vector<8x32xf32>
    %912 = arith.addf %911, %910 : vector<8x32xf32>
    %913 = arith.divf %911, %912 : vector<8x32xf32>
    %914 = vector.extract_strided_slice %901 {offsets = [0, 64], sizes = [8, 32], strides = [1, 1]} : vector<8x128xf32> to vector<8x32xf32>
    %915 = math.tanh %914 : vector<8x32xf32>
    %916 = vector.extract_strided_slice %901 {offsets = [0, 96], sizes = [8, 32], strides = [1, 1]} : vector<8x128xf32> to vector<8x32xf32>
    %917 = arith.negf %916 : vector<8x32xf32>
    %918 = math.exp %917 : vector<8x32xf32>
    %cst_264 = arith.constant 1.000000e+00 : f32
    %919 = vector.broadcast %cst_264 : f32 to vector<8x32xf32>
    %920 = arith.addf %919, %918 : vector<8x32xf32>
    %921 = arith.divf %919, %920 : vector<8x32xf32>
    %922 = arith.mulf %913, %891 : vector<8x32xf32>
    %923 = arith.mulf %907, %915 : vector<8x32xf32>
    %924 = arith.addf %922, %923 : vector<8x32xf32>
    %925 = math.tanh %924 : vector<8x32xf32>
    %926 = arith.mulf %921, %925 : vector<8x32xf32>
    %927 = arith.truncf %926 : vector<8x32xf32> to vector<8x32xbf16>
    %cst_265 = arith.constant dense<0.000000e+00> : vector<8x128xf32>
    %928 = tpu.matmul %927, %862, %cst_265 {dimension_numbers = #tpu.dot_dimension_numbers<[1], [0], [0], [1], [0, 0, 1, 1], [], []>} : vector<8x32xbf16>, vector<32x128xbf16>, vector<8x128xf32> -> vector<8x128xf32>
    %929 = vector.broadcast %863 : vector<1x128xf32> to vector<8x128xf32>
    %930 = arith.addf %928, %929 : vector<8x128xf32>
    %c8_266 = arith.constant 8 : index
    %c0_267 = arith.constant 0 : index
    %931 = vector.load %arg6[%c8_266, %c0_267] : memref<64x128xf32, #tpu.memory_space<vmem>>, vector<8x128xf32>
    tpu.vector_store %arg6[%c8_266, %c0_267], %930 {strides = array<i32>} : memref<64x128xf32, #tpu.memory_space<vmem>>, vector<8x128xf32>,
    %c16_268 = arith.constant 16 : index
    %c0_269 = arith.constant 0 : index
    %932 = vector.load %arg7[%c16_268, %c0_269] : memref<64x128xf32, #tpu.memory_space<vmem>>, vector<8x128xf32>
    %cst_270 = arith.constant dense<0.000000e+00> : vector<8x128xf32>
    %933 = tpu.matmul %927, %864, %cst_270 {dimension_numbers = #tpu.dot_dimension_numbers<[1], [0], [0], [1], [0, 0, 1, 1], [], []>} : vector<8x32xbf16>, vector<32x128xbf16>, vector<8x128xf32> -> vector<8x128xf32>
    %934 = arith.addf %932, %933 : vector<8x128xf32>
    %935 = vector.extract_strided_slice %934 {offsets = [0, 0], sizes = [8, 32], strides = [1, 1]} : vector<8x128xf32> to vector<8x32xf32>
    %936 = arith.negf %935 : vector<8x32xf32>
    %937 = math.exp %936 : vector<8x32xf32>
    %cst_271 = arith.constant 1.000000e+00 : f32
    %938 = vector.broadcast %cst_271 : f32 to vector<8x32xf32>
    %939 = arith.addf %938, %937 : vector<8x32xf32>
    %940 = arith.divf %938, %939 : vector<8x32xf32>
    %941 = vector.extract_strided_slice %934 {offsets = [0, 32], sizes = [8, 32], strides = [1, 1]} : vector<8x128xf32> to vector<8x32xf32>
    %942 = arith.negf %941 : vector<8x32xf32>
    %943 = math.exp %942 : vector<8x32xf32>
    %cst_272 = arith.constant 1.000000e+00 : f32
    %944 = vector.broadcast %cst_272 : f32 to vector<8x32xf32>
    %945 = arith.addf %944, %943 : vector<8x32xf32>
    %946 = arith.divf %944, %945 : vector<8x32xf32>
    %947 = vector.extract_strided_slice %934 {offsets = [0, 64], sizes = [8, 32], strides = [1, 1]} : vector<8x128xf32> to vector<8x32xf32>
    %948 = math.tanh %947 : vector<8x32xf32>
    %949 = vector.extract_strided_slice %934 {offsets = [0, 96], sizes = [8, 32], strides = [1, 1]} : vector<8x128xf32> to vector<8x32xf32>
    %950 = arith.negf %949 : vector<8x32xf32>
    %951 = math.exp %950 : vector<8x32xf32>
    %cst_273 = arith.constant 1.000000e+00 : f32
    %952 = vector.broadcast %cst_273 : f32 to vector<8x32xf32>
    %953 = arith.addf %952, %951 : vector<8x32xf32>
    %954 = arith.divf %952, %953 : vector<8x32xf32>
    %955 = arith.mulf %946, %924 : vector<8x32xf32>
    %956 = arith.mulf %940, %948 : vector<8x32xf32>
    %957 = arith.addf %955, %956 : vector<8x32xf32>
    %958 = math.tanh %957 : vector<8x32xf32>
    %959 = arith.mulf %954, %958 : vector<8x32xf32>
    %960 = arith.truncf %959 : vector<8x32xf32> to vector<8x32xbf16>
    %cst_274 = arith.constant dense<0.000000e+00> : vector<8x128xf32>
    %961 = tpu.matmul %960, %862, %cst_274 {dimension_numbers = #tpu.dot_dimension_numbers<[1], [0], [0], [1], [0, 0, 1, 1], [], []>} : vector<8x32xbf16>, vector<32x128xbf16>, vector<8x128xf32> -> vector<8x128xf32>
    %962 = vector.broadcast %863 : vector<1x128xf32> to vector<8x128xf32>
    %963 = arith.addf %961, %962 : vector<8x128xf32>
    %c16_275 = arith.constant 16 : index
    %c0_276 = arith.constant 0 : index
    %964 = vector.load %arg6[%c16_275, %c0_276] : memref<64x128xf32, #tpu.memory_space<vmem>>, vector<8x128xf32>
    tpu.vector_store %arg6[%c16_275, %c0_276], %963 {strides = array<i32>} : memref<64x128xf32, #tpu.memory_space<vmem>>, vector<8x128xf32>,
    %c24_277 = arith.constant 24 : index
    %c0_278 = arith.constant 0 : index
    %965 = vector.load %arg7[%c24_277, %c0_278] : memref<64x128xf32, #tpu.memory_space<vmem>>, vector<8x128xf32>
    %cst_279 = arith.constant dense<0.000000e+00> : vector<8x128xf32>
    %966 = tpu.matmul %960, %864, %cst_279 {dimension_numbers = #tpu.dot_dimension_numbers<[1], [0], [0], [1], [0, 0, 1, 1], [], []>} : vector<8x32xbf16>, vector<32x128xbf16>, vector<8x128xf32> -> vector<8x128xf32>
    %967 = arith.addf %965, %966 : vector<8x128xf32>
    %968 = vector.extract_strided_slice %967 {offsets = [0, 0], sizes = [8, 32], strides = [1, 1]} : vector<8x128xf32> to vector<8x32xf32>
    %969 = arith.negf %968 : vector<8x32xf32>
    %970 = math.exp %969 : vector<8x32xf32>
    %cst_280 = arith.constant 1.000000e+00 : f32
    %971 = vector.broadcast %cst_280 : f32 to vector<8x32xf32>
    %972 = arith.addf %971, %970 : vector<8x32xf32>
    %973 = arith.divf %971, %972 : vector<8x32xf32>
    %974 = vector.extract_strided_slice %967 {offsets = [0, 32], sizes = [8, 32], strides = [1, 1]} : vector<8x128xf32> to vector<8x32xf32>
    %975 = arith.negf %974 : vector<8x32xf32>
    %976 = math.exp %975 : vector<8x32xf32>
    %cst_281 = arith.constant 1.000000e+00 : f32
    %977 = vector.broadcast %cst_281 : f32 to vector<8x32xf32>
    %978 = arith.addf %977, %976 : vector<8x32xf32>
    %979 = arith.divf %977, %978 : vector<8x32xf32>
    %980 = vector.extract_strided_slice %967 {offsets = [0, 64], sizes = [8, 32], strides = [1, 1]} : vector<8x128xf32> to vector<8x32xf32>
    %981 = math.tanh %980 : vector<8x32xf32>
    %982 = vector.extract_strided_slice %967 {offsets = [0, 96], sizes = [8, 32], strides = [1, 1]} : vector<8x128xf32> to vector<8x32xf32>
    %983 = arith.negf %982 : vector<8x32xf32>
    %984 = math.exp %983 : vector<8x32xf32>
    %cst_282 = arith.constant 1.000000e+00 : f32
    %985 = vector.broadcast %cst_282 : f32 to vector<8x32xf32>
    %986 = arith.addf %985, %984 : vector<8x32xf32>
    %987 = arith.divf %985, %986 : vector<8x32xf32>
    %988 = arith.mulf %979, %957 : vector<8x32xf32>
    %989 = arith.mulf %973, %981 : vector<8x32xf32>
    %990 = arith.addf %988, %989 : vector<8x32xf32>
    %991 = math.tanh %990 : vector<8x32xf32>
    %992 = arith.mulf %987, %991 : vector<8x32xf32>
    %993 = arith.truncf %992 : vector<8x32xf32> to vector<8x32xbf16>
    %cst_283 = arith.constant dense<0.000000e+00> : vector<8x128xf32>
    %994 = tpu.matmul %993, %862, %cst_283 {dimension_numbers = #tpu.dot_dimension_numbers<[1], [0], [0], [1], [0, 0, 1, 1], [], []>} : vector<8x32xbf16>, vector<32x128xbf16>, vector<8x128xf32> -> vector<8x128xf32>
    %995 = vector.broadcast %863 : vector<1x128xf32> to vector<8x128xf32>
    %996 = arith.addf %994, %995 : vector<8x128xf32>
    %c24_284 = arith.constant 24 : index
    %c0_285 = arith.constant 0 : index
    %997 = vector.load %arg6[%c24_284, %c0_285] : memref<64x128xf32, #tpu.memory_space<vmem>>, vector<8x128xf32>
    tpu.vector_store %arg6[%c24_284, %c0_285], %996 {strides = array<i32>} : memref<64x128xf32, #tpu.memory_space<vmem>>, vector<8x128xf32>,
    %c32_286 = arith.constant 32 : index
    %c0_287 = arith.constant 0 : index
    %998 = vector.load %arg7[%c32_286, %c0_287] : memref<64x128xf32, #tpu.memory_space<vmem>>, vector<8x128xf32>
    %cst_288 = arith.constant dense<0.000000e+00> : vector<8x128xf32>
    %999 = tpu.matmul %993, %864, %cst_288 {dimension_numbers = #tpu.dot_dimension_numbers<[1], [0], [0], [1], [0, 0, 1, 1], [], []>} : vector<8x32xbf16>, vector<32x128xbf16>, vector<8x128xf32> -> vector<8x128xf32>
    %1000 = arith.addf %998, %999 : vector<8x128xf32>
    %1001 = vector.extract_strided_slice %1000 {offsets = [0, 0], sizes = [8, 32], strides = [1, 1]} : vector<8x128xf32> to vector<8x32xf32>
    %1002 = arith.negf %1001 : vector<8x32xf32>
    %1003 = math.exp %1002 : vector<8x32xf32>
    %cst_289 = arith.constant 1.000000e+00 : f32
    %1004 = vector.broadcast %cst_289 : f32 to vector<8x32xf32>
    %1005 = arith.addf %1004, %1003 : vector<8x32xf32>
    %1006 = arith.divf %1004, %1005 : vector<8x32xf32>
    %1007 = vector.extract_strided_slice %1000 {offsets = [0, 32], sizes = [8, 32], strides = [1, 1]} : vector<8x128xf32> to vector<8x32xf32>
    %1008 = arith.negf %1007 : vector<8x32xf32>
    %1009 = math.exp %1008 : vector<8x32xf32>
    %cst_290 = arith.constant 1.000000e+00 : f32
    %1010 = vector.broadcast %cst_290 : f32 to vector<8x32xf32>
    %1011 = arith.addf %1010, %1009 : vector<8x32xf32>
    %1012 = arith.divf %1010, %1011 : vector<8x32xf32>
    %1013 = vector.extract_strided_slice %1000 {offsets = [0, 64], sizes = [8, 32], strides = [1, 1]} : vector<8x128xf32> to vector<8x32xf32>
    %1014 = math.tanh %1013 : vector<8x32xf32>
    %1015 = vector.extract_strided_slice %1000 {offsets = [0, 96], sizes = [8, 32], strides = [1, 1]} : vector<8x128xf32> to vector<8x32xf32>
    %1016 = arith.negf %1015 : vector<8x32xf32>
    %1017 = math.exp %1016 : vector<8x32xf32>
    %cst_291 = arith.constant 1.000000e+00 : f32
    %1018 = vector.broadcast %cst_291 : f32 to vector<8x32xf32>
    %1019 = arith.addf %1018, %1017 : vector<8x32xf32>
    %1020 = arith.divf %1018, %1019 : vector<8x32xf32>
    %1021 = arith.mulf %1012, %990 : vector<8x32xf32>
    %1022 = arith.mulf %1006, %1014 : vector<8x32xf32>
    %1023 = arith.addf %1021, %1022 : vector<8x32xf32>
    %1024 = math.tanh %1023 : vector<8x32xf32>
    %1025 = arith.mulf %1020, %1024 : vector<8x32xf32>
    %1026 = arith.truncf %1025 : vector<8x32xf32> to vector<8x32xbf16>
    %cst_292 = arith.constant dense<0.000000e+00> : vector<8x128xf32>
    %1027 = tpu.matmul %1026, %862, %cst_292 {dimension_numbers = #tpu.dot_dimension_numbers<[1], [0], [0], [1], [0, 0, 1, 1], [], []>} : vector<8x32xbf16>, vector<32x128xbf16>, vector<8x128xf32> -> vector<8x128xf32>
    %1028 = vector.broadcast %863 : vector<1x128xf32> to vector<8x128xf32>
    %1029 = arith.addf %1027, %1028 : vector<8x128xf32>
    %c32_293 = arith.constant 32 : index
    %c0_294 = arith.constant 0 : index
    %1030 = vector.load %arg6[%c32_293, %c0_294] : memref<64x128xf32, #tpu.memory_space<vmem>>, vector<8x128xf32>
    tpu.vector_store %arg6[%c32_293, %c0_294], %1029 {strides = array<i32>} : memref<64x128xf32, #tpu.memory_space<vmem>>, vector<8x128xf32>,
    %c40_295 = arith.constant 40 : index
    %c0_296 = arith.constant 0 : index
    %1031 = vector.load %arg7[%c40_295, %c0_296] : memref<64x128xf32, #tpu.memory_space<vmem>>, vector<8x128xf32>
    %cst_297 = arith.constant dense<0.000000e+00> : vector<8x128xf32>
    %1032 = tpu.matmul %1026, %864, %cst_297 {dimension_numbers = #tpu.dot_dimension_numbers<[1], [0], [0], [1], [0, 0, 1, 1], [], []>} : vector<8x32xbf16>, vector<32x128xbf16>, vector<8x128xf32> -> vector<8x128xf32>
    %1033 = arith.addf %1031, %1032 : vector<8x128xf32>
    %1034 = vector.extract_strided_slice %1033 {offsets = [0, 0], sizes = [8, 32], strides = [1, 1]} : vector<8x128xf32> to vector<8x32xf32>
    %1035 = arith.negf %1034 : vector<8x32xf32>
    %1036 = math.exp %1035 : vector<8x32xf32>
    %cst_298 = arith.constant 1.000000e+00 : f32
    %1037 = vector.broadcast %cst_298 : f32 to vector<8x32xf32>
    %1038 = arith.addf %1037, %1036 : vector<8x32xf32>
    %1039 = arith.divf %1037, %1038 : vector<8x32xf32>
    %1040 = vector.extract_strided_slice %1033 {offsets = [0, 32], sizes = [8, 32], strides = [1, 1]} : vector<8x128xf32> to vector<8x32xf32>
    %1041 = arith.negf %1040 : vector<8x32xf32>
    %1042 = math.exp %1041 : vector<8x32xf32>
    %cst_299 = arith.constant 1.000000e+00 : f32
    %1043 = vector.broadcast %cst_299 : f32 to vector<8x32xf32>
    %1044 = arith.addf %1043, %1042 : vector<8x32xf32>
    %1045 = arith.divf %1043, %1044 : vector<8x32xf32>
    %1046 = vector.extract_strided_slice %1033 {offsets = [0, 64], sizes = [8, 32], strides = [1, 1]} : vector<8x128xf32> to vector<8x32xf32>
    %1047 = math.tanh %1046 : vector<8x32xf32>
    %1048 = vector.extract_strided_slice %1033 {offsets = [0, 96], sizes = [8, 32], strides = [1, 1]} : vector<8x128xf32> to vector<8x32xf32>
    %1049 = arith.negf %1048 : vector<8x32xf32>
    %1050 = math.exp %1049 : vector<8x32xf32>
    %cst_300 = arith.constant 1.000000e+00 : f32
    %1051 = vector.broadcast %cst_300 : f32 to vector<8x32xf32>
    %1052 = arith.addf %1051, %1050 : vector<8x32xf32>
    %1053 = arith.divf %1051, %1052 : vector<8x32xf32>
    %1054 = arith.mulf %1045, %1023 : vector<8x32xf32>
    %1055 = arith.mulf %1039, %1047 : vector<8x32xf32>
    %1056 = arith.addf %1054, %1055 : vector<8x32xf32>
    %1057 = math.tanh %1056 : vector<8x32xf32>
    %1058 = arith.mulf %1053, %1057 : vector<8x32xf32>
    %1059 = arith.truncf %1058 : vector<8x32xf32> to vector<8x32xbf16>
    %cst_301 = arith.constant dense<0.000000e+00> : vector<8x128xf32>
    %1060 = tpu.matmul %1059, %862, %cst_301 {dimension_numbers = #tpu.dot_dimension_numbers<[1], [0], [0], [1], [0, 0, 1, 1], [], []>} : vector<8x32xbf16>, vector<32x128xbf16>, vector<8x128xf32> -> vector<8x128xf32>
    %1061 = vector.broadcast %863 : vector<1x128xf32> to vector<8x128xf32>
    %1062 = arith.addf %1060, %1061 : vector<8x128xf32>
    %c40_302 = arith.constant 40 : index
    %c0_303 = arith.constant 0 : index
    %1063 = vector.load %arg6[%c40_302, %c0_303] : memref<64x128xf32, #tpu.memory_space<vmem>>, vector<8x128xf32>
    tpu.vector_store %arg6[%c40_302, %c0_303], %1062 {strides = array<i32>} : memref<64x128xf32, #tpu.memory_space<vmem>>, vector<8x128xf32>,
    %c48_304 = arith.constant 48 : index
    %c0_305 = arith.constant 0 : index
    %1064 = vector.load %arg7[%c48_304, %c0_305] : memref<64x128xf32, #tpu.memory_space<vmem>>, vector<8x128xf32>
    %cst_306 = arith.constant dense<0.000000e+00> : vector<8x128xf32>
    %1065 = tpu.matmul %1059, %864, %cst_306 {dimension_numbers = #tpu.dot_dimension_numbers<[1], [0], [0], [1], [0, 0, 1, 1], [], []>} : vector<8x32xbf16>, vector<32x128xbf16>, vector<8x128xf32> -> vector<8x128xf32>
    %1066 = arith.addf %1064, %1065 : vector<8x128xf32>
    %1067 = vector.extract_strided_slice %1066 {offsets = [0, 0], sizes = [8, 32], strides = [1, 1]} : vector<8x128xf32> to vector<8x32xf32>
    %1068 = arith.negf %1067 : vector<8x32xf32>
    %1069 = math.exp %1068 : vector<8x32xf32>
    %cst_307 = arith.constant 1.000000e+00 : f32
    %1070 = vector.broadcast %cst_307 : f32 to vector<8x32xf32>
    %1071 = arith.addf %1070, %1069 : vector<8x32xf32>
    %1072 = arith.divf %1070, %1071 : vector<8x32xf32>
    %1073 = vector.extract_strided_slice %1066 {offsets = [0, 32], sizes = [8, 32], strides = [1, 1]} : vector<8x128xf32> to vector<8x32xf32>
    %1074 = arith.negf %1073 : vector<8x32xf32>
    %1075 = math.exp %1074 : vector<8x32xf32>
    %cst_308 = arith.constant 1.000000e+00 : f32
    %1076 = vector.broadcast %cst_308 : f32 to vector<8x32xf32>
    %1077 = arith.addf %1076, %1075 : vector<8x32xf32>
    %1078 = arith.divf %1076, %1077 : vector<8x32xf32>
    %1079 = vector.extract_strided_slice %1066 {offsets = [0, 64], sizes = [8, 32], strides = [1, 1]} : vector<8x128xf32> to vector<8x32xf32>
    %1080 = math.tanh %1079 : vector<8x32xf32>
    %1081 = vector.extract_strided_slice %1066 {offsets = [0, 96], sizes = [8, 32], strides = [1, 1]} : vector<8x128xf32> to vector<8x32xf32>
    %1082 = arith.negf %1081 : vector<8x32xf32>
    %1083 = math.exp %1082 : vector<8x32xf32>
    %cst_309 = arith.constant 1.000000e+00 : f32
    %1084 = vector.broadcast %cst_309 : f32 to vector<8x32xf32>
    %1085 = arith.addf %1084, %1083 : vector<8x32xf32>
    %1086 = arith.divf %1084, %1085 : vector<8x32xf32>
    %1087 = arith.mulf %1078, %1056 : vector<8x32xf32>
    %1088 = arith.mulf %1072, %1080 : vector<8x32xf32>
    %1089 = arith.addf %1087, %1088 : vector<8x32xf32>
    %1090 = math.tanh %1089 : vector<8x32xf32>
    %1091 = arith.mulf %1086, %1090 : vector<8x32xf32>
    %1092 = arith.truncf %1091 : vector<8x32xf32> to vector<8x32xbf16>
    %cst_310 = arith.constant dense<0.000000e+00> : vector<8x128xf32>
    %1093 = tpu.matmul %1092, %862, %cst_310 {dimension_numbers = #tpu.dot_dimension_numbers<[1], [0], [0], [1], [0, 0, 1, 1], [], []>} : vector<8x32xbf16>, vector<32x128xbf16>, vector<8x128xf32> -> vector<8x128xf32>
    %1094 = vector.broadcast %863 : vector<1x128xf32> to vector<8x128xf32>
    %1095 = arith.addf %1093, %1094 : vector<8x128xf32>
    %c48_311 = arith.constant 48 : index
    %c0_312 = arith.constant 0 : index
    %1096 = vector.load %arg6[%c48_311, %c0_312] : memref<64x128xf32, #tpu.memory_space<vmem>>, vector<8x128xf32>
    tpu.vector_store %arg6[%c48_311, %c0_312], %1095 {strides = array<i32>} : memref<64x128xf32, #tpu.memory_space<vmem>>, vector<8x128xf32>,
    %c56_313 = arith.constant 56 : index
    %c0_314 = arith.constant 0 : index
    %1097 = vector.load %arg7[%c56_313, %c0_314] : memref<64x128xf32, #tpu.memory_space<vmem>>, vector<8x128xf32>
    %cst_315 = arith.constant dense<0.000000e+00> : vector<8x128xf32>
    %1098 = tpu.matmul %1092, %864, %cst_315 {dimension_numbers = #tpu.dot_dimension_numbers<[1], [0], [0], [1], [0, 0, 1, 1], [], []>} : vector<8x32xbf16>, vector<32x128xbf16>, vector<8x128xf32> -> vector<8x128xf32>
    %1099 = arith.addf %1097, %1098 : vector<8x128xf32>
    %1100 = vector.extract_strided_slice %1099 {offsets = [0, 0], sizes = [8, 32], strides = [1, 1]} : vector<8x128xf32> to vector<8x32xf32>
    %1101 = arith.negf %1100 : vector<8x32xf32>
    %1102 = math.exp %1101 : vector<8x32xf32>
    %cst_316 = arith.constant 1.000000e+00 : f32
    %1103 = vector.broadcast %cst_316 : f32 to vector<8x32xf32>
    %1104 = arith.addf %1103, %1102 : vector<8x32xf32>
    %1105 = arith.divf %1103, %1104 : vector<8x32xf32>
    %1106 = vector.extract_strided_slice %1099 {offsets = [0, 32], sizes = [8, 32], strides = [1, 1]} : vector<8x128xf32> to vector<8x32xf32>
    %1107 = arith.negf %1106 : vector<8x32xf32>
    %1108 = math.exp %1107 : vector<8x32xf32>
    %cst_317 = arith.constant 1.000000e+00 : f32
    %1109 = vector.broadcast %cst_317 : f32 to vector<8x32xf32>
    %1110 = arith.addf %1109, %1108 : vector<8x32xf32>
    %1111 = arith.divf %1109, %1110 : vector<8x32xf32>
    %1112 = vector.extract_strided_slice %1099 {offsets = [0, 64], sizes = [8, 32], strides = [1, 1]} : vector<8x128xf32> to vector<8x32xf32>
    %1113 = math.tanh %1112 : vector<8x32xf32>
    %1114 = vector.extract_strided_slice %1099 {offsets = [0, 96], sizes = [8, 32], strides = [1, 1]} : vector<8x128xf32> to vector<8x32xf32>
    %1115 = arith.negf %1114 : vector<8x32xf32>
    %1116 = math.exp %1115 : vector<8x32xf32>
    %cst_318 = arith.constant 1.000000e+00 : f32
    %1117 = vector.broadcast %cst_318 : f32 to vector<8x32xf32>
    %1118 = arith.addf %1117, %1116 : vector<8x32xf32>
    %1119 = arith.divf %1117, %1118 : vector<8x32xf32>
    %1120 = arith.mulf %1111, %1089 : vector<8x32xf32>
    %1121 = arith.mulf %1105, %1113 : vector<8x32xf32>
    %1122 = arith.addf %1120, %1121 : vector<8x32xf32>
    %1123 = math.tanh %1122 : vector<8x32xf32>
    %1124 = arith.mulf %1119, %1123 : vector<8x32xf32>
    %1125 = arith.truncf %1124 : vector<8x32xf32> to vector<8x32xbf16>
    %cst_319 = arith.constant dense<0.000000e+00> : vector<8x128xf32>
    %1126 = tpu.matmul %1125, %862, %cst_319 {dimension_numbers = #tpu.dot_dimension_numbers<[1], [0], [0], [1], [0, 0, 1, 1], [], []>} : vector<8x32xbf16>, vector<32x128xbf16>, vector<8x128xf32> -> vector<8x128xf32>
    %1127 = vector.broadcast %863 : vector<1x128xf32> to vector<8x128xf32>
    %1128 = arith.addf %1126, %1127 : vector<8x128xf32>
    %c56_320 = arith.constant 56 : index
    %c0_321 = arith.constant 0 : index
    %1129 = vector.load %arg6[%c56_320, %c0_321] : memref<64x128xf32, #tpu.memory_space<vmem>>, vector<8x128xf32>
    tpu.vector_store %arg6[%c56_320, %c0_321], %1128 {strides = array<i32>} : memref<64x128xf32, #tpu.memory_space<vmem>>, vector<8x128xf32>,
    %c448 = arith.constant 448 : index
    %c0_322 = arith.constant 0 : index
    %1130 = vector.load %arg2[%c448, %c0_322] : memref<480x128xbf16, #tpu.memory_space<vmem>>, vector<32x16xbf16>
    %c9 = arith.constant 9 : index
    %c0_323 = arith.constant 0 : index
    %1131 = vector.load %arg3[%c9, %c0_323] : memref<10x128xf32, #tpu.memory_space<vmem>>, vector<1x16xf32>
    %c416 = arith.constant 416 : index
    %c0_324 = arith.constant 0 : index
    %1132 = vector.load %arg2[%c416, %c0_324] : memref<480x128xbf16, #tpu.memory_space<vmem>>, vector<32x128xbf16>
    %1133 = arith.truncf %544 : vector<8x32xf32> to vector<8x32xbf16>
    %c0_325 = arith.constant 0 : index
    %c0_326 = arith.constant 0 : index
    %1134 = vector.load %arg6[%c0_325, %c0_326] : memref<64x128xf32, #tpu.memory_space<vmem>>, vector<8x128xf32>
    %cst_327 = arith.constant dense<0.000000e+00> : vector<8x128xf32>
    %1135 = tpu.matmul %1133, %1132, %cst_327 {dimension_numbers = #tpu.dot_dimension_numbers<[1], [0], [0], [1], [0, 0, 1, 1], [], []>} : vector<8x32xbf16>, vector<32x128xbf16>, vector<8x128xf32> -> vector<8x128xf32>
    %1136 = arith.addf %1134, %1135 : vector<8x128xf32>
    %1137 = vector.extract_strided_slice %1136 {offsets = [0, 0], sizes = [8, 32], strides = [1, 1]} : vector<8x128xf32> to vector<8x32xf32>
    %1138 = arith.negf %1137 : vector<8x32xf32>
    %1139 = math.exp %1138 : vector<8x32xf32>
    %cst_328 = arith.constant 1.000000e+00 : f32
    %1140 = vector.broadcast %cst_328 : f32 to vector<8x32xf32>
    %1141 = arith.addf %1140, %1139 : vector<8x32xf32>
    %1142 = arith.divf %1140, %1141 : vector<8x32xf32>
    %1143 = vector.extract_strided_slice %1136 {offsets = [0, 32], sizes = [8, 32], strides = [1, 1]} : vector<8x128xf32> to vector<8x32xf32>
    %1144 = arith.negf %1143 : vector<8x32xf32>
    %1145 = math.exp %1144 : vector<8x32xf32>
    %cst_329 = arith.constant 1.000000e+00 : f32
    %1146 = vector.broadcast %cst_329 : f32 to vector<8x32xf32>
    %1147 = arith.addf %1146, %1145 : vector<8x32xf32>
    %1148 = arith.divf %1146, %1147 : vector<8x32xf32>
    %1149 = vector.extract_strided_slice %1136 {offsets = [0, 64], sizes = [8, 32], strides = [1, 1]} : vector<8x128xf32> to vector<8x32xf32>
    %1150 = math.tanh %1149 : vector<8x32xf32>
    %1151 = vector.extract_strided_slice %1136 {offsets = [0, 96], sizes = [8, 32], strides = [1, 1]} : vector<8x128xf32> to vector<8x32xf32>
    %1152 = arith.negf %1151 : vector<8x32xf32>
    %1153 = math.exp %1152 : vector<8x32xf32>
    %cst_330 = arith.constant 1.000000e+00 : f32
    %1154 = vector.broadcast %cst_330 : f32 to vector<8x32xf32>
    %1155 = arith.addf %1154, %1153 : vector<8x32xf32>
    %1156 = arith.divf %1154, %1155 : vector<8x32xf32>
    %1157 = arith.mulf %1148, %544 : vector<8x32xf32>
    %1158 = arith.mulf %1142, %1150 : vector<8x32xf32>
    %1159 = arith.addf %1157, %1158 : vector<8x32xf32>
    %1160 = math.tanh %1159 : vector<8x32xf32>
    %1161 = arith.mulf %1156, %1160 : vector<8x32xf32>
    %1162 = arith.truncf %1161 : vector<8x32xf32> to vector<8x32xbf16>
    %cst_331 = arith.constant dense<0.000000e+00> : vector<8x16xf32>
    %1163 = tpu.matmul %1162, %1130, %cst_331 {dimension_numbers = #tpu.dot_dimension_numbers<[1], [0], [0], [1], [0, 0, 1, 1], [], []>} : vector<8x32xbf16>, vector<32x16xbf16>, vector<8x16xf32> -> vector<8x16xf32>
    %1164 = vector.broadcast %1131 : vector<1x16xf32> to vector<8x16xf32>
    %1165 = arith.addf %1163, %1164 : vector<8x16xf32>
    %c0_332 = arith.constant 0 : index
    %c0_333 = arith.constant 0 : index
    %1166 = vector.load %arg5[%c0_332, %c0_333] : memref<64x16xf32, #tpu.memory_space<vmem>>, vector<8x16xf32>
    tpu.vector_store %arg5[%c0_332, %c0_333], %1165 {strides = array<i32>} : memref<64x16xf32, #tpu.memory_space<vmem>>, vector<8x16xf32>,
    %c8_334 = arith.constant 8 : index
    %c0_335 = arith.constant 0 : index
    %1167 = vector.load %arg6[%c8_334, %c0_335] : memref<64x128xf32, #tpu.memory_space<vmem>>, vector<8x128xf32>
    %cst_336 = arith.constant dense<0.000000e+00> : vector<8x128xf32>
    %1168 = tpu.matmul %1162, %1132, %cst_336 {dimension_numbers = #tpu.dot_dimension_numbers<[1], [0], [0], [1], [0, 0, 1, 1], [], []>} : vector<8x32xbf16>, vector<32x128xbf16>, vector<8x128xf32> -> vector<8x128xf32>
    %1169 = arith.addf %1167, %1168 : vector<8x128xf32>
    %1170 = vector.extract_strided_slice %1169 {offsets = [0, 0], sizes = [8, 32], strides = [1, 1]} : vector<8x128xf32> to vector<8x32xf32>
    %1171 = arith.negf %1170 : vector<8x32xf32>
    %1172 = math.exp %1171 : vector<8x32xf32>
    %cst_337 = arith.constant 1.000000e+00 : f32
    %1173 = vector.broadcast %cst_337 : f32 to vector<8x32xf32>
    %1174 = arith.addf %1173, %1172 : vector<8x32xf32>
    %1175 = arith.divf %1173, %1174 : vector<8x32xf32>
    %1176 = vector.extract_strided_slice %1169 {offsets = [0, 32], sizes = [8, 32], strides = [1, 1]} : vector<8x128xf32> to vector<8x32xf32>
    %1177 = arith.negf %1176 : vector<8x32xf32>
    %1178 = math.exp %1177 : vector<8x32xf32>
    %cst_338 = arith.constant 1.000000e+00 : f32
    %1179 = vector.broadcast %cst_338 : f32 to vector<8x32xf32>
    %1180 = arith.addf %1179, %1178 : vector<8x32xf32>
    %1181 = arith.divf %1179, %1180 : vector<8x32xf32>
    %1182 = vector.extract_strided_slice %1169 {offsets = [0, 64], sizes = [8, 32], strides = [1, 1]} : vector<8x128xf32> to vector<8x32xf32>
    %1183 = math.tanh %1182 : vector<8x32xf32>
    %1184 = vector.extract_strided_slice %1169 {offsets = [0, 96], sizes = [8, 32], strides = [1, 1]} : vector<8x128xf32> to vector<8x32xf32>
    %1185 = arith.negf %1184 : vector<8x32xf32>
    %1186 = math.exp %1185 : vector<8x32xf32>
    %cst_339 = arith.constant 1.000000e+00 : f32
    %1187 = vector.broadcast %cst_339 : f32 to vector<8x32xf32>
    %1188 = arith.addf %1187, %1186 : vector<8x32xf32>
    %1189 = arith.divf %1187, %1188 : vector<8x32xf32>
    %1190 = arith.mulf %1181, %1159 : vector<8x32xf32>
    %1191 = arith.mulf %1175, %1183 : vector<8x32xf32>
    %1192 = arith.addf %1190, %1191 : vector<8x32xf32>
    %1193 = math.tanh %1192 : vector<8x32xf32>
    %1194 = arith.mulf %1189, %1193 : vector<8x32xf32>
    %1195 = arith.truncf %1194 : vector<8x32xf32> to vector<8x32xbf16>
    %cst_340 = arith.constant dense<0.000000e+00> : vector<8x16xf32>
    %1196 = tpu.matmul %1195, %1130, %cst_340 {dimension_numbers = #tpu.dot_dimension_numbers<[1], [0], [0], [1], [0, 0, 1, 1], [], []>} : vector<8x32xbf16>, vector<32x16xbf16>, vector<8x16xf32> -> vector<8x16xf32>
    %1197 = vector.broadcast %1131 : vector<1x16xf32> to vector<8x16xf32>
    %1198 = arith.addf %1196, %1197 : vector<8x16xf32>
    %c8_341 = arith.constant 8 : index
    %c0_342 = arith.constant 0 : index
    %1199 = vector.load %arg5[%c8_341, %c0_342] : memref<64x16xf32, #tpu.memory_space<vmem>>, vector<8x16xf32>
    tpu.vector_store %arg5[%c8_341, %c0_342], %1198 {strides = array<i32>} : memref<64x16xf32, #tpu.memory_space<vmem>>, vector<8x16xf32>,
    %c16_343 = arith.constant 16 : index
    %c0_344 = arith.constant 0 : index
    %1200 = vector.load %arg6[%c16_343, %c0_344] : memref<64x128xf32, #tpu.memory_space<vmem>>, vector<8x128xf32>
    %cst_345 = arith.constant dense<0.000000e+00> : vector<8x128xf32>
    %1201 = tpu.matmul %1195, %1132, %cst_345 {dimension_numbers = #tpu.dot_dimension_numbers<[1], [0], [0], [1], [0, 0, 1, 1], [], []>} : vector<8x32xbf16>, vector<32x128xbf16>, vector<8x128xf32> -> vector<8x128xf32>
    %1202 = arith.addf %1200, %1201 : vector<8x128xf32>
    %1203 = vector.extract_strided_slice %1202 {offsets = [0, 0], sizes = [8, 32], strides = [1, 1]} : vector<8x128xf32> to vector<8x32xf32>
    %1204 = arith.negf %1203 : vector<8x32xf32>
    %1205 = math.exp %1204 : vector<8x32xf32>
    %cst_346 = arith.constant 1.000000e+00 : f32
    %1206 = vector.broadcast %cst_346 : f32 to vector<8x32xf32>
    %1207 = arith.addf %1206, %1205 : vector<8x32xf32>
    %1208 = arith.divf %1206, %1207 : vector<8x32xf32>
    %1209 = vector.extract_strided_slice %1202 {offsets = [0, 32], sizes = [8, 32], strides = [1, 1]} : vector<8x128xf32> to vector<8x32xf32>
    %1210 = arith.negf %1209 : vector<8x32xf32>
    %1211 = math.exp %1210 : vector<8x32xf32>
    %cst_347 = arith.constant 1.000000e+00 : f32
    %1212 = vector.broadcast %cst_347 : f32 to vector<8x32xf32>
    %1213 = arith.addf %1212, %1211 : vector<8x32xf32>
    %1214 = arith.divf %1212, %1213 : vector<8x32xf32>
    %1215 = vector.extract_strided_slice %1202 {offsets = [0, 64], sizes = [8, 32], strides = [1, 1]} : vector<8x128xf32> to vector<8x32xf32>
    %1216 = math.tanh %1215 : vector<8x32xf32>
    %1217 = vector.extract_strided_slice %1202 {offsets = [0, 96], sizes = [8, 32], strides = [1, 1]} : vector<8x128xf32> to vector<8x32xf32>
    %1218 = arith.negf %1217 : vector<8x32xf32>
    %1219 = math.exp %1218 : vector<8x32xf32>
    %cst_348 = arith.constant 1.000000e+00 : f32
    %1220 = vector.broadcast %cst_348 : f32 to vector<8x32xf32>
    %1221 = arith.addf %1220, %1219 : vector<8x32xf32>
    %1222 = arith.divf %1220, %1221 : vector<8x32xf32>
    %1223 = arith.mulf %1214, %1192 : vector<8x32xf32>
    %1224 = arith.mulf %1208, %1216 : vector<8x32xf32>
    %1225 = arith.addf %1223, %1224 : vector<8x32xf32>
    %1226 = math.tanh %1225 : vector<8x32xf32>
    %1227 = arith.mulf %1222, %1226 : vector<8x32xf32>
    %1228 = arith.truncf %1227 : vector<8x32xf32> to vector<8x32xbf16>
    %cst_349 = arith.constant dense<0.000000e+00> : vector<8x16xf32>
    %1229 = tpu.matmul %1228, %1130, %cst_349 {dimension_numbers = #tpu.dot_dimension_numbers<[1], [0], [0], [1], [0, 0, 1, 1], [], []>} : vector<8x32xbf16>, vector<32x16xbf16>, vector<8x16xf32> -> vector<8x16xf32>
    %1230 = vector.broadcast %1131 : vector<1x16xf32> to vector<8x16xf32>
    %1231 = arith.addf %1229, %1230 : vector<8x16xf32>
    %c16_350 = arith.constant 16 : index
    %c0_351 = arith.constant 0 : index
    %1232 = vector.load %arg5[%c16_350, %c0_351] : memref<64x16xf32, #tpu.memory_space<vmem>>, vector<8x16xf32>
    tpu.vector_store %arg5[%c16_350, %c0_351], %1231 {strides = array<i32>} : memref<64x16xf32, #tpu.memory_space<vmem>>, vector<8x16xf32>,
    %c24_352 = arith.constant 24 : index
    %c0_353 = arith.constant 0 : index
    %1233 = vector.load %arg6[%c24_352, %c0_353] : memref<64x128xf32, #tpu.memory_space<vmem>>, vector<8x128xf32>
    %cst_354 = arith.constant dense<0.000000e+00> : vector<8x128xf32>
    %1234 = tpu.matmul %1228, %1132, %cst_354 {dimension_numbers = #tpu.dot_dimension_numbers<[1], [0], [0], [1], [0, 0, 1, 1], [], []>} : vector<8x32xbf16>, vector<32x128xbf16>, vector<8x128xf32> -> vector<8x128xf32>
    %1235 = arith.addf %1233, %1234 : vector<8x128xf32>
    %1236 = vector.extract_strided_slice %1235 {offsets = [0, 0], sizes = [8, 32], strides = [1, 1]} : vector<8x128xf32> to vector<8x32xf32>
    %1237 = arith.negf %1236 : vector<8x32xf32>
    %1238 = math.exp %1237 : vector<8x32xf32>
    %cst_355 = arith.constant 1.000000e+00 : f32
    %1239 = vector.broadcast %cst_355 : f32 to vector<8x32xf32>
    %1240 = arith.addf %1239, %1238 : vector<8x32xf32>
    %1241 = arith.divf %1239, %1240 : vector<8x32xf32>
    %1242 = vector.extract_strided_slice %1235 {offsets = [0, 32], sizes = [8, 32], strides = [1, 1]} : vector<8x128xf32> to vector<8x32xf32>
    %1243 = arith.negf %1242 : vector<8x32xf32>
    %1244 = math.exp %1243 : vector<8x32xf32>
    %cst_356 = arith.constant 1.000000e+00 : f32
    %1245 = vector.broadcast %cst_356 : f32 to vector<8x32xf32>
    %1246 = arith.addf %1245, %1244 : vector<8x32xf32>
    %1247 = arith.divf %1245, %1246 : vector<8x32xf32>
    %1248 = vector.extract_strided_slice %1235 {offsets = [0, 64], sizes = [8, 32], strides = [1, 1]} : vector<8x128xf32> to vector<8x32xf32>
    %1249 = math.tanh %1248 : vector<8x32xf32>
    %1250 = vector.extract_strided_slice %1235 {offsets = [0, 96], sizes = [8, 32], strides = [1, 1]} : vector<8x128xf32> to vector<8x32xf32>
    %1251 = arith.negf %1250 : vector<8x32xf32>
    %1252 = math.exp %1251 : vector<8x32xf32>
    %cst_357 = arith.constant 1.000000e+00 : f32
    %1253 = vector.broadcast %cst_357 : f32 to vector<8x32xf32>
    %1254 = arith.addf %1253, %1252 : vector<8x32xf32>
    %1255 = arith.divf %1253, %1254 : vector<8x32xf32>
    %1256 = arith.mulf %1247, %1225 : vector<8x32xf32>
    %1257 = arith.mulf %1241, %1249 : vector<8x32xf32>
    %1258 = arith.addf %1256, %1257 : vector<8x32xf32>
    %1259 = math.tanh %1258 : vector<8x32xf32>
    %1260 = arith.mulf %1255, %1259 : vector<8x32xf32>
    %1261 = arith.truncf %1260 : vector<8x32xf32> to vector<8x32xbf16>
    %cst_358 = arith.constant dense<0.000000e+00> : vector<8x16xf32>
    %1262 = tpu.matmul %1261, %1130, %cst_358 {dimension_numbers = #tpu.dot_dimension_numbers<[1], [0], [0], [1], [0, 0, 1, 1], [], []>} : vector<8x32xbf16>, vector<32x16xbf16>, vector<8x16xf32> -> vector<8x16xf32>
    %1263 = vector.broadcast %1131 : vector<1x16xf32> to vector<8x16xf32>
    %1264 = arith.addf %1262, %1263 : vector<8x16xf32>
    %c24_359 = arith.constant 24 : index
    %c0_360 = arith.constant 0 : index
    %1265 = vector.load %arg5[%c24_359, %c0_360] : memref<64x16xf32, #tpu.memory_space<vmem>>, vector<8x16xf32>
    tpu.vector_store %arg5[%c24_359, %c0_360], %1264 {strides = array<i32>} : memref<64x16xf32, #tpu.memory_space<vmem>>, vector<8x16xf32>,
    %c32_361 = arith.constant 32 : index
    %c0_362 = arith.constant 0 : index
    %1266 = vector.load %arg6[%c32_361, %c0_362] : memref<64x128xf32, #tpu.memory_space<vmem>>, vector<8x128xf32>
    %cst_363 = arith.constant dense<0.000000e+00> : vector<8x128xf32>
    %1267 = tpu.matmul %1261, %1132, %cst_363 {dimension_numbers = #tpu.dot_dimension_numbers<[1], [0], [0], [1], [0, 0, 1, 1], [], []>} : vector<8x32xbf16>, vector<32x128xbf16>, vector<8x128xf32> -> vector<8x128xf32>
    %1268 = arith.addf %1266, %1267 : vector<8x128xf32>
    %1269 = vector.extract_strided_slice %1268 {offsets = [0, 0], sizes = [8, 32], strides = [1, 1]} : vector<8x128xf32> to vector<8x32xf32>
    %1270 = arith.negf %1269 : vector<8x32xf32>
    %1271 = math.exp %1270 : vector<8x32xf32>
    %cst_364 = arith.constant 1.000000e+00 : f32
    %1272 = vector.broadcast %cst_364 : f32 to vector<8x32xf32>
    %1273 = arith.addf %1272, %1271 : vector<8x32xf32>
    %1274 = arith.divf %1272, %1273 : vector<8x32xf32>
    %1275 = vector.extract_strided_slice %1268 {offsets = [0, 32], sizes = [8, 32], strides = [1, 1]} : vector<8x128xf32> to vector<8x32xf32>
    %1276 = arith.negf %1275 : vector<8x32xf32>
    %1277 = math.exp %1276 : vector<8x32xf32>
    %cst_365 = arith.constant 1.000000e+00 : f32
    %1278 = vector.broadcast %cst_365 : f32 to vector<8x32xf32>
    %1279 = arith.addf %1278, %1277 : vector<8x32xf32>
    %1280 = arith.divf %1278, %1279 : vector<8x32xf32>
    %1281 = vector.extract_strided_slice %1268 {offsets = [0, 64], sizes = [8, 32], strides = [1, 1]} : vector<8x128xf32> to vector<8x32xf32>
    %1282 = math.tanh %1281 : vector<8x32xf32>
    %1283 = vector.extract_strided_slice %1268 {offsets = [0, 96], sizes = [8, 32], strides = [1, 1]} : vector<8x128xf32> to vector<8x32xf32>
    %1284 = arith.negf %1283 : vector<8x32xf32>
    %1285 = math.exp %1284 : vector<8x32xf32>
    %cst_366 = arith.constant 1.000000e+00 : f32
    %1286 = vector.broadcast %cst_366 : f32 to vector<8x32xf32>
    %1287 = arith.addf %1286, %1285 : vector<8x32xf32>
    %1288 = arith.divf %1286, %1287 : vector<8x32xf32>
    %1289 = arith.mulf %1280, %1258 : vector<8x32xf32>
    %1290 = arith.mulf %1274, %1282 : vector<8x32xf32>
    %1291 = arith.addf %1289, %1290 : vector<8x32xf32>
    %1292 = math.tanh %1291 : vector<8x32xf32>
    %1293 = arith.mulf %1288, %1292 : vector<8x32xf32>
    %1294 = arith.truncf %1293 : vector<8x32xf32> to vector<8x32xbf16>
    %cst_367 = arith.constant dense<0.000000e+00> : vector<8x16xf32>
    %1295 = tpu.matmul %1294, %1130, %cst_367 {dimension_numbers = #tpu.dot_dimension_numbers<[1], [0], [0], [1], [0, 0, 1, 1], [], []>} : vector<8x32xbf16>, vector<32x16xbf16>, vector<8x16xf32> -> vector<8x16xf32>
    %1296 = vector.broadcast %1131 : vector<1x16xf32> to vector<8x16xf32>
    %1297 = arith.addf %1295, %1296 : vector<8x16xf32>
    %c32_368 = arith.constant 32 : index
    %c0_369 = arith.constant 0 : index
    %1298 = vector.load %arg5[%c32_368, %c0_369] : memref<64x16xf32, #tpu.memory_space<vmem>>, vector<8x16xf32>
    tpu.vector_store %arg5[%c32_368, %c0_369], %1297 {strides = array<i32>} : memref<64x16xf32, #tpu.memory_space<vmem>>, vector<8x16xf32>,
    %c40_370 = arith.constant 40 : index
    %c0_371 = arith.constant 0 : index
    %1299 = vector.load %arg6[%c40_370, %c0_371] : memref<64x128xf32, #tpu.memory_space<vmem>>, vector<8x128xf32>
    %cst_372 = arith.constant dense<0.000000e+00> : vector<8x128xf32>
    %1300 = tpu.matmul %1294, %1132, %cst_372 {dimension_numbers = #tpu.dot_dimension_numbers<[1], [0], [0], [1], [0, 0, 1, 1], [], []>} : vector<8x32xbf16>, vector<32x128xbf16>, vector<8x128xf32> -> vector<8x128xf32>
    %1301 = arith.addf %1299, %1300 : vector<8x128xf32>
    %1302 = vector.extract_strided_slice %1301 {offsets = [0, 0], sizes = [8, 32], strides = [1, 1]} : vector<8x128xf32> to vector<8x32xf32>
    %1303 = arith.negf %1302 : vector<8x32xf32>
    %1304 = math.exp %1303 : vector<8x32xf32>
    %cst_373 = arith.constant 1.000000e+00 : f32
    %1305 = vector.broadcast %cst_373 : f32 to vector<8x32xf32>
    %1306 = arith.addf %1305, %1304 : vector<8x32xf32>
    %1307 = arith.divf %1305, %1306 : vector<8x32xf32>
    %1308 = vector.extract_strided_slice %1301 {offsets = [0, 32], sizes = [8, 32], strides = [1, 1]} : vector<8x128xf32> to vector<8x32xf32>
    %1309 = arith.negf %1308 : vector<8x32xf32>
    %1310 = math.exp %1309 : vector<8x32xf32>
    %cst_374 = arith.constant 1.000000e+00 : f32
    %1311 = vector.broadcast %cst_374 : f32 to vector<8x32xf32>
    %1312 = arith.addf %1311, %1310 : vector<8x32xf32>
    %1313 = arith.divf %1311, %1312 : vector<8x32xf32>
    %1314 = vector.extract_strided_slice %1301 {offsets = [0, 64], sizes = [8, 32], strides = [1, 1]} : vector<8x128xf32> to vector<8x32xf32>
    %1315 = math.tanh %1314 : vector<8x32xf32>
    %1316 = vector.extract_strided_slice %1301 {offsets = [0, 96], sizes = [8, 32], strides = [1, 1]} : vector<8x128xf32> to vector<8x32xf32>
    %1317 = arith.negf %1316 : vector<8x32xf32>
    %1318 = math.exp %1317 : vector<8x32xf32>
    %cst_375 = arith.constant 1.000000e+00 : f32
    %1319 = vector.broadcast %cst_375 : f32 to vector<8x32xf32>
    %1320 = arith.addf %1319, %1318 : vector<8x32xf32>
    %1321 = arith.divf %1319, %1320 : vector<8x32xf32>
    %1322 = arith.mulf %1313, %1291 : vector<8x32xf32>
    %1323 = arith.mulf %1307, %1315 : vector<8x32xf32>
    %1324 = arith.addf %1322, %1323 : vector<8x32xf32>
    %1325 = math.tanh %1324 : vector<8x32xf32>
    %1326 = arith.mulf %1321, %1325 : vector<8x32xf32>
    %1327 = arith.truncf %1326 : vector<8x32xf32> to vector<8x32xbf16>
    %cst_376 = arith.constant dense<0.000000e+00> : vector<8x16xf32>
    %1328 = tpu.matmul %1327, %1130, %cst_376 {dimension_numbers = #tpu.dot_dimension_numbers<[1], [0], [0], [1], [0, 0, 1, 1], [], []>} : vector<8x32xbf16>, vector<32x16xbf16>, vector<8x16xf32> -> vector<8x16xf32>
    %1329 = vector.broadcast %1131 : vector<1x16xf32> to vector<8x16xf32>
    %1330 = arith.addf %1328, %1329 : vector<8x16xf32>
    %c40_377 = arith.constant 40 : index
    %c0_378 = arith.constant 0 : index
    %1331 = vector.load %arg5[%c40_377, %c0_378] : memref<64x16xf32, #tpu.memory_space<vmem>>, vector<8x16xf32>
    tpu.vector_store %arg5[%c40_377, %c0_378], %1330 {strides = array<i32>} : memref<64x16xf32, #tpu.memory_space<vmem>>, vector<8x16xf32>,
    %c48_379 = arith.constant 48 : index
    %c0_380 = arith.constant 0 : index
    %1332 = vector.load %arg6[%c48_379, %c0_380] : memref<64x128xf32, #tpu.memory_space<vmem>>, vector<8x128xf32>
    %cst_381 = arith.constant dense<0.000000e+00> : vector<8x128xf32>
    %1333 = tpu.matmul %1327, %1132, %cst_381 {dimension_numbers = #tpu.dot_dimension_numbers<[1], [0], [0], [1], [0, 0, 1, 1], [], []>} : vector<8x32xbf16>, vector<32x128xbf16>, vector<8x128xf32> -> vector<8x128xf32>
    %1334 = arith.addf %1332, %1333 : vector<8x128xf32>
    %1335 = vector.extract_strided_slice %1334 {offsets = [0, 0], sizes = [8, 32], strides = [1, 1]} : vector<8x128xf32> to vector<8x32xf32>
    %1336 = arith.negf %1335 : vector<8x32xf32>
    %1337 = math.exp %1336 : vector<8x32xf32>
    %cst_382 = arith.constant 1.000000e+00 : f32
    %1338 = vector.broadcast %cst_382 : f32 to vector<8x32xf32>
    %1339 = arith.addf %1338, %1337 : vector<8x32xf32>
    %1340 = arith.divf %1338, %1339 : vector<8x32xf32>
    %1341 = vector.extract_strided_slice %1334 {offsets = [0, 32], sizes = [8, 32], strides = [1, 1]} : vector<8x128xf32> to vector<8x32xf32>
    %1342 = arith.negf %1341 : vector<8x32xf32>
    %1343 = math.exp %1342 : vector<8x32xf32>
    %cst_383 = arith.constant 1.000000e+00 : f32
    %1344 = vector.broadcast %cst_383 : f32 to vector<8x32xf32>
    %1345 = arith.addf %1344, %1343 : vector<8x32xf32>
    %1346 = arith.divf %1344, %1345 : vector<8x32xf32>
    %1347 = vector.extract_strided_slice %1334 {offsets = [0, 64], sizes = [8, 32], strides = [1, 1]} : vector<8x128xf32> to vector<8x32xf32>
    %1348 = math.tanh %1347 : vector<8x32xf32>
    %1349 = vector.extract_strided_slice %1334 {offsets = [0, 96], sizes = [8, 32], strides = [1, 1]} : vector<8x128xf32> to vector<8x32xf32>
    %1350 = arith.negf %1349 : vector<8x32xf32>
    %1351 = math.exp %1350 : vector<8x32xf32>
    %cst_384 = arith.constant 1.000000e+00 : f32
    %1352 = vector.broadcast %cst_384 : f32 to vector<8x32xf32>
    %1353 = arith.addf %1352, %1351 : vector<8x32xf32>
    %1354 = arith.divf %1352, %1353 : vector<8x32xf32>
    %1355 = arith.mulf %1346, %1324 : vector<8x32xf32>
    %1356 = arith.mulf %1340, %1348 : vector<8x32xf32>
    %1357 = arith.addf %1355, %1356 : vector<8x32xf32>
    %1358 = math.tanh %1357 : vector<8x32xf32>
    %1359 = arith.mulf %1354, %1358 : vector<8x32xf32>
    %1360 = arith.truncf %1359 : vector<8x32xf32> to vector<8x32xbf16>
    %cst_385 = arith.constant dense<0.000000e+00> : vector<8x16xf32>
    %1361 = tpu.matmul %1360, %1130, %cst_385 {dimension_numbers = #tpu.dot_dimension_numbers<[1], [0], [0], [1], [0, 0, 1, 1], [], []>} : vector<8x32xbf16>, vector<32x16xbf16>, vector<8x16xf32> -> vector<8x16xf32>
    %1362 = vector.broadcast %1131 : vector<1x16xf32> to vector<8x16xf32>
    %1363 = arith.addf %1361, %1362 : vector<8x16xf32>
    %c48_386 = arith.constant 48 : index
    %c0_387 = arith.constant 0 : index
    %1364 = vector.load %arg5[%c48_386, %c0_387] : memref<64x16xf32, #tpu.memory_space<vmem>>, vector<8x16xf32>
    tpu.vector_store %arg5[%c48_386, %c0_387], %1363 {strides = array<i32>} : memref<64x16xf32, #tpu.memory_space<vmem>>, vector<8x16xf32>,
    %c56_388 = arith.constant 56 : index
    %c0_389 = arith.constant 0 : index
    %1365 = vector.load %arg6[%c56_388, %c0_389] : memref<64x128xf32, #tpu.memory_space<vmem>>, vector<8x128xf32>
    %cst_390 = arith.constant dense<0.000000e+00> : vector<8x128xf32>
    %1366 = tpu.matmul %1360, %1132, %cst_390 {dimension_numbers = #tpu.dot_dimension_numbers<[1], [0], [0], [1], [0, 0, 1, 1], [], []>} : vector<8x32xbf16>, vector<32x128xbf16>, vector<8x128xf32> -> vector<8x128xf32>
    %1367 = arith.addf %1365, %1366 : vector<8x128xf32>
    %1368 = vector.extract_strided_slice %1367 {offsets = [0, 0], sizes = [8, 32], strides = [1, 1]} : vector<8x128xf32> to vector<8x32xf32>
    %1369 = arith.negf %1368 : vector<8x32xf32>
    %1370 = math.exp %1369 : vector<8x32xf32>
    %cst_391 = arith.constant 1.000000e+00 : f32
    %1371 = vector.broadcast %cst_391 : f32 to vector<8x32xf32>
    %1372 = arith.addf %1371, %1370 : vector<8x32xf32>
    %1373 = arith.divf %1371, %1372 : vector<8x32xf32>
    %1374 = vector.extract_strided_slice %1367 {offsets = [0, 32], sizes = [8, 32], strides = [1, 1]} : vector<8x128xf32> to vector<8x32xf32>
    %1375 = arith.negf %1374 : vector<8x32xf32>
    %1376 = math.exp %1375 : vector<8x32xf32>
    %cst_392 = arith.constant 1.000000e+00 : f32
    %1377 = vector.broadcast %cst_392 : f32 to vector<8x32xf32>
    %1378 = arith.addf %1377, %1376 : vector<8x32xf32>
    %1379 = arith.divf %1377, %1378 : vector<8x32xf32>
    %1380 = vector.extract_strided_slice %1367 {offsets = [0, 64], sizes = [8, 32], strides = [1, 1]} : vector<8x128xf32> to vector<8x32xf32>
    %1381 = math.tanh %1380 : vector<8x32xf32>
    %1382 = vector.extract_strided_slice %1367 {offsets = [0, 96], sizes = [8, 32], strides = [1, 1]} : vector<8x128xf32> to vector<8x32xf32>
    %1383 = arith.negf %1382 : vector<8x32xf32>
    %1384 = math.exp %1383 : vector<8x32xf32>
    %cst_393 = arith.constant 1.000000e+00 : f32
    %1385 = vector.broadcast %cst_393 : f32 to vector<8x32xf32>
    %1386 = arith.addf %1385, %1384 : vector<8x32xf32>
    %1387 = arith.divf %1385, %1386 : vector<8x32xf32>
    %1388 = arith.mulf %1379, %1357 : vector<8x32xf32>
    %1389 = arith.mulf %1373, %1381 : vector<8x32xf32>
    %1390 = arith.addf %1388, %1389 : vector<8x32xf32>
    %1391 = math.tanh %1390 : vector<8x32xf32>
    %1392 = arith.mulf %1387, %1391 : vector<8x32xf32>
    %1393 = arith.truncf %1392 : vector<8x32xf32> to vector<8x32xbf16>
    %cst_394 = arith.constant dense<0.000000e+00> : vector<8x16xf32>
    %1394 = tpu.matmul %1393, %1130, %cst_394 {dimension_numbers = #tpu.dot_dimension_numbers<[1], [0], [0], [1], [0, 0, 1, 1], [], []>} : vector<8x32xbf16>, vector<32x16xbf16>, vector<8x16xf32> -> vector<8x16xf32>
    %1395 = vector.broadcast %1131 : vector<1x16xf32> to vector<8x16xf32>
    %1396 = arith.addf %1394, %1395 : vector<8x16xf32>
    %c56_395 = arith.constant 56 : index
    %c0_396 = arith.constant 0 : index
    %1397 = vector.load %arg5[%c56_395, %c0_396] : memref<64x16xf32, #tpu.memory_space<vmem>>, vector<8x16xf32>
    tpu.vector_store %arg5[%c56_395, %c0_396], %1396 {strides = array<i32>} : memref<64x16xf32, #tpu.memory_space<vmem>>, vector<8x16xf32>,
    return
  }
}

</mosaic_0001>

<bundles_post_ra>
// kernel: cvae_forward.1
= control target key start
LH: loop header
LB: loop body
LE: loop exit
PB: predicated region body
PF: predicated region fallthrough
CT: control target
= control target key end

     0   :  { %11 = vsyncpa [#allocation5], 0  ;;  %s4062_s21 = smov [#allocation4]   ;;  %s4063_s23 = smov 64   ;;  %s4899_s0 = inlined_call_operand.vmem [shape: f32[64,20], index: 0, kind: input, shape index: {}]   ;;  %s4900_s1 = inlined_call_operand.vmem [shape: f32[8,8], index: 1, kind: input, shape index: {}]   ;;  %s4901_s2 = inlined_call_operand.hbm [shape: bf16[480,128], index: 2, kind: input, shape index: {}]   ;;  %s4902_s3 = inlined_call_operand.vmem [shape: f32[10,128], index: 3, kind: input, shape index: {}]   ;;  %s4903_s4 = inlined_call_operand.vmem [shape: f32[8,16], index: 4, kind: output, shape index: {0}]   ;;  %s4904_s5 = inlined_call_operand.vmem [shape: f32[64,16], index: 5, kind: output, shape index: {1}]  }
   0x1   :  { %s20_s20 = sshll.u32 %s4901_s2, 4  ;;  %s22_s22 = sshll.u32 %s4062_s21, 4  ;;  %s21_s20 = int_to_ptr.hbm [resolvable:$true] %s20_s20  ;;  %s23_s22 = int_to_ptr.vmem [resolvable:$true] %s22_s22 }
   0x2   :  { %s4064_s24 = smov 4  }
   0x3   :  { %28 = dma.hbm_to_vmem [thread:$0]  %s21_s20, 3840, %s23_s22, [#allocation5], %s4063_s23, %s4063_s23, %s4064_s24  }
   0x4   :  { %4060 = dma.done.wait [#allocation5], 3840  }
   0x5   :  { %4061 = vsyncadd [#allocation5], 4294963456  ;;  %v46_v0 = vld [vmem:[#allocation4 + $0x8] sm:$0x3]  ;;  %v4106_v2 = vld [vmem:[#allocation4 + $0x20] sm:$0xff]  ;;  %vm75_vm0 = vcmask 1041408  }
   0x6   :  { %v58_v1 = vunpack.c.l.b16 %v46_v0  ;;  %v4108_v3 = vld [vmem:[#allocation4 + $0x18] sm:$0xff]  ;;  %204 = vmatpush.bf16.msra.mxu2 %v4106_v2  ;;  %v3667_v6 = vld [vmem:[#allocation4] sm:$0xff]  ;;  %v37_v8 = vld [vmem:[%s4899_s0 + $0x8] sm:$0xff]  ;;  %vm62_vm1 = vcmask 162816   ;;  %v4065_v10 = vmov 0   ;;  %vm122_vm2 = vcmask 130048  }
   0x7   :  { %v36_v7 = vld [vmem:[%s4899_s0] sm:$0xff]  ;;  %v3668_v11 = vld [vmem:[#allocation4 + $0x10] sm:$0xff]  ;;  %s4066_s7 = smov 32   ;;  %v4152_v45 = vld [vmem:[#allocation4 + $0x28] sm:$0xff]  ;;  %vm194_vm7 = vcmask 261120   ;;  %s4067_s2 = smov 112  }
   0x8   :  { %v60_v4 = vpack.c.b16 %v58_v1, %v58_v1  ;;  %v4120_v9 = vpack.c.bf16 %v37_v8, %v36_v7  ;;  %142 = vmatpush.bf16.msra.mxu1 %v3668_v11  ;;  %v4133_v13 = vld [vmem:[%s4902_s3] ss:$0 sm:$0xff]  ;;  %v4143_v20 = vld [vmem:[%s4902_s3 + $0x1] ss:$0 sm:$0xff]  ;;  %v4149_v44 = vld [vmem:[#allocation4 + $0x30] sm:$0xff]  ;;  %s4068_s27 = smov 8  }
   0x9   :  { %275 = vmatpush.bf16.msra.mxu3 %v4149_v44  ;;  %s4069_s8 = smov 120  }
   0xa   :  { %v77_v5 = vsel %vm75_vm0, %v60_v4, 0  ;;  %205 = vmatpush.bf16.msra.mxu2 %v4108_v3 }
   0xb   :  { %85 = vmatpush.bf16.msra.mxu0 %v77_v5 }
   0xc   :  { %509 = vmatpush.bf16.msrb.mxu1 %v4106_v2 }
   0xd   :  { %206 = vmatmul.bf16.vlgmr.msra.gmra.mxu2 %v4065_v10  ;;  %276 = vmatpush.bf16.msra.mxu3 %v4152_v45 }
   0xe   :  { %290 = vmatpush.bf16.msrb.mxu2 %v4106_v2 }
   0xf   :  { %86 = vmatpush.bf16.msra.mxu0 %v3667_v6 }
  0x10   :  { %510 = vmatpush.bf16.msrb.mxu1 %v4108_v3 }
  0x11   :  { %348 = vmatpush.bf16.msrb.mxu3 %v4149_v44 }
  0x12   :  { %291 = vmatpush.bf16.msrb.mxu2 %v4108_v3  ;;  %3442 = vmatmul.msk.bf16.vlgmr.msra.gmra.mxu0 %vm62_vm1, %v4120_v9 }
  0x13   :  { %567 = vmatpush.bf16.msrb.mxu0 %v4149_v44 }
  0x15   :  { %349 = vmatpush.bf16.msrb.mxu3 %v4152_v45 }
  0x16   :  { %363 = vmatpush.bf16.msra.mxu2 %v4106_v2 }
  0x17   :  { %568 = vmatpush.bf16.msrb.mxu0 %v4152_v45 }
  0x1a   :  { %364 = vmatpush.bf16.msra.mxu2 %v4108_v3 }
  0x1b   :  { %713 = vmatpush.bf16.msra.mxu0 %v4149_v44 }
  0x1f   :  { %714 = vmatpush.bf16.msra.mxu0 %v4152_v45 }
  0x8f   :  { %v88_v12 = vpop.f32.mrf.mxu0 }
  0x90   :  { %v89_v15 = vadd.f32 %v4133_v13, %v88_v12  ;;  %v207_v18 = vpop.f32.mrf.mxu2 }
  0x97   :  { %v90_v14 = vpop.f32.mrf.mxu0 }
  0x98   :  { %v91_v16 = vadd.f32 %v4133_v13, %v90_v14  ;;  %v209_v19 = vpop.f32.mrf.mxu2  ;;  %v38_v14 = vld [vmem:[%s4899_s0 + $0x10] sm:$0xff] }
  0x9a   :  { %v110_v17 = vpack.c.bf16 %v91_v16, %v89_v15  ;;  %v39_v15 = vld [vmem:[%s4899_s0 + $0x18] sm:$0xff] }
  0x9b   :  { %v4179_v16 = vpack.c.bf16 %v39_v15, %v38_v14 }
  0x9c   :  { %3450 = vmatmul.msk.bf16.vlgmr.msra.gmra.mxu1 %vm122_vm2, %v110_v17 }
  0x9d   :  { %655 = vmatpush.bf16.msra.mxu1 %v4106_v2  ;;  %3443 = vmatmul.msk.bf16.gmra.mxu0 %vm62_vm1, %v4179_v16 }
  0xa1   :  { %656 = vmatpush.bf16.msra.mxu1 %v4108_v3 }
 0x119   :  { %v144_v21 = vpop.f32.mrf.mxu1 }
 0x11a   :  { %v145_v22 = vadd.f32 %v4143_v20, %v144_v21 }
 0x11c   :  { %v211_v23 = vadd.f32 %v207_v18, %v145_v22  ;;  %v93_v22 = vpop.f32.mrf.mxu0 }
 0x11e   :  { %3712 = vtanh.f32 %v211_v23  ;;  %v3462_v25 = vmul.f32 -1.442695, %v211_v23  ;;  %v94_v23 = vadd.f32 %v4133_v13, %v93_v22 }
 0x120   :  { %3714 = vpow2.f32 %v3462_v25 }
 0x121   :  { %v146_v50 = vpop.f32.mrf.mxu1 }
 0x122   :  { %v147_v51 = vadd.f32 %v4143_v20, %v146_v50 }
 0x124   :  { %v3713_v24 = vpop.eup %3712 }
 0x125   :  { %234 = vrot.lane.b32.xlu0 %v3713_v24, %s4063_s23  ;;  %v95_v24 = vpop.f32.mrf.mxu0 }
 0x126   :  { %v3715_v26 = vpop.eup %3714  ;;  %v96_v25 = vadd.f32 %v4133_v13, %v95_v24 }
 0x127   :  { %v215_v27 = vadd.f32 1.0, %v3715_v26 }
 0x128   :  { %v111_v26 = vpack.c.bf16 %v96_v25, %v94_v23 }
 0x129   :  { %3716 = vrcp.f32 %v215_v27  ;;  %v227_v33 = vand.u32 2147483648, %v215_v27  ;;  %vm221_vm4 = vweird.f32 %v215_v27  ;;  %v225_v34 = vand.u32 2147483647, %v215_v27 }
 0x12a   :  { %3451 = vmatmul.msk.bf16.gmra.mxu1 %vm122_vm2, %v111_v26 }
 0x12b   :  { %v228_v36 = vor.u32 1.1754944e-38, %v227_v33  ;;  %vm226_vm6 = vcmp.eq.f32.partialorder %v225_v34, 8.507059e+37 }
 0x12f   :  { %v3717_v28 = vpop.eup %3716 }
 0x130   :  { %v217_v29 = vmul.f32 %v3717_v28, %v215_v27  ;;  %vm222_vm3 = vweird.f32 %v3717_v28 }
 0x131   :  { %vm223_vm5 = vmor %vm221_vm4, %vm222_vm3 }
 0x132   :  { %v218_v30 = vsub.f32 1.0, %v217_v29 }
 0x134   :  { %v219_v31 = vmul.f32 %v3717_v28, %v218_v30 }
 0x136   :  { %v220_v32 = vadd.f32 %v3717_v28, %v219_v31 }
 0x138   :  { %v224_v35 = vsel %vm223_vm5, %v3717_v28, %v220_v32 }
 0x139   :  { %v229_v38 = vsel %vm226_vm6, %v228_v36, %v224_v35 }
 0x13a   :  { %v232_v40 = vmul.f32 0.0, %v229_v38 }
 0x197   :  { %v235_v37 = vpop.permute.xlu0 %234 }
 0x198   :  { %v237_v39 = vmul.f32 %v235_v37, %v229_v38 }
 0x19a   :  { %239 = vrot.lane.b32.xlu0 %v237_v39, %s4066_s7 }
 0x1a7   :  { %v149_v31 = vpop.f32.mrf.mxu1 }
 0x1a8   :  { %v150_v32 = vadd.f32 %v4143_v20, %v149_v31 }
 0x20c   :  { %v240_v41 = vpop.permute.xlu0 %239 }
 0x20d   :  { %v242_v42 = vadd.f32 %v240_v41, %v232_v40 }
 0x20f   :  { %3718 = vtanh.f32 %v242_v42 }
 0x215   :  { %v3719_v43 = vpop.eup %3718 }
 0x216   :  { %245 = vrot.lane.b32.xlu1 %v3719_v43, %s4063_s23 }
 0x288   :  { %v246_v46 = vpop.permute.xlu1 %245 }
 0x289   :  { %v248_v47 = vmul.f32 %v246_v46, %v229_v38 }
 0x28b   :  { %v249_v48 = vpack.c.bf16 %v248_v47, %v248_v47 }
 0x28d   :  { %252 = vrot.lane.b32.xlu1 %v249_v48, %s4066_s7 }
 0x2ff   :  { %v253_v49 = vpop.permute.xlu1 %252 }
 0x300   :  { %3471 = vmatmul.msk.bf16.vlgmr.msra.gmra.mxu3 %vm194_vm7, %v253_v49  ;;  %3472 = vmatmul.msk.bf16.vlgmr.msrb.gmra.mxu2 %vm194_vm7, %v253_v49 }
 0x301   :  { %436 = vmatpush.bf16.msrb.mxu2 %v4106_v2  ;;  %421 = vmatpush.bf16.msra.mxu3 %v4149_v44 }
 0x305   :  { %437 = vmatpush.bf16.msrb.mxu2 %v4108_v3  ;;  %422 = vmatpush.bf16.msra.mxu3 %v4152_v45 }
 0x383   :  { %v4169_v52 = vpop.f32.mrf.mxu3  ;;  %v293_v53 = vpop.f32.mrf.mxu2 }
 0x384   :  { %v297_v54 = vadd.f32 %v293_v53, %v147_v51 }
 0x386   :  { %3720 = vtanh.f32 %v297_v54  ;;  %v3473_v58 = vmul.f32 -1.442695, %v297_v54 }
 0x388   :  { %3722 = vpow2.f32 %v3473_v58 }
 0x38b   :  { %v280_v55 = vpop.f32.mrf.mxu3  ;;  %v295_v56 = vpop.f32.mrf.mxu2 }
 0x38c   :  { %v3721_v57 = vpop.eup %3720 }
 0x38d   :  { %320 = vrot.lane.b32.xlu2 %v3721_v57, %s4063_s23 }
 0x38e   :  { %v3723_v59 = vpop.eup %3722 }
 0x38f   :  { %v301_v60 = vadd.f32 1.0, %v3723_v59 }
 0x391   :  { %3724 = vrcp.f32 %v301_v60  ;;  %v313_v4 = vand.u32 2147483648, %v301_v60  ;;  %vm307_vm9 = vweird.f32 %v301_v60  ;;  %v311_v5 = vand.u32 2147483647, %v301_v60 }
 0x393   :  { %v314_v7 = vor.u32 1.1754944e-38, %v313_v4  ;;  %vm312_vm11 = vcmp.eq.f32.partialorder %v311_v5, 8.507059e+37 }
 0x397   :  { %v3725_v61 = vpop.eup %3724 }
 0x398   :  { %v303_v62 = vmul.f32 %v3725_v61, %v301_v60  ;;  %vm308_vm8 = vweird.f32 %v3725_v61 }
 0x399   :  { %vm309_vm10 = vmor %vm307_vm9, %vm308_vm8 }
 0x39a   :  { %v304_v63 = vsub.f32 1.0, %v303_v62 }
 0x39c   :  { %v305_v0 = vmul.f32 %v3725_v61, %v304_v63 }
 0x39e   :  { %v306_v1 = vadd.f32 %v3725_v61, %v305_v0 }
 0x3a0   :  { %v310_v6 = vsel %vm309_vm10, %v3725_v61, %v306_v1  ;;  %v151_v1 = vpop.f32.mrf.mxu1 }
 0x3a1   :  { %v315_v11 = vsel %vm312_vm11, %v314_v7, %v310_v6  ;;  %v152_v4 = vadd.f32 %v4143_v20, %v151_v1 }
 0x3a2   :  { %v318_v17 = vmul.f32 %v315_v11, %v242_v42 }
 0x3e7   :  { %v321_v8 = vpop.permute.xlu2 %320 }
 0x3e8   :  { %v323_v12 = vmul.f32 %v321_v8, %v315_v11 }
 0x3ea   :  { %325 = vrot.lane.b32.xlu2 %v323_v12, %s4066_s7 }
 0x444   :  { %v326_v18 = vpop.permute.xlu2 %325 }
 0x445   :  { %v328_v19 = vadd.f32 %v326_v18, %v318_v17 }
 0x447   :  { %3726 = vtanh.f32 %v328_v19 }
 0x44d   :  { %v3727_v21 = vpop.eup %3726 }
 0x44e   :  { %331 = vrot.lane.b32.xlu0 %v3727_v21, %s4063_s23 }
 0x4c0   :  { %v332_v27 = vpop.permute.xlu0 %331 }
 0x4c1   :  { %v334_v28 = vmul.f32 %v332_v27, %v315_v11 }
 0x4c3   :  { %v335_v29 = vpack.c.bf16 %v334_v28, %v334_v28 }
 0x4c5   :  { %337 = vrot.lane.b32.xlu1 %v335_v29, %s4066_s7  ;;  %v40_v29 = vld [vmem:[%s4899_s0 + $0x20] sm:$0xff] }
 0x537   :  { %v338_v30 = vpop.permute.xlu1 %337 }
 0x538   :  { %3474 = vmatmul.msk.bf16.vlgmr.msrb.gmra.mxu3 %vm194_vm7, %v338_v30  ;;  %3475 = vmatmul.msk.bf16.vlgmr.msra.gmra.mxu2 %vm194_vm7, %v338_v30  ;;  %v41_v30 = vld [vmem:[%s4899_s0 + $0x28] sm:$0xff] }
 0x539   :  { %494 = vmatpush.bf16.msrb.mxu3 %v4149_v44  ;;  %582 = vmatpush.bf16.msra.mxu2 %v4106_v2  ;;  %v4218_v31 = vpack.c.bf16 %v41_v30, %v40_v29 }
 0x53b   :  { %3444 = vmatmul.msk.bf16.gmra.mxu0 %vm62_vm1, %v4218_v31 }
 0x53d   :  { %495 = vmatpush.bf16.msrb.mxu3 %v4152_v45  ;;  %583 = vmatpush.bf16.msra.mxu2 %v4108_v3 }
 0x5bb   :  { %v4195_v33 = vpop.f32.mrf.mxu3  ;;  %v366_v34 = vpop.f32.mrf.mxu2 }
 0x5bc   :  { %v370_v35 = vadd.f32 %v366_v34, %v150_v32  ;;  %v42_v32 = vld [vmem:[%s4899_s0 + $0x30] sm:$0xff]  ;;  %v43_v34 = vld [vmem:[%s4899_s0 + $0x38] sm:$0xff] }
 0x5be   :  { %3728 = vtanh.f32 %v370_v35  ;;  %v3476_v39 = vmul.f32 -1.442695, %v370_v35  ;;  %v50_v35 = vpack.c.bf16 %v43_v34, %v42_v32 }
 0x5c0   :  { %3730 = vpow2.f32 %v3476_v39  ;;  %3445 = vmatmul.msk.bf16.gmra.mxu0 %vm62_vm1, %v50_v35 }
 0x5c3   :  { %v353_v36 = vpop.f32.mrf.mxu3  ;;  %v368_v37 = vpop.f32.mrf.mxu2 }
 0x5c4   :  { %v3729_v38 = vpop.eup %3728 }
 0x5c5   :  { %393 = vrot.lane.b32.xlu2 %v3729_v38, %s4063_s23 }
 0x5c6   :  { %v3731_v40 = vpop.eup %3730 }
 0x5c7   :  { %v374_v41 = vadd.f32 1.0, %v3731_v40 }
 0x5c9   :  { %3732 = vrcp.f32 %v374_v41  ;;  %v386_v49 = vand.u32 2147483648, %v374_v41  ;;  %vm380_vm13 = vweird.f32 %v374_v41  ;;  %v384_v50 = vand.u32 2147483647, %v374_v41 }
 0x5cb   :  { %v387_v53 = vor.u32 1.1754944e-38, %v386_v49  ;;  %vm385_vm15 = vcmp.eq.f32.partialorder %v384_v50, 8.507059e+37 }
 0x5cf   :  { %v3733_v42 = vpop.eup %3732 }
 0x5d0   :  { %v376_v43 = vmul.f32 %v3733_v42, %v374_v41  ;;  %vm381_vm12 = vweird.f32 %v3733_v42 }
 0x5d1   :  { %vm382_vm14 = vmor %vm380_vm13, %vm381_vm12 }
 0x5d2   :  { %v377_v46 = vsub.f32 1.0, %v376_v43  ;;  %v98_v43 = vpop.f32.mrf.mxu0 }
 0x5d4   :  { %v378_v47 = vmul.f32 %v3733_v42, %v377_v46  ;;  %v99_v46 = vadd.f32 %v4133_v13, %v98_v43 }
 0x5d6   :  { %v379_v48 = vadd.f32 %v3733_v42, %v378_v47 }
 0x5d8   :  { %v383_v51 = vsel %vm382_vm14, %v3733_v42, %v379_v48 }
 0x5d9   :  { %v388_v55 = vsel %vm385_vm15, %v387_v53, %v383_v51 }
 0x5da   :  { %v391_v57 = vmul.f32 %v388_v55, %v328_v19  ;;  %v100_v47 = vpop.f32.mrf.mxu0 }
 0x5db   :  { %v101_v48 = vadd.f32 %v4133_v13, %v100_v47 }
 0x5dd   :  { %v112_v49 = vpack.c.bf16 %v101_v48, %v99_v46 }
 0x5df   :  { %3452 = vmatmul.msk.bf16.gmra.mxu1 %vm122_vm2, %v112_v49 }
 0x61f   :  { %v394_v54 = vpop.permute.xlu2 %393 }
 0x620   :  { %v396_v56 = vmul.f32 %v394_v54, %v388_v55 }
 0x622   :  { %398 = vrot.lane.b32.xlu0 %v396_v56, %s4066_s7 }
 0x63d   :  { %v103_v50 = vpop.f32.mrf.mxu0 }
 0x63e   :  { %v104_v51 = vadd.f32 %v4133_v13, %v103_v50 }
 0x645   :  { %v105_v53 = vpop.f32.mrf.mxu0 }
 0x646   :  { %v106_v54 = vadd.f32 %v4133_v13, %v105_v53 }
 0x694   :  { %v399_v58 = vpop.permute.xlu0 %398 }
 0x695   :  { %v401_v59 = vadd.f32 %v399_v58, %v391_v57  ;;  %v154_v57 = vpop.f32.mrf.mxu1 }
 0x696   :  { %v155_v13 = vadd.f32 %v4143_v20, %v154_v57 }
 0x697   :  { %3734 = vtanh.f32 %v401_v59 }
 0x69d   :  { %v3735_v60 = vpop.eup %3734  ;;  %v156_v58 = vpop.f32.mrf.mxu1 }
 0x69e   :  { %404 = vrot.lane.b32.xlu1 %v3735_v60, %s4063_s23  ;;  %v157_v32 = vadd.f32 %v4143_v20, %v156_v58 }
 0x710   :  { %v405_v61 = vpop.permute.xlu1 %404 }
 0x711   :  { %v407_v62 = vmul.f32 %v405_v61, %v388_v55  ;;  %v113_v55 = vpack.c.bf16 %v106_v54, %v104_v51 }
 0x713   :  { %v408_v63 = vpack.c.bf16 %v407_v62, %v407_v62  ;;  %3453 = vmatmul.msk.bf16.gmra.mxu1 %vm122_vm2, %v113_v55 }
 0x715   :  { %410 = vrot.lane.b32.xlu2 %v408_v63, %s4066_s7 }
 0x76f   :  { %v411_v0 = vpop.permute.xlu2 %410 }
 0x770   :  { %3477 = vmatmul.msk.bf16.vlgmr.msra.gmra.mxu3 %vm194_vm7, %v411_v0  ;;  %3478 = vmatmul.msk.bf16.vlgmr.msrb.gmra.mxu2 %vm194_vm7, %v411_v0 }
 0x771   :  { %640 = vmatpush.bf16.msra.mxu3 %v4149_v44  ;;  %728 = vmatpush.bf16.msrb.mxu2 %v4106_v2 }
 0x775   :  { %641 = vmatpush.bf16.msra.mxu3 %v4152_v45  ;;  %729 = vmatpush.bf16.msrb.mxu2 %v4108_v3 }
 0x7f3   :  { %v4208_v5 = vpop.f32.mrf.mxu3  ;;  %v439_v6 = vpop.f32.mrf.mxu2 }
 0x7f4   :  { %v443_v7 = vadd.f32 %v439_v6, %v152_v4 }
 0x7f6   :  { %3736 = vtanh.f32 %v443_v7  ;;  %v3479_v14 = vmul.f32 -1.442695, %v443_v7 }
 0x7f8   :  { %3738 = vpow2.f32 %v3479_v14 }
 0x7fb   :  { %v426_v8 = vpop.f32.mrf.mxu3  ;;  %v441_v11 = vpop.f32.mrf.mxu2 }
 0x7fc   :  { %v3737_v12 = vpop.eup %3736 }
 0x7fd   :  { %466 = vrot.lane.b32.xlu0 %v3737_v12, %s4063_s23 }
 0x7fe   :  { %v3739_v2 = vpop.eup %3738 }
 0x7ff   :  { %v447_v15 = vadd.f32 1.0, %v3739_v2 }
 0x801   :  { %3740 = vrcp.f32 %v447_v15  ;;  %v459_v22 = vand.u32 2147483648, %v447_v15  ;;  %vm453_vm4 = vweird.f32 %v447_v15  ;;  %v457_v23 = vand.u32 2147483647, %v447_v15 }
 0x803   :  { %v460_v25 = vor.u32 1.1754944e-38, %v459_v22  ;;  %vm458_vm6 = vcmp.eq.f32.partialorder %v457_v23, 8.507059e+37 }
 0x807   :  { %v3741_v17 = vpop.eup %3740 }
 0x808   :  { %v449_v3 = vmul.f32 %v3741_v17, %v447_v15  ;;  %vm454_vm3 = vweird.f32 %v3741_v17 }
 0x809   :  { %vm455_vm5 = vmor %vm453_vm4, %vm454_vm3 }
 0x80a   :  { %v450_v18 = vsub.f32 1.0, %v449_v3 }
 0x80c   :  { %v451_v19 = vmul.f32 %v3741_v17, %v450_v18 }
 0x80e   :  { %v452_v21 = vadd.f32 %v3741_v17, %v451_v19 }
 0x810   :  { %v456_v24 = vsel %vm455_vm5, %v3741_v17, %v452_v21 }
 0x811   :  { %v461_v27 = vsel %vm458_vm6, %v460_v25, %v456_v24 }
 0x812   :  { %v464_v36 = vmul.f32 %v461_v27, %v401_v59  ;;  %v4241_v59 = vpop.f32.mrf.mxu1 }
 0x81a   :  { %v4243_v60 = vpop.f32.mrf.mxu1 }
 0x86f   :  { %v467_v26 = vpop.permute.xlu0 %466 }
 0x870   :  { %v469_v28 = vmul.f32 %v467_v26, %v461_v27 }
 0x872   :  { %471 = vrot.lane.b32.xlu1 %v469_v28, %s4066_s7 }
 0x8e4   :  { %v472_v37 = vpop.permute.xlu1 %471 }
 0x8e5   :  { %v474_v38 = vadd.f32 %v472_v37, %v464_v36 }
 0x8e7   :  { %3742 = vtanh.f32 %v474_v38 }
 0x8ed   :  { %v3743_v39 = vpop.eup %3742 }
 0x8ee   :  { %477 = vrot.lane.b32.xlu2 %v3743_v39, %s4063_s23 }
 0x948   :  { %v478_v40 = vpop.permute.xlu2 %477 }
 0x949   :  { %v480_v41 = vmul.f32 %v478_v40, %v461_v27 }
 0x94b   :  { %v481_v42 = vpack.c.bf16 %v480_v41, %v480_v41 }
 0x94d   :  { %483 = vrot.lane.b32.xlu0 %v481_v42, %s4066_s7 }
 0x9bf   :  { %v484_v56 = vpop.permute.xlu0 %483 }
 0x9c0   :  { %3480 = vmatmul.msk.bf16.vlgmr.msrb.gmra.mxu3 %vm194_vm7, %v484_v56  ;;  %3481 = vmatmul.msk.bf16.vlgmr.msrb.gmra.mxu1 %vm194_vm7, %v484_v56 }
 0x9c1   :  { %786 = vmatpush.bf16.msrb.mxu3 %v4149_v44 }
 0x9c5   :  { %787 = vmatpush.bf16.msrb.mxu3 %v4152_v45 }
 0xa3d   :  { %v512_v61 = vpop.f32.mrf.mxu1 }
 0xa3e   :  { %v516_v62 = vadd.f32 %v512_v61, %v155_v13 }
 0xa40   :  { %3744 = vtanh.f32 %v516_v62  ;;  %v3482_v4 = vmul.f32 -1.442695, %v516_v62 }
 0xa42   :  { %3746 = vpow2.f32 %v3482_v4  ;;  %v4267_v4 = vld [vmem:[#allocation4 + $0x38] sm:$0xff] }
 0xa43   :  { %v4246_v63 = vpop.f32.mrf.mxu3 }
 0xa45   :  { %v514_v0 = vpop.f32.mrf.mxu1 }
 0xa46   :  { %v3745_v1 = vpop.eup %3744 }
 0xa47   :  { %539 = vrot.lane.b32.xlu1 %v3745_v1, %s4063_s23 }
 0xa48   :  { %v3747_v45 = vpop.eup %3746 }
 0xa49   :  { %v520_v6 = vadd.f32 1.0, %v3747_v45 }
 0xa4b   :  { %v499_v44 = vpop.f32.mrf.mxu3  ;;  %3748 = vrcp.f32 %v520_v6  ;;  %v532_v2 = vand.u32 2147483648, %v520_v6  ;;  %vm526_vm9 = vweird.f32 %v520_v6  ;;  %v530_v15 = vand.u32 2147483647, %v520_v6 }
 0xa4c   :  { %v4264_v44 = vld [vmem:[#allocation4 + $0x40] sm:$0xff] }
 0xa4d   :  { %v533_v3 = vor.u32 1.1754944e-38, %v532_v2  ;;  %vm531_vm11 = vcmp.eq.f32.partialorder %v530_v15, 8.507059e+37  ;;  %817 = vmatpush.bf16.msrb.mxu1 %v4264_v44  ;;  %v4289_v2 = vld [vmem:[%s4902_s3 + $0x2] ss:$0 sm:$0xff] }
 0xa51   :  { %v3749_v7 = vpop.eup %3748  ;;  %818 = vmatpush.bf16.msrb.mxu1 %v4267_v4 }
 0xa52   :  { %v522_v8 = vmul.f32 %v3749_v7, %v520_v6  ;;  %vm527_vm8 = vweird.f32 %v3749_v7  ;;  %v160_v6 = vadd.f32 %v4143_v20, %v4241_v59 }
 0xa53   :  { %vm528_vm10 = vmor %vm526_vm9, %vm527_vm8 }
 0xa54   :  { %v523_v11 = vsub.f32 1.0, %v522_v8 }
 0xa56   :  { %v524_v12 = vmul.f32 %v3749_v7, %v523_v11 }
 0xa58   :  { %v525_v14 = vadd.f32 %v3749_v7, %v524_v12 }
 0xa5a   :  { %v529_v17 = vsel %vm528_vm10, %v3749_v7, %v525_v14 }
 0xa5b   :  { %v534_v19 = vsel %vm531_vm11, %v533_v3, %v529_v17 }
 0xa5c   :  { %v537_v22 = vmul.f32 %v534_v19, %v474_v38 }
 0xab9   :  { %v540_v18 = vpop.permute.xlu1 %539 }
 0xaba   :  { %v542_v21 = vmul.f32 %v540_v18, %v534_v19 }
 0xabc   :  { %544 = vrot.lane.b32.xlu2 %v542_v21, %s4066_s7 }
 0xb16   :  { %v545_v23 = vpop.permute.xlu2 %544 }
 0xb17   :  { %v547_v24 = vadd.f32 %v545_v23, %v537_v22 }
 0xb19   :  { %3750 = vtanh.f32 %v547_v24 }
 0xb1f   :  { %v3751_v25 = vpop.eup %3750 }
 0xb20   :  { %550 = vrot.lane.b32.xlu0 %v3751_v25, %s4063_s23 }
 0xb92   :  { %v551_v26 = vpop.permute.xlu0 %550 }
 0xb93   :  { %v553_v27 = vmul.f32 %v551_v26, %v534_v19 }
 0xb95   :  { %v554_v28 = vpack.c.bf16 %v553_v27, %v553_v27 }
 0xb97   :  { %556 = vrot.lane.b32.xlu1 %v554_v28, %s4066_s7 }
 0xc09   :  { %v557_v29 = vpop.permute.xlu1 %556 }
 0xc0a   :  { %3483 = vmatmul.msk.bf16.vlgmr.msrb.gmra.mxu0 %vm194_vm7, %v557_v29  ;;  %3484 = vmatmul.msk.bf16.vlgmr.msra.gmra.mxu2 %vm194_vm7, %v557_v29 }
 0xc0b   :  { %876 = vmatpush.bf16.msrb.mxu0 %v4264_v44  ;;  %935 = vmatpush.bf16.msra.mxu2 %v4264_v44 }
 0xc0f   :  { %877 = vmatpush.bf16.msrb.mxu0 %v4267_v4  ;;  %936 = vmatpush.bf16.msra.mxu2 %v4267_v4 }
 0xc87   :  { %v4254_v30 = vpop.f32.mrf.mxu0 }
 0xc8d   :  { %v585_v34 = vpop.f32.mrf.mxu2 }
 0xc8e   :  { %v589_v35 = vadd.f32 %v585_v34, %v157_v32 }
 0xc8f   :  { %v572_v36 = vpop.f32.mrf.mxu0 }
 0xc90   :  { %3752 = vtanh.f32 %v589_v35  ;;  %v3485_v39 = vmul.f32 -1.442695, %v589_v35 }
 0xc92   :  { %3754 = vpow2.f32 %v3485_v39 }
 0xc95   :  { %v587_v37 = vpop.f32.mrf.mxu2 }
 0xc96   :  { %v3753_v38 = vpop.eup %3752 }
 0xc97   :  { %612 = vrot.lane.b32.xlu2 %v3753_v38, %s4063_s23 }
 0xc98   :  { %v3755_v40 = vpop.eup %3754 }
 0xc99   :  { %v593_v41 = vadd.f32 1.0, %v3755_v40 }
 0xc9b   :  { %3756 = vrcp.f32 %v593_v41  ;;  %v605_v49 = vand.u32 2147483648, %v593_v41  ;;  %vm599_vm13 = vweird.f32 %v593_v41  ;;  %v603_v50 = vand.u32 2147483647, %v593_v41 }
 0xc9d   :  { %v606_v53 = vor.u32 1.1754944e-38, %v605_v49  ;;  %vm604_vm15 = vcmp.eq.f32.partialorder %v603_v50, 8.507059e+37 }
 0xca1   :  { %v3757_v42 = vpop.eup %3756 }
 0xca2   :  { %v595_v43 = vmul.f32 %v3757_v42, %v593_v41  ;;  %vm600_vm12 = vweird.f32 %v3757_v42 }
 0xca3   :  { %vm601_vm14 = vmor %vm599_vm13, %vm600_vm12 }
 0xca4   :  { %v596_v46 = vsub.f32 1.0, %v595_v43 }
 0xca6   :  { %v597_v47 = vmul.f32 %v3757_v42, %v596_v46 }
 0xca8   :  { %v598_v48 = vadd.f32 %v3757_v42, %v597_v47 }
 0xcaa   :  { %v602_v51 = vsel %vm601_vm14, %v3757_v42, %v598_v48 }
 0xcab   :  { %v607_v55 = vsel %vm604_vm15, %v606_v53, %v602_v51 }
 0xcac   :  { %v610_v57 = vmul.f32 %v607_v55, %v547_v24 }
 0xcf1   :  { %v613_v54 = vpop.permute.xlu2 %612 }
 0xcf2   :  { %v615_v56 = vmul.f32 %v613_v54, %v607_v55 }
 0xcf4   :  { %617 = vrot.lane.b32.xlu0 %v615_v56, %s4066_s7 }
 0xd66   :  { %v618_v58 = vpop.permute.xlu0 %617 }
 0xd67   :  { %v4259_v13 = vadd.f32 %v618_v58, %v610_v57 }
 0xd69   :  { %3758 = vtanh.f32 %v4259_v13 }
 0xd6f   :  { %v3759_v61 = vpop.eup %3758 }
 0xd70   :  { %623 = vrot.lane.b32.xlu1 %v3759_v61, %s4063_s23 }
 0xde2   :  { %v624_v62 = vpop.permute.xlu1 %623 }
 0xde3   :  { %v626_v0 = vmul.f32 %v624_v62, %v607_v55 }
 0xde5   :  { %v627_v1 = vpack.c.bf16 %v626_v0, %v626_v0 }
 0xde7   :  { %629 = vrot.lane.b32.xlu2 %v627_v1, %s4066_s7 }
 0xe41   :  { %v630_v45 = vpop.permute.xlu2 %629 }
 0xe42   :  { %3486 = vmatmul.msk.bf16.vlgmr.msra.gmra.mxu3 %vm194_vm7, %v630_v45  ;;  %3487 = vmatmul.msk.bf16.vlgmr.msra.gmra.mxu1 %vm194_vm7, %v630_v45 }
 0xe43   :  { %994 = vmatpush.bf16.msra.mxu3 %v4264_v44  ;;  %1053 = vmatpush.bf16.msra.mxu1 %v4264_v44 }
 0xe47   :  { %995 = vmatpush.bf16.msra.mxu3 %v4267_v4  ;;  %1054 = vmatpush.bf16.msra.mxu1 %v4267_v4 }
 0xe52   :  { %819 = vmatmul.bf16.vlgmr.msrb.gmra.mxu1 %v4065_v10  ;;  %v279_v10 = vadd.f32 %v4289_v2, %v4169_v52 }
 0xebf   :  { %v658_v7 = vpop.f32.mrf.mxu1 }
 0xec0   :  { %v662_v8 = vadd.f32 %v658_v7, %v160_v6 }
 0xec2   :  { %3760 = vtanh.f32 %v662_v8  ;;  %v3488_v19 = vmul.f32 -1.442695, %v662_v8 }
 0xec5   :  { %v4283_v11 = vpop.f32.mrf.mxu3 }
 0xec7   :  { %v660_v12 = vpop.f32.mrf.mxu1 }
 0xec8   :  { %v3761_v14 = vpop.eup %3760 }
 0xec9   :  { %685 = vrot.lane.b32.xlu0 %v3761_v14, %s4063_s23 }
 0xecd   :  { %v645_v15 = vpop.f32.mrf.mxu3 }
 0xecf   :  { %v820_v17 = vpop.f32.mrf.mxu1 }
 0xed0   :  { %v824_v59 = vadd.f32 %v820_v17, %v279_v10 }
 0xed2   :  { %3762 = vtanh.f32 %v824_v59  ;;  %v3501_v23 = vmul.f32 -1.442695, %v824_v59 }
 0xed3   :  { %3764 = vpow2.f32 %v3488_v19 }
 0xed7   :  { %v822_v3 = vpop.f32.mrf.mxu1 }
 0xed8   :  { %v3763_v18 = vpop.eup %3762 }
 0xed9   :  { %847 = vrot.lane.b32.xlu1 %v3763_v18, %s4063_s23  ;;  %v3765_v21 = vpop.eup %3764  ;;  %v352_v18 = vadd.f32 %v4289_v2, %v4195_v33 }
 0xeda   :  { %v666_v22 = vadd.f32 1.0, %v3765_v21 }
 0xedc   :  { %3766 = vrcp.f32 %v666_v22  ;;  %v678_v34 = vand.u32 2147483648, %v666_v22  ;;  %vm672_vm4 = vweird.f32 %v666_v22  ;;  %v676_v35 = vand.u32 2147483647, %v666_v22 }
 0xedd   :  { %3768 = vpow2.f32 %v3501_v23 }
 0xede   :  { %v679_v38 = vor.u32 1.1754944e-38, %v678_v34  ;;  %vm677_vm6 = vcmp.eq.f32.partialorder %v676_v35, 8.507059e+37 }
 0xee2   :  { %v3767_v24 = vpop.eup %3766 }
 0xee3   :  { %v3769_v25 = vpop.eup %3768  ;;  %v668_v26 = vmul.f32 %v3767_v24, %v666_v22  ;;  %vm673_vm3 = vweird.f32 %v3767_v24 }
 0xee4   :  { %v828_v27 = vadd.f32 1.0, %v3769_v25  ;;  %vm674_vm5 = vmor %vm672_vm4, %vm673_vm3 }
 0xee5   :  { %v669_v28 = vsub.f32 1.0, %v668_v26 }
 0xee6   :  { %3770 = vrcp.f32 %v828_v27  ;;  %v840_v47 = vand.u32 2147483648, %v828_v27  ;;  %vm834_vm9 = vweird.f32 %v828_v27  ;;  %v838_v48 = vand.u32 2147483647, %v828_v27 }
 0xee7   :  { %v670_v52 = vmul.f32 %v3767_v24, %v669_v28 }
 0xee8   :  { %v841_v50 = vor.u32 1.1754944e-38, %v840_v47  ;;  %vm839_vm11 = vcmp.eq.f32.partialorder %v838_v48, 8.507059e+37 }
 0xee9   :  { %v671_v29 = vadd.f32 %v3767_v24, %v670_v52 }
 0xeeb   :  { %v675_v36 = vsel %vm674_vm5, %v3767_v24, %v671_v29 }
 0xeec   :  { %v3771_v32 = vpop.eup %3770  ;;  %v680_v40 = vsel %vm677_vm6, %v679_v38, %v675_v36  ;;  %v162_v36 = vadd.f32 %v4143_v20, %v4243_v60 }
 0xeed   :  { %v830_v37 = vmul.f32 %v3771_v32, %v828_v27  ;;  %vm835_vm8 = vweird.f32 %v3771_v32  ;;  %v683_v55 = vmul.f32 %v680_v40, %v4259_v13 }
 0xeee   :  { %vm836_vm10 = vmor %vm834_vm9, %vm835_vm8 }
 0xeef   :  { %v831_v42 = vsub.f32 1.0, %v830_v37 }
 0xef1   :  { %v832_v43 = vmul.f32 %v3771_v32, %v831_v42 }
 0xef3   :  { %v833_v46 = vadd.f32 %v3771_v32, %v832_v43 }
 0xef5   :  { %v837_v49 = vsel %vm836_vm10, %v3771_v32, %v833_v46 }
 0xef6   :  { %v842_v53 = vsel %vm839_vm11, %v841_v50, %v837_v49 }
 0xef7   :  { %v845_v61 = vmul.f32 0.0, %v842_v53 }
 0xf3b   :  { %v686_v39 = vpop.permute.xlu0 %685 }
 0xf3c   :  { %v688_v41 = vmul.f32 %v686_v39, %v680_v40 }
 0xf3e   :  { %690 = vrot.lane.b32.xlu2 %v688_v41, %s4066_s7 }
 0xf4b   :  { %v848_v51 = vpop.permute.xlu1 %847 }
 0xf4c   :  { %v850_v54 = vmul.f32 %v848_v51, %v842_v53 }
 0xf4e   :  { %852 = vrot.lane.b32.xlu0 %v850_v54, %s4066_s7 }
 0xf98   :  { %v691_v56 = vpop.permute.xlu2 %690 }
 0xf99   :  { %v4297_v57 = vadd.f32 %v691_v56, %v683_v55 }
 0xf9b   :  { %3772 = vtanh.f32 %v4297_v57 }
 0xfa1   :  { %v3773_v58 = vpop.eup %3772 }
 0xfa2   :  { %696 = vrot.lane.b32.xlu1 %v3773_v58, %s4063_s23 }
 0xfc0   :  { %v853_v62 = vpop.permute.xlu0 %852 }
 0xfc1   :  { %v855_v0 = vadd.f32 %v853_v62, %v845_v61 }
 0xfc3   :  { %3774 = vtanh.f32 %v855_v0 }
 0xfc9   :  { %v3775_v1 = vpop.eup %3774 }
 0xfca   :  { %858 = vrot.lane.b32.xlu2 %v3775_v1, %s4063_s23 }
0x1014   :  { %v697_v45 = vpop.permute.xlu1 %696 }
0x1015   :  { %v699_v6 = vmul.f32 %v697_v45, %v680_v40 }
0x1017   :  { %v700_v7 = vpack.c.bf16 %v699_v6, %v699_v6 }
0x1019   :  { %702 = vrot.lane.b32.xlu0 %v700_v7, %s4066_s7 }
0x1024   :  { %v859_v13 = vpop.permute.xlu2 %858 }
0x1025   :  { %v861_v8 = vmul.f32 %v859_v13, %v842_v53 }
0x1027   :  { %v862_v12 = vpack.c.bf16 %v861_v8, %v861_v8 }
0x1029   :  { %865 = vrot.lane.b32.xlu1 %v862_v12, %s4066_s7  ;;  %v425_v12 = vadd.f32 %v4289_v2, %v4208_v5 }
0x108b   :  { %v703_v14 = vpop.permute.xlu0 %702 }
0x108c   :  { %3489 = vmatmul.msk.bf16.vlgmr.msra.gmra.mxu0 %vm194_vm7, %v703_v14  ;;  %3490 = vmatmul.msk.bf16.vlgmr.msrb.gmra.mxu2 %vm194_vm7, %v703_v14 }
0x108d   :  { %1112 = vmatpush.bf16.msra.mxu0 %v4264_v44  ;;  %1171 = vmatpush.bf16.msrb.mxu2 %v4264_v44 }
0x1091   :  { %1113 = vmatpush.bf16.msra.mxu0 %v4267_v4  ;;  %1172 = vmatpush.bf16.msrb.mxu2 %v4267_v4 }
0x109b   :  { %v866_v15 = vpop.permute.xlu1 %865 }
0x109c   :  { %3502 = vmatmul.msk.bf16.vlgmr.msrb.gmra.mxu0 %vm194_vm7, %v866_v15 }
0x1109   :  { %v4311_v10 = vpop.f32.mrf.mxu0 }
0x110f   :  { %v731_v17 = vpop.f32.mrf.mxu2 }
0x1110   :  { %v735_v38 = vadd.f32 %v731_v17, %v162_v36 }
0x1111   :  { %v718_v59 = vpop.f32.mrf.mxu0 }
0x1112   :  { %v3491_v20 = vmul.f32 -1.442695, %v735_v38 }
0x1117   :  { %v733_v3 = vpop.f32.mrf.mxu2 }
0x1119   :  { %v879_v19 = vpop.f32.mrf.mxu0 }
0x111a   :  { %v883_v21 = vadd.f32 %v879_v19, %v352_v18 }
0x111c   :  { %3776 = vtanh.f32 %v883_v21  ;;  %v3503_v24 = vmul.f32 -1.442695, %v883_v21 }
0x111e   :  { %3778 = vpow2.f32 %v3503_v24 }
0x1121   :  { %v881_v22 = vpop.f32.mrf.mxu0 }
0x1122   :  { %v3777_v23 = vpop.eup %3776 }
0x1123   :  { %906 = vrot.lane.b32.xlu2 %v3777_v23, %s4063_s23 }
0x1124   :  { %v3779_v25 = vpop.eup %3778 }
0x1125   :  { %v887_v26 = vadd.f32 1.0, %v3779_v25 }
0x1127   :  { %3780 = vrcp.f32 %v887_v26  ;;  %v899_v34 = vand.u32 2147483648, %v887_v26  ;;  %vm893_vm13 = vweird.f32 %v887_v26  ;;  %v897_v33 = vand.u32 2147483647, %v887_v26 }
0x1128   :  { %3782 = vtanh.f32 %v735_v38 }
0x1129   :  { %v900_v37 = vor.u32 1.1754944e-38, %v899_v34  ;;  %vm898_vm15 = vcmp.eq.f32.partialorder %v897_v33, 8.507059e+37 }
0x112d   :  { %v3781_v27 = vpop.eup %3780 }
0x112e   :  { %v889_v28 = vmul.f32 %v3781_v27, %v887_v26  ;;  %vm894_vm12 = vweird.f32 %v3781_v27  ;;  %v3783_v42 = vpop.eup %3782 }
0x112f   :  { %vm895_vm14 = vmor %vm893_vm13, %vm894_vm12 }
0x1130   :  { %v890_v52 = vsub.f32 1.0, %v889_v28 }
0x1132   :  { %v891_v29 = vmul.f32 %v3781_v27, %v890_v52 }
0x1134   :  { %v892_v32 = vadd.f32 %v3781_v27, %v891_v29 }
0x1136   :  { %v896_v35 = vsel %vm895_vm14, %v3781_v27, %v892_v32 }
0x1137   :  { %v901_v40 = vsel %vm898_vm15, %v900_v37, %v896_v35 }
0x1138   :  { %v904_v43 = vmul.f32 %v901_v40, %v855_v0 }
0x117d   :  { %v907_v39 = vpop.permute.xlu2 %906 }
0x117e   :  { %v909_v41 = vmul.f32 %v907_v39, %v901_v40 }
0x1180   :  { %911 = vrot.lane.b32.xlu0 %v909_v41, %s4066_s7 }
0x1188   :  { %758 = vrot.lane.b32.xlu0 %v3783_v42, %s4063_s23 }
0x11f2   :  { %v912_v46 = vpop.permute.xlu0 %911 }
0x11f3   :  { %v4320_v47 = vadd.f32 %v912_v46, %v904_v43 }
0x11f5   :  { %3784 = vtanh.f32 %v4320_v47 }
0x11f6   :  { %3786 = vpow2.f32 %v3491_v20 }
0x11fa   :  { %v759_v6 = vpop.permute.xlu0 %758 }
0x11fb   :  { %v3785_v48 = vpop.eup %3784 }
0x11fc   :  { %917 = vrot.lane.b32.xlu1 %v3785_v48, %s4063_s23  ;;  %v3787_v60 = vpop.eup %3786 }
0x11fd   :  { %v739_v49 = vadd.f32 1.0, %v3787_v60 }
0x11ff   :  { %3788 = vrcp.f32 %v739_v49  ;;  %v751_v62 = vand.u32 2147483648, %v739_v49  ;;  %vm745_vm4 = vweird.f32 %v739_v49  ;;  %v749_v0 = vand.u32 2147483647, %v739_v49 }
0x1201   :  { %v752_v45 = vor.u32 1.1754944e-38, %v751_v62  ;;  %vm750_vm6 = vcmp.eq.f32.partialorder %v749_v0, 8.507059e+37 }
0x1205   :  { %v3789_v50 = vpop.eup %3788 }
0x1206   :  { %v741_v51 = vmul.f32 %v3789_v50, %v739_v49  ;;  %vm746_vm3 = vweird.f32 %v3789_v50 }
0x1207   :  { %vm747_vm5 = vmor %vm745_vm4, %vm746_vm3 }
0x1208   :  { %v742_v53 = vsub.f32 1.0, %v741_v51 }
0x120a   :  { %v743_v54 = vmul.f32 %v3789_v50, %v742_v53 }
0x120c   :  { %v744_v58 = vadd.f32 %v3789_v50, %v743_v54 }
0x120e   :  { %v748_v1 = vsel %vm747_vm5, %v3789_v50, %v744_v58  ;;  %v498_v50 = vadd.f32 %v4289_v2, %v4246_v63 }
0x120f   :  { %v753_v7 = vsel %vm750_vm6, %v752_v45, %v748_v1 }
0x1210   :  { %v761_v13 = vmul.f32 %v759_v6, %v753_v7  ;;  %v756_v59 = vmul.f32 %v753_v7, %v4297_v57 }
0x126e   :  { %v918_v55 = vpop.permute.xlu1 %917 }
0x126f   :  { %v920_v56 = vmul.f32 %v918_v55, %v901_v40 }
0x1271   :  { %v921_v61 = vpack.c.bf16 %v920_v56, %v920_v56 }
0x1273   :  { %924 = vrot.lane.b32.xlu2 %v921_v61, %s4066_s7 }
0x127b   :  { %763 = vrot.lane.b32.xlu2 %v761_v13, %s4066_s7 }
0x12cd   :  { %v925_v8 = vpop.permute.xlu2 %924 }
0x12ce   :  { %3504 = vmatmul.msk.bf16.vlgmr.msra.gmra.mxu2 %vm194_vm7, %v925_v8 }
0x12d5   :  { %v764_v17 = vpop.permute.xlu2 %763 }
0x12d6   :  { %v766_v3 = vadd.f32 %v764_v17, %v756_v59 }
0x1351   :  { %v938_v14 = vpop.f32.mrf.mxu2 }
0x1352   :  { %v942_v15 = vadd.f32 %v938_v14, %v425_v12 }
0x1354   :  { %3790 = vtanh.f32 %v942_v15  ;;  %v3505_v22 = vmul.f32 -1.442695, %v942_v15 }
0x1355   :  { %3792 = vtanh.f32 %v766_v3 }
0x1356   :  { %3794 = vpow2.f32 %v3505_v22  ;;  %v571_v22 = vadd.f32 %v4289_v2, %v4254_v30 }
0x1359   :  { %v940_v18 = vpop.f32.mrf.mxu2 }
0x135a   :  { %v3791_v19 = vpop.eup %3790 }
0x135b   :  { %965 = vrot.lane.b32.xlu1 %v3791_v19, %s4063_s23  ;;  %v3793_v21 = vpop.eup %3792 }
0x135c   :  { %v3795_v23 = vpop.eup %3794 }
0x135d   :  { %v946_v24 = vadd.f32 1.0, %v3795_v23 }
0x135f   :  { %3796 = vrcp.f32 %v946_v24  ;;  %v958_v57 = vand.u32 2147483648, %v946_v24  ;;  %vm952_vm9 = vweird.f32 %v946_v24  ;;  %v956_v52 = vand.u32 2147483647, %v946_v24 }
0x1361   :  { %v959_v32 = vor.u32 1.1754944e-38, %v958_v57  ;;  %vm957_vm11 = vcmp.eq.f32.partialorder %v956_v52, 8.507059e+37 }
0x1363   :  { %769 = vrot.lane.b32.xlu1 %v3793_v21, %s4063_s23 }
0x1365   :  { %v3797_v5 = vpop.eup %3796 }
0x1366   :  { %v948_v25 = vmul.f32 %v3797_v5, %v946_v24  ;;  %vm953_vm8 = vweird.f32 %v3797_v5 }
0x1367   :  { %vm954_vm10 = vmor %vm952_vm9, %vm953_vm8 }
0x1368   :  { %v949_v26 = vsub.f32 1.0, %v948_v25 }
0x136a   :  { %v950_v27 = vmul.f32 %v3797_v5, %v949_v26 }
0x136c   :  { %v951_v28 = vadd.f32 %v3797_v5, %v950_v27 }
0x136e   :  { %v955_v29 = vsel %vm954_vm10, %v3797_v5, %v951_v28 }
0x136f   :  { %v960_v33 = vsel %vm957_vm11, %v959_v32, %v955_v29 }
0x1370   :  { %v963_v39 = vmul.f32 %v960_v33, %v4320_v47 }
0x13cd   :  { %v966_v34 = vpop.permute.xlu1 %965 }
0x13ce   :  { %v968_v35 = vmul.f32 %v966_v34, %v960_v33 }
0x13d0   :  { %970 = vrot.lane.b32.xlu0 %v968_v35, %s4066_s7 }
0x13d5   :  { %v770_v36 = vpop.permute.xlu1 %769 }
0x13d6   :  { %v772_v37 = vmul.f32 %v770_v36, %v753_v7 }
0x13d8   :  { %v773_v38 = vpack.c.bf16 %v772_v37, %v772_v37 }
0x13da   :  { %775 = vrot.lane.b32.xlu0 %v773_v38, %s4066_s7 }
0x1442   :  { %v971_v40 = vpop.permute.xlu0 %970 }
0x1443   :  { %v973_v41 = vadd.f32 %v971_v40, %v963_v39 }
0x1445   :  { %3798 = vtanh.f32 %v973_v41 }
0x144b   :  { %v3799_v42 = vpop.eup %3798 }
0x144c   :  { %976 = vrot.lane.b32.xlu2 %v3799_v42, %s4063_s23  ;;  %v776_v43 = vpop.permute.xlu0 %775 }
0x144d   :  { %3492 = vmatmul.msk.bf16.vlgmr.msrb.gmra.mxu3 %vm194_vm7, %v776_v43 }
0x144e   :  { %1230 = vmatpush.bf16.msrb.mxu3 %v4264_v44 }
0x1452   :  { %1231 = vmatpush.bf16.msrb.mxu3 %v4267_v4 }
0x14a6   :  { %v977_v46 = vpop.permute.xlu2 %976 }
0x14a7   :  { %v979_v48 = vmul.f32 %v977_v46, %v960_v33 }
0x14a9   :  { %v980_v20 = vpack.c.bf16 %v979_v48, %v979_v48 }
0x14ab   :  { %983 = vrot.lane.b32.xlu1 %v980_v20, %s4066_s7 }
0x14d0   :  { %v4340_v60 = vpop.f32.mrf.mxu3 }
0x14d8   :  { %v791_v47 = vpop.f32.mrf.mxu3 }
0x151d   :  { %v984_v49 = vpop.permute.xlu1 %983 }
0x151e   :  { %3506 = vmatmul.msk.bf16.vlgmr.msra.gmra.mxu3 %vm194_vm7, %v984_v49  ;;  %v644_v49 = vadd.f32 %v4289_v2, %v4283_v11 }
0x15a1   :  { %v997_v51 = vpop.f32.mrf.mxu3 }
0x15a2   :  { %v1001_v53 = vadd.f32 %v997_v51, %v498_v50 }
0x15a4   :  { %3800 = vtanh.f32 %v1001_v53  ;;  %v3507_v4 = vmul.f32 -1.442695, %v1001_v53 }
0x15a6   :  { %3802 = vpow2.f32 %v3507_v4 }
0x15a9   :  { %v999_v44 = vpop.f32.mrf.mxu3 }
0x15aa   :  { %v3801_v54 = vpop.eup %3800 }
0x15ab   :  { %1024 = vrot.lane.b32.xlu2 %v3801_v54, %s4063_s23 }
0x15ac   :  { %v3803_v55 = vpop.eup %3802 }
0x15ad   :  { %v1005_v56 = vadd.f32 1.0, %v3803_v55 }
0x15af   :  { %3804 = vrcp.f32 %v1005_v56  ;;  %v1017_v45 = vand.u32 2147483648, %v1005_v56  ;;  %vm1011_vm13 = vweird.f32 %v1005_v56  ;;  %v1015_v63 = vand.u32 2147483647, %v1005_v56 }
0x15b1   :  { %v1018_v7 = vor.u32 1.1754944e-38, %v1017_v45  ;;  %vm1016_vm15 = vcmp.eq.f32.partialorder %v1015_v63, 8.507059e+37 }
0x15b5   :  { %v3805_v58 = vpop.eup %3804 }
0x15b6   :  { %v1007_v61 = vmul.f32 %v3805_v58, %v1005_v56  ;;  %vm1012_vm12 = vweird.f32 %v3805_v58 }
0x15b7   :  { %vm1013_vm14 = vmor %vm1011_vm13, %vm1012_vm12 }
0x15b8   :  { %v1008_v62 = vsub.f32 1.0, %v1007_v61 }
0x15ba   :  { %v1009_v0 = vmul.f32 %v3805_v58, %v1008_v62 }
0x15bc   :  { %v1010_v1 = vadd.f32 %v3805_v58, %v1009_v0 }
0x15be   :  { %v1014_v6 = vsel %vm1013_vm14, %v3805_v58, %v1010_v1 }
0x15bf   :  { %v1019_v8 = vsel %vm1016_vm15, %v1018_v7, %v1014_v6 }
0x15c0   :  { %v1022_v14 = vmul.f32 %v1019_v8, %v973_v41 }
0x1605   :  { %v1025_v13 = vpop.permute.xlu2 %1024 }
0x1606   :  { %v1027_v12 = vmul.f32 %v1025_v13, %v1019_v8 }
0x1608   :  { %1029 = vrot.lane.b32.xlu0 %v1027_v12, %s4066_s7 }
0x167a   :  { %v1030_v15 = vpop.permute.xlu0 %1029 }
0x167b   :  { %v1032_v17 = vadd.f32 %v1030_v15, %v1022_v14 }
0x167d   :  { %3806 = vtanh.f32 %v1032_v17 }
0x1683   :  { %v3807_v59 = vpop.eup %3806 }
0x1684   :  { %1035 = vrot.lane.b32.xlu1 %v3807_v59, %s4063_s23 }
0x16f6   :  { %v1036_v3 = vpop.permute.xlu1 %1035 }
0x16f7   :  { %v1038_v18 = vmul.f32 %v1036_v3, %v1019_v8 }
0x16f9   :  { %v1039_v19 = vpack.c.bf16 %v1038_v18, %v1038_v18 }
0x16fb   :  { %1042 = vrot.lane.b32.xlu2 %v1039_v19, %s4066_s7  ;;  %v717_v19 = vadd.f32 %v4289_v2, %v4311_v10 }
0x1755   :  { %v1043_v21 = vpop.permute.xlu2 %1042 }
0x1756   :  { %3508 = vmatmul.msk.bf16.vlgmr.msra.gmra.mxu1 %vm194_vm7, %v1043_v21 }
0x17d3   :  { %v1056_v23 = vpop.f32.mrf.mxu1 }
0x17d4   :  { %v1060_v24 = vadd.f32 %v1056_v23, %v571_v22 }
0x17d6   :  { %3808 = vtanh.f32 %v1060_v24  ;;  %v3509_v26 = vmul.f32 -1.442695, %v1060_v24 }
0x17d8   :  { %3810 = vpow2.f32 %v3509_v26 }
0x17db   :  { %v1058_v5 = vpop.f32.mrf.mxu1 }
0x17dc   :  { %v3809_v25 = vpop.eup %3808 }
0x17dd   :  { %1083 = vrot.lane.b32.xlu0 %v3809_v25, %s4063_s23 }
0x17de   :  { %v3811_v27 = vpop.eup %3810 }
0x17df   :  { %v1064_v28 = vadd.f32 1.0, %v3811_v27 }
0x17e1   :  { %3812 = vrcp.f32 %v1064_v28  ;;  %v1076_v33 = vand.u32 2147483648, %v1064_v28  ;;  %vm1070_vm4 = vweird.f32 %v1064_v28  ;;  %v1074_v30 = vand.u32 2147483647, %v1064_v28 }
0x17e3   :  { %v1077_v36 = vor.u32 1.1754944e-38, %v1076_v33  ;;  %vm1075_vm6 = vcmp.eq.f32.partialorder %v1074_v30, 8.507059e+37 }
0x17e7   :  { %v3813_v57 = vpop.eup %3812 }
0x17e8   :  { %v1066_v52 = vmul.f32 %v3813_v57, %v1064_v28  ;;  %vm1071_vm3 = vweird.f32 %v3813_v57 }
0x17e9   :  { %vm1072_vm5 = vmor %vm1070_vm4, %vm1071_vm3 }
0x17ea   :  { %v1067_v29 = vsub.f32 1.0, %v1066_v52 }
0x17ec   :  { %v1068_v32 = vmul.f32 %v3813_v57, %v1067_v29 }
0x17ee   :  { %v1069_v34 = vadd.f32 %v3813_v57, %v1068_v32 }
0x17f0   :  { %v1073_v35 = vsel %vm1072_vm5, %v3813_v57, %v1069_v34 }
0x17f1   :  { %v1078_v38 = vsel %vm1075_vm6, %v1077_v36, %v1073_v35 }
0x17f2   :  { %v1081_v40 = vmul.f32 %v1078_v38, %v1032_v17 }
0x184f   :  { %v1084_v37 = vpop.permute.xlu0 %1083 }
0x1850   :  { %v1086_v39 = vmul.f32 %v1084_v37, %v1078_v38 }
0x1852   :  { %1088 = vrot.lane.b32.xlu1 %v1086_v39, %s4066_s7 }
0x18c4   :  { %v1089_v41 = vpop.permute.xlu1 %1088 }
0x18c5   :  { %v1091_v42 = vadd.f32 %v1089_v41, %v1081_v40 }
0x18c7   :  { %3814 = vtanh.f32 %v1091_v42 }
0x18cd   :  { %v3815_v43 = vpop.eup %3814 }
0x18ce   :  { %1094 = vrot.lane.b32.xlu2 %v3815_v43, %s4063_s23 }
0x1928   :  { %v1095_v46 = vpop.permute.xlu2 %1094 }
0x1929   :  { %v1097_v48 = vmul.f32 %v1095_v46, %v1078_v38 }
0x192b   :  { %v1098_v20 = vpack.c.bf16 %v1097_v48, %v1097_v48  ;;  %v790_v48 = vadd.f32 %v4289_v2, %v4340_v60 }
0x192d   :  { %1101 = vrot.lane.b32.xlu0 %v1098_v20, %s4066_s7 }
0x199f   :  { %v1102_v47 = vpop.permute.xlu0 %1101 }
0x19a0   :  { %3510 = vmatmul.msk.bf16.vlgmr.msra.gmra.mxu0 %vm194_vm7, %v1102_v47 }
0x1a1d   :  { %v1115_v50 = vpop.f32.mrf.mxu0 }
0x1a1e   :  { %v1119_v51 = vadd.f32 %v1115_v50, %v644_v49 }
0x1a20   :  { %3816 = vtanh.f32 %v1119_v51  ;;  %v3511_v54 = vmul.f32 -1.442695, %v1119_v51 }
0x1a22   :  { %3818 = vpow2.f32 %v3511_v54 }
0x1a25   :  { %v1117_v53 = vpop.f32.mrf.mxu0 }
0x1a26   :  { %v3817_v44 = vpop.eup %3816 }
0x1a27   :  { %1142 = vrot.lane.b32.xlu1 %v3817_v44, %s4063_s23 }
0x1a28   :  { %v3819_v4 = vpop.eup %3818 }
0x1a29   :  { %v1123_v55 = vadd.f32 1.0, %v3819_v4 }
0x1a2b   :  { %3820 = vrcp.f32 %v1123_v55  ;;  %v1135_v1 = vand.u32 2147483648, %v1123_v55  ;;  %vm1129_vm9 = vweird.f32 %v1123_v55  ;;  %v1133_v11 = vand.u32 2147483647, %v1123_v55 }
0x1a2d   :  { %v1136_v63 = vor.u32 1.1754944e-38, %v1135_v1  ;;  %vm1134_vm11 = vcmp.eq.f32.partialorder %v1133_v11, 8.507059e+37 }
0x1a31   :  { %v3821_v56 = vpop.eup %3820 }
0x1a32   :  { %v1125_v58 = vmul.f32 %v3821_v56, %v1123_v55  ;;  %vm1130_vm8 = vweird.f32 %v3821_v56 }
0x1a33   :  { %vm1131_vm10 = vmor %vm1129_vm9, %vm1130_vm8  ;;  %vm1335_vm8 = vcmask 31744   ;;  %vm1359_vm9 = vcmask 1043456  }
0x1a34   :  { %v1126_v61 = vsub.f32 1.0, %v1125_v58 }
0x1a36   :  { %v1127_v62 = vmul.f32 %v3821_v56, %v1126_v61 }
0x1a38   :  { %v1128_v0 = vadd.f32 %v3821_v56, %v1127_v62 }
0x1a3a   :  { %v1132_v45 = vsel %vm1131_vm10, %v3821_v56, %v1128_v0 }
0x1a3b   :  { %v1137_v7 = vsel %vm1134_vm11, %v1136_v63, %v1132_v45 }
0x1a3c   :  { %v1140_v8 = vmul.f32 %v1137_v7, %v1091_v42 }
0x1a99   :  { %v1143_v6 = vpop.permute.xlu1 %1142 }
0x1a9a   :  { %v1145_v13 = vmul.f32 %v1143_v6, %v1137_v7 }
0x1a9c   :  { %1147 = vrot.lane.b32.xlu2 %v1145_v13, %s4066_s7  ;;  %v3676_v13 = vld [vmem:[#allocation4 + $0x50] sm:$0xff] }
0x1a9d   :  { %1306 = vmatpush.bf16.msrb.mxu1 %v3676_v13  ;;  %v3708_v13 = vld [vmem:[%s4902_s3 + $0x4] ss:$0 sm:$0xff] }
0x1af6   :  { %v1148_v12 = vpop.permute.xlu2 %1147 }
0x1af7   :  { %v1150_v14 = vadd.f32 %v1148_v12, %v1140_v8  ;;  %v3675_v8 = vld [vmem:[#allocation4 + $0x48] sm:$0xff] }
0x1af8   :  { %1307 = vmatpush.bf16.msrb.mxu1 %v3675_v8 }
0x1af9   :  { %3822 = vtanh.f32 %v1150_v14 }
0x1aff   :  { %v3823_v15 = vpop.eup %3822 }
0x1b00   :  { %1153 = vrot.lane.b32.xlu0 %v3823_v15, %s4063_s23 }
0x1b72   :  { %v1154_v17 = vpop.permute.xlu0 %1153 }
0x1b73   :  { %v1156_v59 = vmul.f32 %v1154_v17, %v1137_v7  ;;  %v4034_v17 = vld [vmem:[%s4899_s0] sm:$0xff] }
0x1b75   :  { %v1157_v3 = vpack.c.bf16 %v1156_v59, %v1156_v59  ;;  %v1331_v59 = vpack.c.bf16 %v4034_v17, %v4034_v17 }
0x1b77   :  { %1160 = vrot.lane.b32.xlu1 %v1157_v3, %s4066_s7  ;;  %v1317_v3 = vld [vmem:[%s4900_s1] sm:$0xff] }
0x1be9   :  { %v1161_v18 = vpop.permute.xlu1 %1160 }
0x1bea   :  { %3512 = vmatmul.msk.bf16.vlgmr.msrb.gmra.mxu2 %vm194_vm7, %v1161_v18  ;;  %v1385_v18 = vld [vmem:[#allocation4 + $0x88] sm:$0x3] }
0x1c6d   :  { %v1174_v21 = vpop.f32.mrf.mxu2 }
0x1c6e   :  { %v1178_v22 = vadd.f32 %v1174_v21, %v717_v19  ;;  %v1387_v19 = vsel %vm75_vm0, %v1385_v18, 0  ;;  %v1423_v21 = vld [vmem:[#allocation4 + $0x70] sm:$0x3] }
0x1c6f   :  { %1396 = vmatpush.bf16.msra.mxu3 %v1387_v19 }
0x1c70   :  { %3824 = vtanh.f32 %v1178_v22  ;;  %v3513_v5 = vmul.f32 -1.442695, %v1178_v22  ;;  %v1434_v22 = vunpack.c.l.b16 %v1423_v21  ;;  %v4427_v21 = vld [vmem:[#allocation4 + $0x98] sm:$0xff] }
0x1c72   :  { %3826 = vpow2.f32 %v3513_v5  ;;  %v3677_v5 = vld [vmem:[#allocation4 + $0x68] sm:$0xff] }
0x1c75   :  { %v1176_v23 = vpop.f32.mrf.mxu2 }
0x1c76   :  { %v3825_v24 = vpop.eup %3824  ;;  %v1436_v23 = vpack.c.b16 %v1434_v22, %v1434_v22  ;;  %v4430_v22 = vld [vmem:[#allocation4 + $0x90] sm:$0xff] }
0x1c77   :  { %1201 = vrot.lane.b32.xlu2 %v3825_v24, %s4063_s23 }
0x1c78   :  { %v3827_v25 = vpop.eup %3826  ;;  %v1442_v24 = vsel %vm75_vm0, %v1436_v23, 0 }
0x1c79   :  { %v1182_v26 = vadd.f32 1.0, %v3827_v25 }
0x1c7b   :  { %3828 = vrcp.f32 %v1182_v26  ;;  %v1194_v32 = vand.u32 2147483648, %v1182_v26  ;;  %vm1188_vm13 = vweird.f32 %v1182_v26  ;;  %v1192_v10 = vand.u32 2147483647, %v1182_v26 }
0x1c7d   :  { %v1195_v33 = vor.u32 1.1754944e-38, %v1194_v32  ;;  %vm1193_vm15 = vcmp.eq.f32.partialorder %v1192_v10, 8.507059e+37 }
0x1c81   :  { %v3829_v27 = vpop.eup %3828 }
0x1c82   :  { %v1184_v28 = vmul.f32 %v3829_v27, %v1182_v26  ;;  %vm1189_vm12 = vweird.f32 %v3829_v27 }
0x1c83   :  { %vm1190_vm14 = vmor %vm1188_vm13, %vm1189_vm12 }
0x1c84   :  { %v1185_v57 = vsub.f32 1.0, %v1184_v28 }
0x1c86   :  { %v1186_v52 = vmul.f32 %v3829_v27, %v1185_v57  ;;  %v1328_v57 = vld [vmem:[#allocation4 + $0x58] sm:$0xf] }
0x1c88   :  { %v1187_v29 = vadd.f32 %v3829_v27, %v1186_v52  ;;  %v1330_v52 = vld [vmem:[#allocation4 + $0x60] sm:$0x3] }
0x1c8a   :  { %v1191_v34 = vsel %vm1190_vm14, %v3829_v27, %v1187_v29  ;;  %v4035_v27 = vld [vmem:[%s4899_s0 + $0x30] sm:$0xff]  ;;  %v1361_v29 = vsel %vm1359_vm9, %v1328_v57, 0 }
0x1c8b   :  { %v1196_v35 = vsel %vm1193_vm15, %v1195_v33, %v1191_v34  ;;  %v1481_v28 = vpack.c.bf16 %v4035_v27, %v4035_v27  ;;  %1370 = vmatpush.bf16.msra.mxu2 %v1361_v29 }
0x1c8c   :  { %v1199_v37 = vmul.f32 %v1196_v35, %v1150_v14 }
0x1cd1   :  { %v1202_v30 = vpop.permute.xlu2 %1201 }
0x1cd2   :  { %v1204_v36 = vmul.f32 %v1202_v30, %v1196_v35 }
0x1cd4   :  { %1206 = vrot.lane.b32.xlu0 %v1204_v36, %s4066_s7 }
0x1d46   :  { %v1207_v38 = vpop.permute.xlu0 %1206 }
0x1d47   :  { %v1209_v39 = vadd.f32 %v1207_v38, %v1199_v37 }
0x1d49   :  { %3830 = vtanh.f32 %v1209_v39 }
0x1d4f   :  { %v3831_v40 = vpop.eup %3830 }
0x1d50   :  { %1212 = vrot.lane.b32.xlu1 %v3831_v40, %s4063_s23 }
0x1dc2   :  { %v1213_v41 = vpop.permute.xlu1 %1212 }
0x1dc3   :  { %v1215_v42 = vmul.f32 %v1213_v41, %v1196_v35 }
0x1dc5   :  { %v1216_v43 = vpack.c.bf16 %v1215_v42, %v1215_v42  ;;  %v3678_v42 = vld [vmem:[#allocation4 + $0x78] sm:$0xff] }
0x1dc6   :  { %1474 = vmatpush.bf16.msrb.mxu2 %v3678_v42 }
0x1dc7   :  { %1219 = vrot.lane.b32.xlu2 %v1216_v43, %s4066_s7 }
0x1e21   :  { %v1220_v46 = vpop.permute.xlu2 %1219 }
0x1e22   :  { %3514 = vmatmul.msk.bf16.vlgmr.msrb.gmra.mxu3 %vm194_vm7, %v1220_v46 }
0x1e23   :  { %1491 = vmatpush.bf16.msrb.mxu3 %v1442_v24 }
0x1e27   :  { %1492 = vmatpush.bf16.msrb.mxu3 %v3677_v5 }
0x1ea5   :  { %v1233_v20 = vpop.f32.mrf.mxu3 }
0x1ea6   :  { %v1237_v47 = vadd.f32 %v1233_v20, %v790_v48 }
0x1ea8   :  { %3832 = vtanh.f32 %v1237_v47  ;;  %v3515_v51 = vmul.f32 -1.442695, %v1237_v47 }
0x1eaa   :  { %3834 = vpow2.f32 %v3515_v51  ;;  %v3706_v51 = vld [vmem:[%s4902_s3 + $0x5] ss:$0 sm:$0xff] }
0x1ead   :  { %v1235_v49 = vpop.f32.mrf.mxu3 }
0x1eae   :  { %v3833_v50 = vpop.eup %3832 }
0x1eaf   :  { %1260 = vrot.lane.b32.xlu0 %v3833_v50, %s4063_s23 }
0x1eb0   :  { %v3835_v53 = vpop.eup %3834 }
0x1eb1   :  { %v1241_v44 = vadd.f32 1.0, %v3835_v53 }
0x1eb3   :  { %3836 = vrcp.f32 %v1241_v44  ;;  %v1253_v61 = vand.u32 2147483648, %v1241_v44  ;;  %vm1247_vm4 = vweird.f32 %v1241_v44  ;;  %v1251_v2 = vand.u32 2147483647, %v1241_v44 }
0x1eb5   :  { %v1254_v62 = vor.u32 1.1754944e-38, %v1253_v61  ;;  %vm1252_vm6 = vcmp.eq.f32.partialorder %v1251_v2, 8.507059e+37 }
0x1eb9   :  { %v3837_v54 = vpop.eup %3836 }
0x1eba   :  { %v1243_v4 = vmul.f32 %v3837_v54, %v1241_v44  ;;  %vm1248_vm3 = vweird.f32 %v3837_v54 }
0x1ebb   :  { %vm1249_vm5 = vmor %vm1247_vm4, %vm1248_vm3 }
0x1ebc   :  { %v1244_v55 = vsub.f32 1.0, %v1243_v4 }
0x1ebe   :  { %v1245_v56 = vmul.f32 %v3837_v54, %v1244_v55 }
0x1ec0   :  { %v1246_v58 = vadd.f32 %v3837_v54, %v1245_v56 }
0x1ec2   :  { %v1250_v60 = vsel %vm1249_vm5, %v3837_v54, %v1246_v58 }
0x1ec3   :  { %v1255_v1 = vsel %vm1252_vm6, %v1254_v62, %v1250_v60 }
0x1ec4   :  { %v1258_v45 = vmul.f32 %v1255_v1, %v1209_v39  ;;  %v1384_v39 = vld [vmem:[#allocation4 + $0x80] sm:$0xf] }
0x1ec5   :  { %v1403_v40 = vsel %vm1359_vm9, %v1384_v39, 0 }
0x1ec6   :  { %1412 = vmatpush.bf16.msra.mxu1 %v1403_v40 }
0x1f21   :  { %v1261_v0 = vpop.permute.xlu0 %1260 }
0x1f22   :  { %v1263_v11 = vmul.f32 %v1261_v0, %v1255_v1 }
0x1f24   :  { %1265 = vrot.lane.b32.xlu1 %v1263_v11, %s4066_s7 }
0x1f2c   :  { %1319 = vrot.lane.b32.xlu1 %v1317_v3, %s4068_s27 }
0x1f96   :  { %v1266_v63 = vpop.permute.xlu1 %1265 }
0x1f97   :  { %v1268_v6 = vadd.f32 %v1266_v63, %v1258_v45 }
0x1f99   :  { %3838 = vtanh.f32 %v1268_v6  ;;  %v4070_v6 = vmov 16  }
0x1f9a   :  { %3700 = vset.pattern.permute.xlu1 %v4070_v6  ;;  %3701 = vset.pattern.permute.xlu0 %v4070_v6 }
0x1f9e   :  { %v1320_v30 = vpop.permute.xlu1 %1319 }
0x1f9f   :  { %v3839_v7 = vpop.eup %3838 }
0x1fa0   :  { %1271 = vrot.lane.b32.xlu2 %v3839_v7, %s4063_s23 }
0x1ffa   :  { %v1272_v12 = vpop.permute.xlu2 %1271 }
0x1ffb   :  { %v1274_v14 = vmul.f32 %v1272_v12, %v1255_v1 }
0x1ffd   :  { %v1279_v15 = vpack.c.bf16 %v1274_v14, %v1274_v14 }
0x1fff   :  { %1283 = vrot.lane.b32.xlu0 %v1279_v15, %s4066_s7 }
0x2007   :  { %1333 = vrot.lane.b32.xlu0 %v1331_v59, %s4067_s2 }
0x2071   :  { %v1284_v25 = vpop.permute.xlu0 %1283 }
0x2072   :  { %3524 = vmatmul.msk.bf16.vlgmr.msrb.gmra.mxu1 %vm194_vm7, %v1284_v25 }
0x2073   :  { %1536 = vmatpush.bf16.msrb.mxu1 %v3678_v42 }
0x2079   :  { %v1334_v26 = vpop.permute.xlu0 %1333 }
0x207a   :  { %3527 = vmatmul.msk.bf16.vlgmr.msra.gmra.mxu3 %vm1335_vm8, %v1334_v26 }
0x207b   :  { %1908 = vmatpush.bf16.msra.mxu3 %v4427_v21 }
0x207f   :  { %1909 = vmatpush.bf16.msra.mxu3 %v4430_v22 }
0x208a   :  { %3539 = vmatmul.msk.bf16.vlgmr.msrb.gmra.mxu3 %vm62_vm1, %v4120_v9  ;;  %v1340_v9 = vsel %vm75_vm0, %v1330_v52, 0  ;;  %vm1355_vm0 = vcmask 64512  }
0x208b   :  { %1349 = vmatpush.bf16.msrb.mxu0 %v1340_v9  ;;  %2054 = vmatpush.bf16.msrb.mxu3 %v4427_v21 }
0x208e   :  { %3525 = vmatmul.msk.bf16.vlgmr.msrb.gmra.mxu0 %vm1335_vm8, %v1334_v26 }
0x208f   :  { %1450 = vmatpush.bf16.msra.mxu0 %v1442_v24  ;;  %2055 = vmatpush.bf16.msrb.mxu3 %v4430_v22 }
0x2093   :  { %1451 = vmatpush.bf16.msra.mxu0 %v3677_v5 }
0x2097   :  { %1603 = vmatpush.bf16.msrb.mxu0 %v4427_v21 }
0x209a   :  { %3540 = vmatmul.msk.bf16.gmra.mxu3 %vm62_vm1, %v4179_v16  ;;  %v3705_v16 = vld [vmem:[%s4902_s3 + $0x3] ss:$0 sm:$0xff] }
0x209b   :  { %1604 = vmatpush.bf16.msrb.mxu0 %v4430_v22 }
0x20aa   :  { %3541 = vmatmul.msk.bf16.gmra.mxu3 %vm62_vm1, %v4218_v31 }
0x20ba   :  { %3542 = vmatmul.msk.bf16.gmra.mxu3 %vm62_vm1, %v1481_v28 }
0x20ef   :  { %v1309_v31 = vpop.f32.mrf.mxu1 }
0x20f0   :  { %v1310_v32 = vadd.f32 %v3705_v16, %v1309_v31 }
0x20f2   :  { %1313 = vst.msk [vmem:[%s4903_s4] sm:$0xff] %vm122_vm2, %v1310_v32  ;;  %v1314_v10 = vmul.f32 0.5, %v1310_v32 }
0x20f4   :  { %v1315_v34 = vmul.f32 1.442695, %v1314_v10  ;;  %v3707_v10 = vld [vmem:[%s4902_s3 + $0x6] ss:$0 sm:$0xff] }
0x20f6   :  { %3840 = vpow2.f32 %v1315_v34 }
0x20f7   :  { %v1311_v33 = vpop.f32.mrf.mxu1 }
0x20fc   :  { %v3841_v35 = vpop.eup %3840 }
0x20fd   :  { %v1322_v36 = vmul.f32 %v3841_v35, %v1320_v30  ;;  %v4407_v37 = vpop.f32.mrf.mxu3 }
0x20ff   :  { %1324 = vrot.lane.b32.xlu2 %v1322_v36, %s4069_s8 }
0x2105   :  { %v1400_v38 = vpop.f32.mrf.mxu3 }
0x210b   :  { %v1351_v60 = vpop.f32.mrf.mxu0 }
0x210d   :  { %v1494_v41 = vpop.f32.mrf.mxu3 }
0x210e   :  { %v1495_v53 = vadd.f32 %v3706_v51, %v1494_v41 }
0x2113   :  { %v1353_v1 = vpop.f32.mrf.mxu0 }
0x2115   :  { %v1496_v43 = vpop.f32.mrf.mxu3 }
0x2116   :  { %v1497_v44 = vadd.f32 %v3706_v51, %v1496_v43 }
0x2118   :  { %v1513_v4 = vpack.c.bf16 %v1497_v44, %v1495_v53 }
0x211d   :  { %v1499_v46 = vpop.f32.mrf.mxu3 }
0x211e   :  { %v1500_v56 = vadd.f32 %v3706_v51, %v1499_v46 }
0x2125   :  { %v1501_v48 = vpop.f32.mrf.mxu3 }
0x2126   :  { %v1502_v58 = vadd.f32 %v3706_v51, %v1501_v48 }
0x2128   :  { %v1514_v2 = vpack.c.bf16 %v1502_v58, %v1500_v56  ;;  %v4469_v58 = vld [vmem:[#allocation4 + $0xa8] sm:$0xff] }
0x212d   :  { %v1504_v50 = vpop.f32.mrf.mxu3 }
0x212e   :  { %v1505_v62 = vadd.f32 %v3706_v51, %v1504_v50 }
0x2135   :  { %v1506_v54 = vpop.f32.mrf.mxu3 }
0x2136   :  { %v1507_v0 = vadd.f32 %v3706_v51, %v1506_v54 }
0x2138   :  { %v1515_v11 = vpack.c.bf16 %v1507_v0, %v1505_v62 }
0x213d   :  { %v1509_v55 = vpop.f32.mrf.mxu3 }
0x213e   :  { %v1510_v45 = vadd.f32 %v3706_v51, %v1509_v55 }
0x2140   :  { %v1516_v63 = vpack.c.bf16 %v1510_v45, %v1510_v45 }
0x2145   :  { %v1511_v61 = vpop.f32.mrf.mxu3 }
0x2146   :  { %v4472_v61 = vld [vmem:[#allocation4 + $0xa0] sm:$0xff] }
0x2159   :  { %v1325_v20 = vpop.permute.xlu2 %1324 }
0x215a   :  { %v1327_v47 = vadd.f32 %v1325_v20, %v1310_v32 }
0x215c   :  { %v1329_v49 = vpack.c.bf16 %v1327_v47, %v1327_v47 }
0x215e   :  { %3526 = vmatmul.msk.bf16.vlgmr.msra.gmra.mxu2 %vm1355_vm0, %v1329_v49  ;;  %3528 = vmatmul.msk.bf16.vlgmr.msra.gmra.mxu1 %vm1355_vm0, %v1329_v49 }
0x215f   :  { %1674 = vmatpush.bf16.msra.mxu2 %v4469_v58  ;;  %1966 = vmatpush.bf16.msra.mxu1 %v4469_v58 }
0x2163   :  { %1675 = vmatpush.bf16.msra.mxu2 %v4472_v61  ;;  %1967 = vmatpush.bf16.msra.mxu1 %v4472_v61 }
0x216e   :  { %3543 = vmatmul.msk.bf16.vlgmr.msrb.gmra.mxu1 %vm122_vm2, %v1513_v4 }
0x216f   :  { %2112 = vmatpush.bf16.msrb.mxu1 %v4469_v58 }
0x2173   :  { %2113 = vmatpush.bf16.msrb.mxu1 %v4472_v61 }
0x217e   :  { %3544 = vmatmul.msk.bf16.gmra.mxu1 %vm122_vm2, %v1514_v2 }
0x218e   :  { %3545 = vmatmul.msk.bf16.gmra.mxu1 %vm122_vm2, %v1515_v11 }
0x219e   :  { %3546 = vmatmul.msk.bf16.gmra.mxu1 %vm122_vm2, %v1516_v63 }
0x21db   :  { %v1414_v7 = vpop.f32.mrf.mxu1 }
0x21dc   :  { %v1415_v32 = vadd.f32 %v1414_v7, %v4407_v37 }
0x21de   :  { %v4462_v34 = vadd.f32 %v3707_v10, %v1415_v32 }
0x21e1   :  { %v1372_v8 = vpop.f32.mrf.mxu2 }
0x21e2   :  { %v1373_v12 = vadd.f32 %v1372_v8, %v1351_v60 }
0x21e3   :  { %v1416_v14 = vpop.f32.mrf.mxu1 }
0x21e4   :  { %v1378_v15 = vadd.f32 %v3708_v13, %v1373_v12 }
0x21e6   :  { %v1427_v17 = vpack.c.bf16 %v1378_v15, %v1378_v15  ;;  %1381 = vperm.xlu1 %3700, %v1378_v15  }
0x21e8   :  { %3533 = vmatmul.msk.bf16.vlgmr.msra.gmra.mxu0 %vm62_vm1, %v1427_v17 }
0x21e9   :  { %v1374_v59 = vpop.f32.mrf.mxu2  ;;  %1689 = vmatpush.bf16.msra.mxu0 %v4427_v21 }
0x21eb   :  { %v4421_v3 = vpop.f32.mrf.mxu1 }
0x21ec   :  { %v1557_v1 = vadd.f32 %v4421_v3, %v4462_v34 }
0x21ed   :  { %1690 = vmatpush.bf16.msra.mxu0 %v4430_v22 }
0x21f3   :  { %v4423_v18 = vpop.f32.mrf.mxu1 }
0x21fb   :  { %v4425_v19 = vpop.f32.mrf.mxu1 }
0x2203   :  { %v4435_v23 = vpop.f32.mrf.mxu1 }
0x220b   :  { %v4441_v24 = vpop.f32.mrf.mxu1 }
0x2213   :  { %v4443_v5 = vpop.f32.mrf.mxu1 }
0x221b   :  { %v4445_v25 = vpop.f32.mrf.mxu1 }
0x2223   :  { %v1555_v26 = vpop.f32.mrf.mxu1 }
0x2258   :  { %v4447_v27 = vpop.permute.xlu1 %1381 }
0x2259   :  { %v4451_v28 = vpack.c.bf16 %v4447_v27, %v4447_v27 }
0x225b   :  { %3555 = vmatmul.msk.bf16.vlgmr.msrb.gmra.mxu0 %vm194_vm7, %v4451_v28 }
0x225c   :  { %1762 = vmatpush.bf16.msrb.mxu0 %v4427_v21 }
0x2260   :  { %1763 = vmatpush.bf16.msrb.mxu0 %v4430_v22 }
0x2265   :  { %v1453_v57 = vpop.f32.mrf.mxu0 }
0x2266   :  { %v1454_v52 = vadd.f32 %v3706_v51, %v1453_v57 }
0x2268   :  { %v1457_v29 = vpack.c.bf16 %v1454_v52, %v1454_v52 }
0x226a   :  { %3538 = vmatmul.msk.bf16.vlgmr.msrb.gmra.mxu2 %vm122_vm2, %v1457_v29 }
0x226b   :  { %1747 = vmatpush.bf16.msrb.mxu2 %v4469_v58 }
0x226d   :  { %v1455_v9 = vpop.f32.mrf.mxu0 }
0x226f   :  { %1748 = vmatpush.bf16.msrb.mxu2 %v4472_v61 }
0x22d8   :  { %v1606_v16 = vpop.f32.mrf.mxu0 }
0x22e0   :  { %v1608_v31 = vpop.f32.mrf.mxu0 }
0x22ed   :  { %v1476_v33 = vpop.f32.mrf.mxu2 }
0x22ee   :  { %v1477_v30 = vadd.f32 %v1476_v33, %v4462_v34 }
0x22f0   :  { %v1610_v35 = vadd.f32 %v1606_v16, %v1477_v30 }
0x22f2   :  { %3842 = vtanh.f32 %v1610_v35  ;;  %v3556_v39 = vmul.f32 -1.442695, %v1610_v35 }
0x22f4   :  { %3844 = vpow2.f32 %v3556_v39 }
0x22f5   :  { %v1478_v36 = vpop.f32.mrf.mxu2 }
0x22f8   :  { %v3843_v38 = vpop.eup %3842 }
0x22f9   :  { %1633 = vrot.lane.b32.xlu2 %v3843_v38, %s4063_s23 }
0x22fa   :  { %v3845_v40 = vpop.eup %3844 }
0x22fb   :  { %v1614_v41 = vadd.f32 1.0, %v3845_v40 }
0x22fd   :  { %3846 = vrcp.f32 %v1614_v41  ;;  %v1626_v20 = vand.u32 2147483648, %v1614_v41  ;;  %vm1620_vm10 = vweird.f32 %v1614_v41  ;;  %v1624_v47 = vand.u32 2147483647, %v1614_v41 }
0x22ff   :  { %v1627_v50 = vor.u32 1.1754944e-38, %v1626_v20  ;;  %vm1625_vm12 = vcmp.eq.f32.partialorder %v1624_v47, 8.507059e+37 }
0x2303   :  { %v3847_v37 = vpop.eup %3846 }
0x2304   :  { %v1616_v42 = vmul.f32 %v3847_v37, %v1614_v41  ;;  %vm1621_vm1 = vweird.f32 %v3847_v37  ;;  %v1559_v41 = vadd.f32 %v4423_v18, %v4462_v34 }
0x2305   :  { %vm1622_vm11 = vmor %vm1620_vm10, %vm1621_vm1 }
0x2306   :  { %v1617_v43 = vsub.f32 1.0, %v1616_v42 }
0x2308   :  { %v1618_v46 = vmul.f32 %v3847_v37, %v1617_v43 }
0x230a   :  { %v1619_v48 = vadd.f32 %v3847_v37, %v1618_v46 }
0x230c   :  { %v1623_v49 = vsel %vm1622_vm11, %v3847_v37, %v1619_v48 }
0x230d   :  { %v1628_v53 = vsel %vm1625_vm12, %v1627_v50, %v1623_v49 }
0x230e   :  { %v1631_v54 = vmul.f32 %v1628_v53, %v4447_v27 }
0x2353   :  { %v1634_v51 = vpop.permute.xlu2 %1633 }
0x2354   :  { %v1636_v44 = vmul.f32 %v1634_v51, %v1628_v53 }
0x2356   :  { %1638 = vrot.lane.b32.xlu0 %v1636_v44, %s4066_s7 }
0x23c8   :  { %v1639_v4 = vpop.permute.xlu0 %1638 }
0x23c9   :  { %v1641_v55 = vadd.f32 %v1639_v4, %v1631_v54 }
0x23cb   :  { %3848 = vtanh.f32 %v1641_v55 }
0x23d1   :  { %v3849_v56 = vpop.eup %3848 }
0x23d2   :  { %1644 = vrot.lane.b32.xlu1 %v3849_v56, %s4063_s23 }
0x2444   :  { %v1645_v2 = vpop.permute.xlu1 %1644 }
0x2445   :  { %v1647_v60 = vmul.f32 %v1645_v2, %v1628_v53 }
0x2447   :  { %v1648_v62 = vpack.c.bf16 %v1647_v60, %v1647_v60 }
0x2449   :  { %1651 = vrot.lane.b32.xlu2 %v1648_v62, %s4066_s7 }
0x24a3   :  { %v1652_v0 = vpop.permute.xlu2 %1651 }
0x24a4   :  { %3565 = vmatmul.msk.bf16.vlgmr.msra.gmra.mxu2 %vm194_vm7, %v1652_v0  ;;  %3566 = vmatmul.msk.bf16.vlgmr.msra.gmra.mxu0 %vm194_vm7, %v1652_v0 }
0x24a5   :  { %1835 = vmatpush.bf16.msra.mxu0 %v4427_v21  ;;  %1820 = vmatpush.bf16.msra.mxu2 %v4469_v58 }
0x24a9   :  { %1836 = vmatpush.bf16.msra.mxu0 %v4430_v22  ;;  %1821 = vmatpush.bf16.msra.mxu2 %v4472_v61 }
0x2521   :  { %v1692_v11 = vpop.f32.mrf.mxu0 }
0x2522   :  { %v1696_v45 = vadd.f32 %v1692_v11, %v1557_v1 }
0x2524   :  { %3850 = vtanh.f32 %v1696_v45  ;;  %v3567_v8 = vmul.f32 -1.442695, %v1696_v45 }
0x2526   :  { %3852 = vpow2.f32 %v3567_v8 }
0x2527   :  { %v4490_v63 = vpop.f32.mrf.mxu2 }
0x2529   :  { %v1694_v6 = vpop.f32.mrf.mxu0 }
0x252a   :  { %v3851_v7 = vpop.eup %3850 }
0x252b   :  { %1719 = vrot.lane.b32.xlu0 %v3851_v7, %s4063_s23 }
0x252c   :  { %v3853_v12 = vpop.eup %3852 }
0x252d   :  { %v1700_v14 = vadd.f32 1.0, %v3853_v12 }
0x252f   :  { %v1679_v13 = vpop.f32.mrf.mxu2  ;;  %3854 = vrcp.f32 %v1700_v14  ;;  %v1712_v57 = vand.u32 2147483648, %v1700_v14  ;;  %vm1706_vm14 = vweird.f32 %v1700_v14  ;;  %v1710_v52 = vand.u32 2147483647, %v1700_v14 }
0x2531   :  { %v1713_v9 = vor.u32 1.1754944e-38, %v1712_v57  ;;  %vm1711_vm3 = vcmp.eq.f32.partialorder %v1710_v52, 8.507059e+37 }
0x2535   :  { %v3855_v15 = vpop.eup %3854 }
0x2536   :  { %v1702_v17 = vmul.f32 %v3855_v15, %v1700_v14  ;;  %vm1707_vm13 = vweird.f32 %v3855_v15  ;;  %v1561_v14 = vadd.f32 %v4425_v19, %v4462_v34 }
0x2537   :  { %vm1708_vm15 = vmor %vm1706_vm14, %vm1707_vm13 }
0x2538   :  { %v1703_v59 = vsub.f32 1.0, %v1702_v17 }
0x253a   :  { %v1704_v26 = vmul.f32 %v3855_v15, %v1703_v59 }
0x253c   :  { %v1705_v3 = vadd.f32 %v3855_v15, %v1704_v26 }
0x253e   :  { %v1709_v29 = vsel %vm1708_vm15, %v3855_v15, %v1705_v3 }
0x253f   :  { %v1714_v31 = vsel %vm1711_vm3, %v1713_v9, %v1709_v29 }
0x2540   :  { %v1717_v10 = vmul.f32 %v1714_v31, %v1641_v55 }
0x259d   :  { %v1720_v16 = vpop.permute.xlu0 %1719 }
0x259e   :  { %v1722_v32 = vmul.f32 %v1720_v16, %v1714_v31 }
0x25a0   :  { %1724 = vrot.lane.b32.xlu1 %v1722_v32, %s4066_s7 }
0x2612   :  { %v1725_v33 = vpop.permute.xlu1 %1724 }
0x2613   :  { %v1727_v30 = vadd.f32 %v1725_v33, %v1717_v10 }
0x2615   :  { %3856 = vtanh.f32 %v1727_v30 }
0x261b   :  { %v3857_v35 = vpop.eup %3856 }
0x261c   :  { %1730 = vrot.lane.b32.xlu2 %v3857_v35, %s4063_s23 }
0x2676   :  { %v1731_v36 = vpop.permute.xlu2 %1730 }
0x2677   :  { %v1733_v38 = vmul.f32 %v1731_v36, %v1714_v31 }
0x2679   :  { %v1734_v39 = vpack.c.bf16 %v1733_v38, %v1733_v38 }
0x267b   :  { %1736 = vrot.lane.b32.xlu0 %v1734_v39, %s4066_s7 }
0x26ed   :  { %v1737_v40 = vpop.permute.xlu0 %1736 }
0x26ee   :  { %3568 = vmatmul.msk.bf16.vlgmr.msrb.gmra.mxu2 %vm194_vm7, %v1737_v40  ;;  %3569 = vmatmul.msk.bf16.vlgmr.msrb.gmra.mxu0 %vm194_vm7, %v1737_v40 }
0x26ef   :  { %1893 = vmatpush.bf16.msrb.mxu2 %v4469_v58  ;;  %1981 = vmatpush.bf16.msrb.mxu0 %v4427_v21 }
0x26f3   :  { %1894 = vmatpush.bf16.msrb.mxu2 %v4472_v61  ;;  %1982 = vmatpush.bf16.msrb.mxu0 %v4430_v22 }
0x276b   :  { %v1765_v37 = vpop.f32.mrf.mxu0 }
0x276c   :  { %v1769_v42 = vadd.f32 %v1765_v37, %v1559_v41 }
0x276e   :  { %3858 = vtanh.f32 %v1769_v42  ;;  %v3570_v47 = vmul.f32 -1.442695, %v1769_v42 }
0x2770   :  { %3860 = vpow2.f32 %v3570_v47  ;;  %v1563_v47 = vadd.f32 %v4435_v23, %v4462_v34 }
0x2771   :  { %v4504_v43 = vpop.f32.mrf.mxu2 }
0x2773   :  { %v1767_v46 = vpop.f32.mrf.mxu0 }
0x2774   :  { %v3859_v48 = vpop.eup %3858 }
0x2775   :  { %1792 = vrot.lane.b32.xlu1 %v3859_v48, %s4063_s23 }
0x2776   :  { %v3861_v49 = vpop.eup %3860 }
0x2777   :  { %v1773_v50 = vadd.f32 1.0, %v3861_v49 }
0x2779   :  { %v1752_v20 = vpop.f32.mrf.mxu2  ;;  %3862 = vrcp.f32 %v1773_v50  ;;  %v1785_v4 = vand.u32 2147483648, %v1773_v50  ;;  %vm1779_vm5 = vweird.f32 %v1773_v50  ;;  %v1783_v55 = vand.u32 2147483647, %v1773_v50 }
0x277b   :  { %v1786_v2 = vor.u32 1.1754944e-38, %v1785_v4  ;;  %vm1784_vm8 = vcmp.eq.f32.partialorder %v1783_v55, 8.507059e+37 }
0x277f   :  { %v3863_v51 = vpop.eup %3862 }
0x2780   :  { %v1775_v53 = vmul.f32 %v3863_v51, %v1773_v50  ;;  %vm1780_vm4 = vweird.f32 %v3863_v51 }
0x2781   :  { %vm1781_vm6 = vmor %vm1779_vm5, %vm1780_vm4 }
0x2782   :  { %v1776_v44 = vsub.f32 1.0, %v1775_v53 }
0x2784   :  { %v1777_v54 = vmul.f32 %v3863_v51, %v1776_v44 }
0x2786   :  { %v1778_v18 = vadd.f32 %v3863_v51, %v1777_v54 }
0x2788   :  { %v1782_v56 = vsel %vm1781_vm6, %v3863_v51, %v1778_v18 }
0x2789   :  { %v1787_v62 = vsel %vm1784_vm8, %v1786_v2, %v1782_v56 }
0x278a   :  { %v1790_v1 = vmul.f32 %v1787_v62, %v1727_v30 }
0x27e7   :  { %v1793_v60 = vpop.permute.xlu1 %1792 }
0x27e8   :  { %v1795_v0 = vmul.f32 %v1793_v60, %v1787_v62 }
0x27ea   :  { %1797 = vrot.lane.b32.xlu2 %v1795_v0, %s4066_s7 }
0x2844   :  { %v1798_v11 = vpop.permute.xlu2 %1797 }
0x2845   :  { %v1800_v45 = vadd.f32 %v1798_v11, %v1790_v1 }
0x2847   :  { %3864 = vtanh.f32 %v1800_v45 }
0x284d   :  { %v3865_v6 = vpop.eup %3864 }
0x284e   :  { %1803 = vrot.lane.b32.xlu0 %v3865_v6, %s4063_s23 }
0x28c0   :  { %v1804_v7 = vpop.permute.xlu0 %1803 }
0x28c1   :  { %v1806_v13 = vmul.f32 %v1804_v7, %v1787_v62 }
0x28c3   :  { %v1807_v8 = vpack.c.bf16 %v1806_v13, %v1806_v13 }
0x28c5   :  { %1809 = vrot.lane.b32.xlu1 %v1807_v8, %s4066_s7 }
0x2937   :  { %v1810_v12 = vpop.permute.xlu1 %1809 }
0x2938   :  { %3571 = vmatmul.msk.bf16.vlgmr.msra.gmra.mxu2 %vm194_vm7, %v1810_v12  ;;  %3572 = vmatmul.msk.bf16.vlgmr.msra.gmra.mxu0 %vm194_vm7, %v1810_v12 }
0x2939   :  { %2039 = vmatpush.bf16.msra.mxu2 %v4469_v58  ;;  %2127 = vmatpush.bf16.msra.mxu0 %v4427_v21 }
0x293d   :  { %2040 = vmatpush.bf16.msra.mxu2 %v4472_v61  ;;  %2128 = vmatpush.bf16.msra.mxu0 %v4430_v22 }
0x29b5   :  { %v1838_v15 = vpop.f32.mrf.mxu0 }
0x29b6   :  { %v1842_v17 = vadd.f32 %v1838_v15, %v1561_v14 }
0x29b8   :  { %3866 = vtanh.f32 %v1842_v17  ;;  %v3573_v52 = vmul.f32 -1.442695, %v1842_v17 }
0x29ba   :  { %3868 = vpow2.f32 %v3573_v52 }
0x29bb   :  { %v4518_v59 = vpop.f32.mrf.mxu2 }
0x29bd   :  { %v1840_v26 = vpop.f32.mrf.mxu0 }
0x29be   :  { %v3867_v3 = vpop.eup %3866 }
0x29bf   :  { %1865 = vrot.lane.b32.xlu2 %v3867_v3, %s4063_s23  ;;  %v1565_v3 = vadd.f32 %v4441_v24, %v4462_v34 }
0x29c0   :  { %v3869_v21 = vpop.eup %3868 }
0x29c1   :  { %v1846_v29 = vadd.f32 1.0, %v3869_v21 }
0x29c3   :  { %v1825_v57 = vpop.f32.mrf.mxu2  ;;  %3870 = vrcp.f32 %v1846_v29  ;;  %v1858_v32 = vand.u32 2147483648, %v1846_v29  ;;  %vm1852_vm0 = vweird.f32 %v1846_v29  ;;  %v1856_v10 = vand.u32 2147483647, %v1846_v29 }
0x29c5   :  { %v1859_v30 = vor.u32 1.1754944e-38, %v1858_v32  ;;  %vm1857_vm10 = vcmp.eq.f32.partialorder %v1856_v10, 8.507059e+37 }
0x29c9   :  { %v3871_v9 = vpop.eup %3870 }
0x29ca   :  { %v1848_v22 = vmul.f32 %v3871_v9, %v1846_v29  ;;  %vm1853_vm9 = vweird.f32 %v3871_v9 }
0x29cb   :  { %vm1854_vm1 = vmor %vm1852_vm0, %vm1853_vm9 }
0x29cc   :  { %v1849_v16 = vsub.f32 1.0, %v1848_v22 }
0x29ce   :  { %v1850_v31 = vmul.f32 %v3871_v9, %v1849_v16 }
0x29d0   :  { %v1851_v19 = vadd.f32 %v3871_v9, %v1850_v31 }
0x29d2   :  { %v1855_v33 = vsel %vm1854_vm1, %v3871_v9, %v1851_v19 }
0x29d3   :  { %v1860_v36 = vsel %vm1857_vm10, %v1859_v30, %v1855_v33 }
0x29d4   :  { %v1863_v39 = vmul.f32 %v1860_v36, %v1800_v45 }
0x2a19   :  { %v1866_v35 = vpop.permute.xlu2 %1865 }
0x2a1a   :  { %v1868_v38 = vmul.f32 %v1866_v35, %v1860_v36 }
0x2a1c   :  { %1870 = vrot.lane.b32.xlu0 %v1868_v38, %s4066_s7 }
0x2a8e   :  { %v1871_v40 = vpop.permute.xlu0 %1870 }
0x2a8f   :  { %v1873_v41 = vadd.f32 %v1871_v40, %v1863_v39 }
0x2a91   :  { %3872 = vtanh.f32 %v1873_v41 }
0x2a97   :  { %v3873_v37 = vpop.eup %3872 }
0x2a98   :  { %1876 = vrot.lane.b32.xlu1 %v3873_v37, %s4063_s23 }
0x2b0a   :  { %v1877_v42 = vpop.permute.xlu1 %1876 }
0x2b0b   :  { %v1879_v46 = vmul.f32 %v1877_v42, %v1860_v36 }
0x2b0d   :  { %v1880_v48 = vpack.c.bf16 %v1879_v46, %v1879_v46 }
0x2b0f   :  { %1882 = vrot.lane.b32.xlu2 %v1880_v48, %s4066_s7 }
0x2b69   :  { %v1883_v20 = vpop.permute.xlu2 %1882 }
0x2b6a   :  { %3574 = vmatmul.msk.bf16.vlgmr.msrb.gmra.mxu2 %vm194_vm7, %v1883_v20  ;;  %3575 = vmatmul.msk.bf16.vlgmr.msra.gmra.mxu3 %vm194_vm7, %v1883_v20 }
0x2b6b   :  { %2185 = vmatpush.bf16.msrb.mxu2 %v4469_v58 }
0x2b6f   :  { %2186 = vmatpush.bf16.msrb.mxu2 %v4472_v61 }
0x2bed   :  { %v4530_v49 = vpop.f32.mrf.mxu2  ;;  %v1911_v50 = vpop.f32.mrf.mxu3 }
0x2bee   :  { %v1915_v51 = vadd.f32 %v1911_v50, %v1563_v47 }
0x2bf0   :  { %3874 = vtanh.f32 %v1915_v51  ;;  %v3576_v18 = vmul.f32 -1.442695, %v1915_v51 }
0x2bf2   :  { %3876 = vpow2.f32 %v3576_v18  ;;  %v1567_v18 = vadd.f32 %v4443_v5, %v4462_v34 }
0x2bf5   :  { %v1898_v53 = vpop.f32.mrf.mxu2  ;;  %v1913_v44 = vpop.f32.mrf.mxu3 }
0x2bf6   :  { %v3875_v54 = vpop.eup %3874  ;;  %v4549_v53 = vld [vmem:[#allocation4 + $0xb8] sm:$0xff]  ;;  %v4552_v44 = vld [vmem:[#allocation4 + $0xb0] sm:$0xff] }
0x2bf7   :  { %1938 = vrot.lane.b32.xlu0 %v3875_v54, %s4063_s23  ;;  %2221 = vmatpush.bf16.msra.mxu3 %v4549_v53 }
0x2bf8   :  { %v3877_v4 = vpop.eup %3876 }
0x2bf9   :  { %v1919_v55 = vadd.f32 1.0, %v3877_v4 }
0x2bfb   :  { %3878 = vrcp.f32 %v1919_v55  ;;  %v1931_v60 = vand.u32 2147483648, %v1919_v55  ;;  %vm1925_vm12 = vweird.f32 %v1919_v55  ;;  %v1929_v62 = vand.u32 2147483647, %v1919_v55  ;;  %2222 = vmatpush.bf16.msra.mxu3 %v4552_v44 }
0x2bfd   :  { %v1932_v1 = vor.u32 1.1754944e-38, %v1931_v60  ;;  %vm1930_vm14 = vcmp.eq.f32.partialorder %v1929_v62, 8.507059e+37 }
0x2c01   :  { %v3879_v58 = vpop.eup %3878 }
0x2c02   :  { %v1921_v61 = vmul.f32 %v3879_v58, %v1919_v55  ;;  %vm1926_vm11 = vweird.f32 %v3879_v58 }
0x2c03   :  { %vm1927_vm13 = vmor %vm1925_vm12, %vm1926_vm11 }
0x2c04   :  { %v1922_v56 = vsub.f32 1.0, %v1921_v61 }
0x2c06   :  { %v1923_v2 = vmul.f32 %v3879_v58, %v1922_v56 }
0x2c08   :  { %v1924_v23 = vadd.f32 %v3879_v58, %v1923_v2 }
0x2c0a   :  { %v1928_v0 = vsel %vm1927_vm13, %v3879_v58, %v1924_v23  ;;  %v4573_v23 = vld [vmem:[%s4902_s3 + $0x7] ss:$0 sm:$0xff] }
0x2c0b   :  { %v1933_v45 = vsel %vm1930_vm14, %v1932_v1, %v1928_v0  ;;  %v1678_v60 = vadd.f32 %v4573_v23, %v4490_v63 }
0x2c0c   :  { %v1936_v7 = vmul.f32 %v1933_v45, %v1873_v41 }
0x2c69   :  { %v1939_v11 = vpop.permute.xlu0 %1938 }
0x2c6a   :  { %v1941_v6 = vmul.f32 %v1939_v11, %v1933_v45 }
0x2c6c   :  { %1943 = vrot.lane.b32.xlu1 %v1941_v6, %s4066_s7 }
0x2cde   :  { %v1944_v13 = vpop.permute.xlu1 %1943 }
0x2cdf   :  { %v1946_v8 = vadd.f32 %v1944_v13, %v1936_v7 }
0x2ce1   :  { %3880 = vtanh.f32 %v1946_v8 }
0x2ce7   :  { %v3881_v12 = vpop.eup %3880 }
0x2ce8   :  { %1949 = vrot.lane.b32.xlu2 %v3881_v12, %s4063_s23 }
0x2d42   :  { %v1950_v14 = vpop.permute.xlu2 %1949 }
0x2d43   :  { %v1952_v15 = vmul.f32 %v1950_v14, %v1933_v45 }
0x2d45   :  { %v1953_v17 = vpack.c.bf16 %v1952_v15, %v1952_v15 }
0x2d47   :  { %1955 = vrot.lane.b32.xlu0 %v1953_v17, %s4066_s7 }
0x2db9   :  { %v1956_v26 = vpop.permute.xlu0 %1955 }
0x2dba   :  { %3577 = vmatmul.msk.bf16.vlgmr.msra.gmra.mxu1 %vm194_vm7, %v1956_v26  ;;  %3578 = vmatmul.msk.bf16.vlgmr.msrb.gmra.mxu0 %vm194_vm7, %v1956_v26 }
0x2dbb   :  { %2307 = vmatpush.bf16.msrb.mxu0 %v4549_v53 }
0x2dbf   :  { %2308 = vmatpush.bf16.msrb.mxu0 %v4552_v44 }
0x2e37   :  { %v4540_v57 = vpop.f32.mrf.mxu1  ;;  %v1984_v52 = vpop.f32.mrf.mxu0 }
0x2e38   :  { %v1988_v21 = vadd.f32 %v1984_v52, %v1565_v3 }
0x2e3a   :  { %3882 = vtanh.f32 %v1988_v21  ;;  %v3579_v16 = vmul.f32 -1.442695, %v1988_v21 }
0x2e3c   :  { %3884 = vpow2.f32 %v3579_v16 }
0x2e3f   :  { %v1971_v29 = vpop.f32.mrf.mxu1  ;;  %v1986_v9 = vpop.f32.mrf.mxu0 }
0x2e40   :  { %v3883_v22 = vpop.eup %3882 }
0x2e41   :  { %2011 = vrot.lane.b32.xlu1 %v3883_v22, %s4063_s23 }
0x2e42   :  { %v3885_v31 = vpop.eup %3884 }
0x2e43   :  { %v1992_v19 = vadd.f32 1.0, %v3885_v31 }
0x2e45   :  { %3886 = vrcp.f32 %v1992_v19  ;;  %v2004_v35 = vand.u32 2147483648, %v1992_v19  ;;  %vm1998_vm3 = vweird.f32 %v1992_v19  ;;  %v2002_v36 = vand.u32 2147483647, %v1992_v19 }
0x2e47   :  { %v2005_v39 = vor.u32 1.1754944e-38, %v2004_v35  ;;  %vm2003_vm5 = vcmp.eq.f32.partialorder %v2002_v36, 8.507059e+37 }
0x2e4b   :  { %v3887_v32 = vpop.eup %3886 }
0x2e4c   :  { %v1994_v10 = vmul.f32 %v3887_v32, %v1992_v19  ;;  %vm1999_vm15 = vweird.f32 %v3887_v32 }
0x2e4d   :  { %vm2000_vm4 = vmor %vm1998_vm3, %vm1999_vm15 }
0x2e4e   :  { %v1995_v33 = vsub.f32 1.0, %v1994_v10 }
0x2e50   :  { %v1996_v30 = vmul.f32 %v3887_v32, %v1995_v33 }
0x2e52   :  { %v1997_v24 = vadd.f32 %v3887_v32, %v1996_v30 }
0x2e54   :  { %v2001_v38 = vsel %vm2000_vm4, %v3887_v32, %v1997_v24 }
0x2e55   :  { %v2006_v41 = vsel %vm2003_vm5, %v2005_v39, %v2001_v38 }
0x2e56   :  { %v2009_v42 = vmul.f32 %v2006_v41, %v1946_v8 }
0x2eb3   :  { %v2012_v40 = vpop.permute.xlu1 %2011 }
0x2eb4   :  { %v2014_v37 = vmul.f32 %v2012_v40, %v2006_v41 }
0x2eb6   :  { %2016 = vrot.lane.b32.xlu2 %v2014_v37, %s4066_s7 }
0x2f10   :  { %v2017_v46 = vpop.permute.xlu2 %2016 }
0x2f11   :  { %v4544_v48 = vadd.f32 %v2017_v46, %v2009_v42 }
0x2f13   :  { %3888 = vtanh.f32 %v4544_v48 }
0x2f19   :  { %v3889_v20 = vpop.eup %3888 }
0x2f1a   :  { %2022 = vrot.lane.b32.xlu0 %v3889_v20, %s4063_s23 }
0x2f8c   :  { %v2023_v47 = vpop.permute.xlu0 %2022 }
0x2f8d   :  { %v2025_v50 = vmul.f32 %v2023_v47, %v2006_v41 }
0x2f8f   :  { %v2026_v51 = vpack.c.bf16 %v2025_v50, %v2025_v50 }
0x2f91   :  { %2028 = vrot.lane.b32.xlu1 %v2026_v51, %s4066_s7 }
0x3003   :  { %v2029_v54 = vpop.permute.xlu1 %2028 }
0x3004   :  { %3580 = vmatmul.msk.bf16.vlgmr.msra.gmra.mxu2 %vm194_vm7, %v2029_v54  ;;  %3581 = vmatmul.msk.bf16.vlgmr.msrb.gmra.mxu3 %vm194_vm7, %v2029_v54 }
0x3005   :  { %2380 = vmatpush.bf16.msrb.mxu3 %v4549_v53 }
0x3009   :  { %2381 = vmatpush.bf16.msrb.mxu3 %v4552_v44 }
0x3014   :  { %3595 = vmatmul.msk.bf16.vlgmr.msra.gmra.mxu3 %vm194_vm7, %v4451_v28 }
0x3015   :  { %2526 = vmatpush.bf16.msra.mxu3 %v4549_v53 }
0x3019   :  { %2527 = vmatpush.bf16.msra.mxu3 %v4552_v44 }
0x3087   :  { %v4567_v4 = vpop.f32.mrf.mxu2  ;;  %v2057_v55 = vpop.f32.mrf.mxu3 }
0x3088   :  { %v2061_v58 = vadd.f32 %v2057_v55, %v1567_v18 }
0x308a   :  { %3890 = vtanh.f32 %v2061_v58  ;;  %v3582_v11 = vmul.f32 -1.442695, %v2061_v58 }
0x308f   :  { %v2044_v61 = vpop.f32.mrf.mxu2  ;;  %v2059_v56 = vpop.f32.mrf.mxu3 }
0x3090   :  { %v3891_v2 = vpop.eup %3890  ;;  %v4592_v61 = vld [vmem:[#allocation4 + $0xc8] sm:$0xff]  ;;  %v4595_v56 = vld [vmem:[#allocation4 + $0xc0] sm:$0xff] }
0x3091   :  { %2084 = vrot.lane.b32.xlu2 %v3891_v2, %s4063_s23  ;;  %2292 = vmatpush.bf16.msra.mxu1 %v4592_v61 }
0x3092   :  { %2365 = vmatpush.bf16.msra.mxu2 %v4592_v61 }
0x3095   :  { %2293 = vmatpush.bf16.msra.mxu1 %v4595_v56 }
0x3096   :  { %2366 = vmatpush.bf16.msra.mxu2 %v4595_v56 }
0x3097   :  { %v2224_v62 = vpop.f32.mrf.mxu3 }
0x3098   :  { %v2228_v5 = vadd.f32 %v2224_v62, %v1678_v60  ;;  %v1569_v62 = vadd.f32 %v4445_v25, %v4462_v34 }
0x309a   :  { %3892 = vtanh.f32 %v2228_v5  ;;  %v3596_v63 = vmul.f32 -1.442695, %v2228_v5 }
0x309b   :  { %3894 = vpow2.f32 %v3582_v11 }
0x309f   :  { %v2226_v0 = vpop.f32.mrf.mxu3 }
0x30a0   :  { %v3893_v1 = vpop.eup %3892 }
0x30a1   :  { %2251 = vrot.lane.b32.xlu0 %v3893_v1, %s4063_s23  ;;  %v3895_v45 = vpop.eup %3894 }
0x30a2   :  { %v2065_v6 = vadd.f32 1.0, %v3895_v45 }
0x30a4   :  { %3896 = vrcp.f32 %v2065_v6  ;;  %v2077_v15 = vand.u32 2147483648, %v2065_v6  ;;  %vm2071_vm8 = vweird.f32 %v2065_v6  ;;  %v2075_v17 = vand.u32 2147483647, %v2065_v6 }
0x30a5   :  { %3898 = vpow2.f32 %v3596_v63 }
0x30a6   :  { %v2078_v3 = vor.u32 1.1754944e-38, %v2077_v15  ;;  %vm2076_vm0 = vcmp.eq.f32.partialorder %v2075_v17, 8.507059e+37 }
0x30aa   :  { %v3897_v7 = vpop.eup %3896 }
0x30ab   :  { %v2067_v13 = vmul.f32 %v3897_v7, %v2065_v6  ;;  %vm2072_vm6 = vweird.f32 %v3897_v7  ;;  %v3899_v9 = vpop.eup %3898  ;;  %v1751_v6 = vadd.f32 %v4573_v23, %v4504_v43 }
0x30ac   :  { %vm2073_vm9 = vmor %vm2071_vm8, %vm2072_vm6  ;;  %v2232_v22 = vadd.f32 1.0, %v3899_v9 }
0x30ad   :  { %v2068_v8 = vsub.f32 1.0, %v2067_v13 }
0x30ae   :  { %3900 = vrcp.f32 %v2232_v22  ;;  %v2244_v33 = vand.u32 2147483648, %v2232_v22  ;;  %vm2238_vm10 = vweird.f32 %v2232_v22  ;;  %v2242_v30 = vand.u32 2147483647, %v2232_v22 }
0x30af   :  { %v2069_v12 = vmul.f32 %v3897_v7, %v2068_v8 }
0x30b0   :  { %v2245_v35 = vor.u32 1.1754944e-38, %v2244_v33  ;;  %vm2243_vm12 = vcmp.eq.f32.partialorder %v2242_v30, 8.507059e+37 }
0x30b1   :  { %v2070_v14 = vadd.f32 %v3897_v7, %v2069_v12 }
0x30b3   :  { %v2074_v26 = vsel %vm2073_vm9, %v3897_v7, %v2070_v14 }
0x30b4   :  { %v2079_v21 = vsel %vm2076_vm0, %v2078_v3, %v2074_v26  ;;  %v3901_v16 = vpop.eup %3900 }
0x30b5   :  { %v2234_v31 = vmul.f32 %v3901_v16, %v2232_v22  ;;  %vm2239_vm1 = vweird.f32 %v3901_v16  ;;  %v2082_v40 = vmul.f32 %v2079_v21, %v4544_v48 }
0x30b6   :  { %vm2240_vm11 = vmor %vm2238_vm10, %vm2239_vm1 }
0x30b7   :  { %v2235_v19 = vsub.f32 1.0, %v2234_v31 }
0x30b9   :  { %v2236_v32 = vmul.f32 %v3901_v16, %v2235_v19 }
0x30bb   :  { %v2237_v10 = vadd.f32 %v3901_v16, %v2236_v32 }
0x30bd   :  { %v2241_v24 = vsel %vm2240_vm11, %v3901_v16, %v2237_v10 }
0x30be   :  { %v2246_v38 = vsel %vm2243_vm12, %v2245_v35, %v2241_v24 }
0x30bf   :  { %v2249_v46 = vmul.f32 %v2246_v38, %v4447_v27 }
0x30eb   :  { %v2085_v52 = vpop.permute.xlu2 %2084 }
0x30ec   :  { %v2087_v29 = vmul.f32 %v2085_v52, %v2079_v21 }
0x30ee   :  { %2089 = vrot.lane.b32.xlu1 %v2087_v29, %s4066_s7 }
0x3113   :  { %v2252_v36 = vpop.permute.xlu0 %2251 }
0x3114   :  { %v2254_v39 = vmul.f32 %v2252_v36, %v2246_v38 }
0x3116   :  { %2256 = vrot.lane.b32.xlu2 %v2254_v39, %s4066_s7  ;;  %v1824_v39 = vadd.f32 %v4573_v23, %v4518_v59 }
0x3160   :  { %v2090_v41 = vpop.permute.xlu1 %2089 }
0x3161   :  { %v4581_v37 = vadd.f32 %v2090_v41, %v2082_v40 }
0x3163   :  { %3902 = vtanh.f32 %v4581_v37 }
0x3169   :  { %v3903_v42 = vpop.eup %3902 }
0x316a   :  { %2095 = vrot.lane.b32.xlu0 %v3903_v42, %s4063_s23 }
0x3170   :  { %v2257_v20 = vpop.permute.xlu2 %2256 }
0x3171   :  { %v4586_v47 = vadd.f32 %v2257_v20, %v2249_v46 }
0x3173   :  { %3904 = vtanh.f32 %v4586_v47 }
0x3179   :  { %v3905_v50 = vpop.eup %3904 }
0x317a   :  { %2262 = vrot.lane.b32.xlu1 %v3905_v50, %s4063_s23 }
0x31dc   :  { %v2096_v51 = vpop.permute.xlu0 %2095 }
0x31dd   :  { %v2098_v48 = vmul.f32 %v2096_v51, %v2079_v21 }
0x31df   :  { %v2099_v54 = vpack.c.bf16 %v2098_v48, %v2098_v48 }
0x31e1   :  { %2101 = vrot.lane.b32.xlu2 %v2099_v54, %s4066_s7 }
0x31ec   :  { %v2263_v18 = vpop.permute.xlu1 %2262 }
0x31ed   :  { %v2265_v55 = vmul.f32 %v2263_v18, %v2246_v38 }
0x31ef   :  { %v2266_v58 = vpack.c.bf16 %v2265_v55, %v2265_v55 }
0x31f1   :  { %2269 = vrot.lane.b32.xlu0 %v2266_v58, %s4066_s7 }
0x323b   :  { %v2102_v2 = vpop.permute.xlu2 %2101 }
0x323c   :  { %3583 = vmatmul.msk.bf16.vlgmr.msrb.gmra.mxu1 %vm194_vm7, %v2102_v2  ;;  %3584 = vmatmul.msk.bf16.vlgmr.msra.gmra.mxu0 %vm194_vm7, %v2102_v2 }
0x323d   :  { %2453 = vmatpush.bf16.msra.mxu0 %v4549_v53  ;;  %2438 = vmatpush.bf16.msrb.mxu1 %v4592_v61 }
0x3241   :  { %2454 = vmatpush.bf16.msra.mxu0 %v4552_v44  ;;  %2439 = vmatpush.bf16.msrb.mxu1 %v4595_v56 }
0x3263   :  { %v2270_v60 = vpop.permute.xlu0 %2269 }
0x3264   :  { %3605 = vmatmul.msk.bf16.vlgmr.msra.gmra.mxu1 %vm194_vm7, %v2270_v60  ;;  %3606 = vmatmul.msk.bf16.vlgmr.msrb.gmra.mxu0 %vm194_vm7, %v2270_v60 }
0x3265   :  { %2599 = vmatpush.bf16.msrb.mxu0 %v4549_v53  ;;  %2584 = vmatpush.bf16.msra.mxu1 %v4592_v61 }
0x3269   :  { %2600 = vmatpush.bf16.msrb.mxu0 %v4552_v44  ;;  %2585 = vmatpush.bf16.msra.mxu1 %v4595_v56 }
0x32b9   :  { %v4614_v5 = vpop.f32.mrf.mxu1  ;;  %v2130_v0 = vpop.f32.mrf.mxu0 }
0x32ba   :  { %v4616_v1 = vadd.f32 %v2130_v0, %v1569_v62 }
0x32c1   :  { %v2117_v11 = vpop.f32.mrf.mxu1  ;;  %v2132_v45 = vpop.f32.mrf.mxu0 }
0x32e1   :  { %v4620_v7 = vpop.f32.mrf.mxu1  ;;  %v2310_v13 = vpop.f32.mrf.mxu0 }
0x32e2   :  { %v2314_v8 = vadd.f32 %v2310_v13, %v1751_v6 }
0x32e4   :  { %3906 = vtanh.f32 %v2314_v8  ;;  %v3607_v25 = vmul.f32 -1.442695, %v2314_v8 }
0x32e6   :  { %3908 = vpow2.f32 %v3607_v25 }
0x32e9   :  { %v2297_v12 = vpop.f32.mrf.mxu1  ;;  %v2312_v14 = vpop.f32.mrf.mxu0 }
0x32ea   :  { %v3907_v15 = vpop.eup %3906 }
0x32eb   :  { %2337 = vrot.lane.b32.xlu1 %v3907_v15, %s4063_s23 }
0x32ec   :  { %v3909_v34 = vpop.eup %3908 }
0x32ed   :  { %v2318_v63 = vadd.f32 1.0, %v3909_v34  ;;  %v1897_v34 = vadd.f32 %v4573_v23, %v4530_v49 }
0x32ef   :  { %3910 = vrcp.f32 %v2318_v63  ;;  %v2330_v21 = vand.u32 2147483648, %v2318_v63  ;;  %vm2324_vm14 = vweird.f32 %v2318_v63  ;;  %v2328_v29 = vand.u32 2147483647, %v2318_v63 }
0x32f1   :  { %v2331_v22 = vor.u32 1.1754944e-38, %v2330_v21  ;;  %vm2329_vm3 = vcmp.eq.f32.partialorder %v2328_v29, 8.507059e+37 }
0x32f5   :  { %v3911_v17 = vpop.eup %3910 }
0x32f6   :  { %v2320_v26 = vmul.f32 %v3911_v17, %v2318_v63  ;;  %vm2325_vm13 = vweird.f32 %v3911_v17 }
0x32f7   :  { %vm2326_vm15 = vmor %vm2324_vm14, %vm2325_vm13 }
0x32f8   :  { %v2321_v3 = vsub.f32 1.0, %v2320_v26 }
0x32fa   :  { %v2322_v52 = vmul.f32 %v3911_v17, %v2321_v3 }
0x32fc   :  { %v2323_v43 = vadd.f32 %v3911_v17, %v2322_v52 }
0x32fe   :  { %v2327_v9 = vsel %vm2326_vm15, %v3911_v17, %v2323_v43 }
0x32ff   :  { %v2332_v31 = vsel %vm2329_vm3, %v2331_v22, %v2327_v9 }
0x3300   :  { %v2335_v32 = vmul.f32 %v2332_v31, %v4586_v47 }
0x335d   :  { %v2338_v16 = vpop.permute.xlu1 %2337 }
0x335e   :  { %v2340_v19 = vmul.f32 %v2338_v16, %v2332_v31 }
0x3360   :  { %2342 = vrot.lane.b32.xlu2 %v2340_v19, %s4066_s7 }
0x33ba   :  { %v2343_v10 = vpop.permute.xlu2 %2342 }
0x33bb   :  { %v2345_v33 = vadd.f32 %v2343_v10, %v2335_v32 }
0x33bd   :  { %3912 = vtanh.f32 %v2345_v33 }
0x33c3   :  { %v3913_v30 = vpop.eup %3912 }
0x33c4   :  { %2348 = vrot.lane.b32.xlu0 %v3913_v30, %s4063_s23 }
0x3436   :  { %v2349_v24 = vpop.permute.xlu0 %2348 }
0x3437   :  { %v2351_v35 = vmul.f32 %v2349_v24, %v2332_v31 }
0x3439   :  { %v2352_v36 = vpack.c.bf16 %v2351_v35, %v2351_v35 }
0x343b   :  { %2354 = vrot.lane.b32.xlu1 %v2352_v36, %s4066_s7 }
0x34ad   :  { %v4627_v38 = vpop.permute.xlu1 %2354 }
0x34ae   :  { %3609 = vmatmul.msk.bf16.vlgmr.msrb.gmra.mxu3 %vm194_vm7, %v4627_v38 }
0x34af   :  { %2672 = vmatpush.bf16.msrb.mxu3 %v4549_v53 }
0x34b3   :  { %2673 = vmatpush.bf16.msrb.mxu3 %v4552_v44 }
0x3531   :  { %v2383_v40 = vpop.f32.mrf.mxu3 }
0x3532   :  { %v2387_v41 = vadd.f32 %v2383_v40, %v1824_v39 }
0x3534   :  { %3914 = vtanh.f32 %v2387_v41  ;;  %v3610_v20 = vmul.f32 -1.442695, %v2387_v41 }
0x3536   :  { %3916 = vpow2.f32 %v3610_v20 }
0x3539   :  { %v2385_v42 = vpop.f32.mrf.mxu3 }
0x353a   :  { %v3915_v46 = vpop.eup %3914 }
0x353b   :  { %2410 = vrot.lane.b32.xlu2 %v3915_v46, %s4063_s23 }
0x353c   :  { %v3917_v47 = vpop.eup %3916 }
0x353d   :  { %v2391_v50 = vadd.f32 1.0, %v3917_v47  ;;  %v1970_v47 = vadd.f32 %v4573_v23, %v4540_v57 }
0x353f   :  { %3918 = vrcp.f32 %v2391_v50  ;;  %v2403_v58 = vand.u32 2147483648, %v2391_v50  ;;  %vm2397_vm5 = vweird.f32 %v2391_v50  ;;  %v2401_v59 = vand.u32 2147483647, %v2391_v50 }
0x3541   :  { %v2404_v60 = vor.u32 1.1754944e-38, %v2403_v58  ;;  %vm2402_vm8 = vcmp.eq.f32.partialorder %v2401_v59, 8.507059e+37 }
0x3545   :  { %v3919_v51 = vpop.eup %3918 }
0x3546   :  { %v2393_v48 = vmul.f32 %v3919_v51, %v2391_v50  ;;  %vm2398_vm4 = vweird.f32 %v3919_v51 }
0x3547   :  { %vm2399_vm6 = vmor %vm2397_vm5, %vm2398_vm4 }
0x3548   :  { %v2394_v54 = vsub.f32 1.0, %v2393_v48 }
0x354a   :  { %v2395_v18 = vmul.f32 %v3919_v51, %v2394_v54 }
0x354c   :  { %v2396_v55 = vadd.f32 %v3919_v51, %v2395_v18 }
0x354e   :  { %v2400_v2 = vsel %vm2399_vm6, %v3919_v51, %v2396_v55 }
0x354f   :  { %v2405_v0 = vsel %vm2402_vm8, %v2404_v60, %v2400_v2 }
0x3550   :  { %v2408_v45 = vmul.f32 %v2405_v0, %v2345_v33 }
0x3595   :  { %v2411_v62 = vpop.permute.xlu2 %2410 }
0x3596   :  { %v2413_v11 = vmul.f32 %v2411_v62, %v2405_v0 }
0x3598   :  { %2415 = vrot.lane.b32.xlu0 %v2413_v11, %s4066_s7 }
0x360a   :  { %v2416_v6 = vpop.permute.xlu0 %2415 }
0x360b   :  { %v2418_v13 = vadd.f32 %v2416_v6, %v2408_v45 }
0x360d   :  { %3920 = vtanh.f32 %v2418_v13 }
0x3613   :  { %v3921_v8 = vpop.eup %3920 }
0x3614   :  { %2421 = vrot.lane.b32.xlu1 %v3921_v8, %s4063_s23 }
0x3686   :  { %v2422_v12 = vpop.permute.xlu1 %2421 }
0x3687   :  { %v2424_v14 = vmul.f32 %v2422_v12, %v2405_v0 }
0x3689   :  { %v2425_v15 = vpack.c.bf16 %v2424_v14, %v2424_v14 }
0x368b   :  { %2427 = vrot.lane.b32.xlu2 %v2425_v15, %s4066_s7 }
0x36e5   :  { %v2428_v25 = vpop.permute.xlu2 %2427 }
0x36e6   :  { %3611 = vmatmul.msk.bf16.vlgmr.msrb.gmra.mxu1 %vm194_vm7, %v2428_v25  ;;  %3612 = vmatmul.msk.bf16.vlgmr.msra.gmra.mxu0 %vm194_vm7, %v2428_v25 }
0x36e7   :  { %2745 = vmatpush.bf16.msra.mxu0 %v4549_v53  ;;  %2730 = vmatpush.bf16.msrb.mxu1 %v4592_v61 }
0x36eb   :  { %2746 = vmatpush.bf16.msra.mxu0 %v4552_v44  ;;  %2731 = vmatpush.bf16.msrb.mxu1 %v4595_v56 }
0x3763   :  { %v4647_v63 = vpop.f32.mrf.mxu1  ;;  %v2456_v17 = vpop.f32.mrf.mxu0 }
0x3764   :  { %v2460_v26 = vadd.f32 %v2456_v17, %v1897_v34 }
0x3766   :  { %3922 = vtanh.f32 %v2460_v26  ;;  %v3613_v53 = vmul.f32 -1.442695, %v2460_v26 }
0x3768   :  { %3924 = vpow2.f32 %v3613_v53 }
0x376b   :  { %v2443_v3 = vpop.f32.mrf.mxu1  ;;  %v2458_v52 = vpop.f32.mrf.mxu0 }
0x376c   :  { %v3923_v43 = vpop.eup %3922 }
0x376d   :  { %2483 = vrot.lane.b32.xlu0 %v3923_v43, %s4063_s23  ;;  %v2043_v43 = vadd.f32 %v4573_v23, %v4567_v4 }
0x376e   :  { %v3925_v21 = vpop.eup %3924 }
0x376f   :  { %v2464_v29 = vadd.f32 1.0, %v3925_v21 }
0x3771   :  { %3926 = vrcp.f32 %v2464_v29  ;;  %v2476_v31 = vand.u32 2147483648, %v2464_v29  ;;  %vm2470_vm0 = vweird.f32 %v2464_v29  ;;  %v2474_v19 = vand.u32 2147483647, %v2464_v29 }
0x3773   :  { %v2477_v10 = vor.u32 1.1754944e-38, %v2476_v31  ;;  %vm2475_vm10 = vcmp.eq.f32.partialorder %v2474_v19, 8.507059e+37 }
0x3777   :  { %v3927_v44 = vpop.eup %3926 }
0x3778   :  { %v2466_v9 = vmul.f32 %v3927_v44, %v2464_v29  ;;  %vm2471_vm9 = vweird.f32 %v3927_v44 }
0x3779   :  { %vm2472_vm1 = vmor %vm2470_vm0, %vm2471_vm9 }
0x377a   :  { %v2467_v22 = vsub.f32 1.0, %v2466_v9 }
0x377c   :  { %v2468_v16 = vmul.f32 %v3927_v44, %v2467_v22 }
0x377e   :  { %v2469_v49 = vadd.f32 %v3927_v44, %v2468_v16 }
0x3780   :  { %v2473_v32 = vsel %vm2472_vm1, %v3927_v44, %v2469_v49 }
0x3781   :  { %v2478_v30 = vsel %vm2475_vm10, %v2477_v10, %v2473_v32 }
0x3782   :  { %v2481_v35 = vmul.f32 %v2478_v30, %v2418_v13 }
0x37df   :  { %v2484_v33 = vpop.permute.xlu0 %2483 }
0x37e0   :  { %v2486_v24 = vmul.f32 %v2484_v33, %v2478_v30 }
0x37e2   :  { %2488 = vrot.lane.b32.xlu1 %v2486_v24, %s4066_s7 }
0x3854   :  { %v2489_v36 = vpop.permute.xlu1 %2488 }
0x3855   :  { %v2491_v39 = vadd.f32 %v2489_v36, %v2481_v35 }
0x3857   :  { %3928 = vtanh.f32 %v2491_v39 }
0x385d   :  { %v3929_v40 = vpop.eup %3928 }
0x385e   :  { %2494 = vrot.lane.b32.xlu2 %v3929_v40, %s4063_s23 }
0x38b8   :  { %v2495_v41 = vpop.permute.xlu2 %2494 }
0x38b9   :  { %v2497_v42 = vmul.f32 %v2495_v41, %v2478_v30 }
0x38bb   :  { %v2498_v46 = vpack.c.bf16 %v2497_v42, %v2497_v42 }
0x38bd   :  { %2500 = vrot.lane.b32.xlu0 %v2498_v46, %s4066_s7  ;;  %v3585_v46 = vmul.f32 -1.442695, %v4616_v1 }
0x392f   :  { %v4653_v20 = vpop.permute.xlu0 %2500 }
0x3930   :  { %3615 = vmatmul.msk.bf16.vlgmr.msra.gmra.mxu3 %vm194_vm7, %v4653_v20 }
0x39b3   :  { %v2529_v50 = vpop.f32.mrf.mxu3 }
0x39b4   :  { %v2533_v51 = vadd.f32 %v2529_v50, %v1970_v47 }
0x39b6   :  { %3930 = vtanh.f32 %v2533_v51  ;;  %v3616_v18 = vmul.f32 -1.442695, %v2533_v51 }
0x39b8   :  { %3932 = vpow2.f32 %v3616_v18 }
0x39bb   :  { %v2531_v48 = vpop.f32.mrf.mxu3 }
0x39bc   :  { %v3931_v54 = vpop.eup %3930 }
0x39bd   :  { %2556 = vrot.lane.b32.xlu1 %v3931_v54, %s4063_s23 }
0x39be   :  { %v3933_v55 = vpop.eup %3932 }
0x39bf   :  { %v2537_v58 = vadd.f32 1.0, %v3933_v55 }
0x39c1   :  { %3934 = vrcp.f32 %v2537_v58  ;;  %v2549_v11 = vand.u32 2147483648, %v2537_v58  ;;  %vm2543_vm12 = vweird.f32 %v2537_v58  ;;  %v2547_v57 = vand.u32 2147483647, %v2537_v58 }
0x39c3   :  { %v2550_v6 = vor.u32 1.1754944e-38, %v2549_v11  ;;  %vm2548_vm14 = vcmp.eq.f32.partialorder %v2547_v57, 8.507059e+37 }
0x39c7   :  { %v3935_v59 = vpop.eup %3934 }
0x39c8   :  { %v2539_v2 = vmul.f32 %v3935_v59, %v2537_v58  ;;  %vm2544_vm11 = vweird.f32 %v3935_v59 }
0x39c9   :  { %vm2545_vm13 = vmor %vm2543_vm12, %vm2544_vm11 }
0x39ca   :  { %v2540_v60 = vsub.f32 1.0, %v2539_v2 }
0x39cc   :  { %v2541_v62 = vmul.f32 %v3935_v59, %v2540_v60 }
0x39ce   :  { %v2542_v0 = vadd.f32 %v3935_v59, %v2541_v62 }
0x39d0   :  { %v2546_v45 = vsel %vm2545_vm13, %v3935_v59, %v2542_v0 }
0x39d1   :  { %v2551_v8 = vsel %vm2548_vm14, %v2550_v6, %v2546_v45 }
0x39d2   :  { %v2554_v14 = vmul.f32 %v2551_v8, %v2491_v39 }
0x3a2f   :  { %v2557_v13 = vpop.permute.xlu1 %2556 }
0x3a30   :  { %v2559_v12 = vmul.f32 %v2557_v13, %v2551_v8 }
0x3a32   :  { %2561 = vrot.lane.b32.xlu2 %v2559_v12, %s4066_s7 }
0x3a8c   :  { %v2562_v15 = vpop.permute.xlu2 %2561 }
0x3a8d   :  { %v2564_v25 = vadd.f32 %v2562_v15, %v2554_v14 }
0x3a8f   :  { %3936 = vtanh.f32 %v2564_v25 }
0x3a95   :  { %v3937_v34 = vpop.eup %3936 }
0x3a96   :  { %2567 = vrot.lane.b32.xlu0 %v3937_v34, %s4063_s23 }
0x3b08   :  { %v2568_v17 = vpop.permute.xlu0 %2567 }
0x3b09   :  { %v2570_v26 = vmul.f32 %v2568_v17, %v2551_v8  ;;  %v4682_v17 = vld [vmem:[#allocation4 + $0xd8] sm:$0xff] }
0x3b0a   :  { %2839 = vmatpush.bf16.msra.mxu3 %v4682_v17 }
0x3b0b   :  { %v2571_v3 = vpack.c.bf16 %v2570_v26, %v2570_v26  ;;  %v4685_v26 = vld [vmem:[#allocation4 + $0xd0] sm:$0xff] }
0x3b0d   :  { %2573 = vrot.lane.b32.xlu1 %v2571_v3, %s4066_s7 }
0x3b0e   :  { %2840 = vmatpush.bf16.msra.mxu3 %v4685_v26 }
0x3b7f   :  { %v2574_v52 = vpop.permute.xlu1 %2573 }
0x3b80   :  { %3617 = vmatmul.msk.bf16.vlgmr.msra.gmra.mxu1 %vm194_vm7, %v2574_v52  ;;  %3618 = vmatmul.msk.bf16.vlgmr.msrb.gmra.mxu0 %vm194_vm7, %v2574_v52 }
0x3b81   :  { %2925 = vmatpush.bf16.msrb.mxu0 %v4682_v17 }
0x3b85   :  { %2926 = vmatpush.bf16.msrb.mxu0 %v4685_v26 }
0x3bfd   :  { %v4667_v53 = vpop.f32.mrf.mxu1  ;;  %v2602_v21 = vpop.f32.mrf.mxu0 }
0x3bfe   :  { %v2606_v29 = vadd.f32 %v2602_v21, %v2043_v43  ;;  %v2116_v21 = vadd.f32 %v4573_v23, %v4614_v5 }
0x3c00   :  { %3938 = vtanh.f32 %v2606_v29  ;;  %v3619_v16 = vmul.f32 -1.442695, %v2606_v29 }
0x3c02   :  { %3940 = vpow2.f32 %v3619_v16 }
0x3c05   :  { %v2589_v44 = vpop.f32.mrf.mxu1  ;;  %v2604_v9 = vpop.f32.mrf.mxu0 }
0x3c06   :  { %v3939_v22 = vpop.eup %3938 }
0x3c07   :  { %2629 = vrot.lane.b32.xlu2 %v3939_v22, %s4063_s23 }
0x3c08   :  { %v3941_v49 = vpop.eup %3940 }
0x3c09   :  { %v2610_v31 = vadd.f32 1.0, %v3941_v49 }
0x3c0b   :  { %3942 = vrcp.f32 %v2610_v31  ;;  %v2622_v30 = vand.u32 2147483648, %v2610_v31  ;;  %vm2616_vm3 = vweird.f32 %v2610_v31  ;;  %v2620_v24 = vand.u32 2147483647, %v2610_v31 }
0x3c0c   :  { %3944 = vtanh.f32 %v4616_v1 }
0x3c0d   :  { %v2623_v36 = vor.u32 1.1754944e-38, %v2622_v30  ;;  %vm2621_vm5 = vcmp.eq.f32.partialorder %v2620_v24, 8.507059e+37  ;;  %3946 = vpow2.f32 %v3585_v46 }
0x3c11   :  { %v3943_v19 = vpop.eup %3942 }
0x3c12   :  { %v2612_v32 = vmul.f32 %v3943_v19, %v2610_v31  ;;  %vm2617_vm15 = vweird.f32 %v3943_v19  ;;  %v3945_v42 = vpop.eup %3944 }
0x3c13   :  { %vm2618_vm4 = vmor %vm2616_vm3, %vm2617_vm15  ;;  %v3947_v47 = vpop.eup %3946 }
0x3c14   :  { %v2613_v10 = vsub.f32 1.0, %v2612_v32  ;;  %v2138_v50 = vadd.f32 1.0, %v3947_v47 }
0x3c16   :  { %v2614_v33 = vmul.f32 %v3943_v19, %v2613_v10  ;;  %3948 = vrcp.f32 %v2138_v50  ;;  %v2150_v60 = vand.u32 2147483648, %v2138_v50  ;;  %vm2144_vm8 = vweird.f32 %v2138_v50 }
0x3c17   :  { %v2148_v62 = vand.u32 2147483647, %v2138_v50 }
0x3c18   :  { %v2615_v4 = vadd.f32 %v3943_v19, %v2614_v33  ;;  %v2151_v0 = vor.u32 1.1754944e-38, %v2150_v60 }
0x3c19   :  { %vm2149_vm0 = vcmp.eq.f32.partialorder %v2148_v62, 8.507059e+37 }
0x3c1a   :  { %v2619_v35 = vsel %vm2618_vm4, %v3943_v19, %v2615_v4 }
0x3c1b   :  { %v2624_v40 = vsel %vm2621_vm5, %v2623_v36, %v2619_v35 }
0x3c1c   :  { %v3949_v51 = vpop.eup %3948  ;;  %v2627_v55 = vmul.f32 %v2624_v40, %v2564_v25 }
0x3c1d   :  { %v2140_v48 = vmul.f32 %v3949_v51, %v2138_v50  ;;  %vm2145_vm6 = vweird.f32 %v3949_v51 }
0x3c1e   :  { %vm2146_vm9 = vmor %vm2144_vm8, %vm2145_vm6 }
0x3c1f   :  { %v2141_v54 = vsub.f32 1.0, %v2140_v48 }
0x3c21   :  { %v2142_v18 = vmul.f32 %v3949_v51, %v2141_v54 }
0x3c23   :  { %v2143_v2 = vadd.f32 %v3949_v51, %v2142_v18 }
0x3c25   :  { %v2147_v1 = vsel %vm2146_vm9, %v3949_v51, %v2143_v2 }
0x3c26   :  { %v2152_v11 = vsel %vm2149_vm0, %v2151_v0, %v2147_v1 }
0x3c27   :  { %v2155_v8 = vmul.f32 %v2152_v11, %v4581_v37 }
0x3c61   :  { %v2630_v39 = vpop.permute.xlu2 %2629 }
0x3c62   :  { %v2632_v41 = vmul.f32 %v2630_v39, %v2624_v40 }
0x3c64   :  { %2634 = vrot.lane.b32.xlu0 %v2632_v41, %s4066_s7 }
0x3c6c   :  { %2157 = vrot.lane.b32.xlu0 %v3945_v42, %s4063_s23 }
0x3cd6   :  { %v2635_v58 = vpop.permute.xlu0 %2634 }
0x3cd7   :  { %v4674_v59 = vadd.f32 %v2635_v58, %v2627_v55 }
0x3cd9   :  { %3950 = vtanh.f32 %v4674_v59 }
0x3cde   :  { %v2158_v57 = vpop.permute.xlu0 %2157 }
0x3cdf   :  { %v3951_v45 = vpop.eup %3950  ;;  %v2160_v6 = vmul.f32 %v2158_v57, %v2152_v11 }
0x3ce0   :  { %2640 = vrot.lane.b32.xlu1 %v3951_v45, %s4063_s23 }
0x3ce1   :  { %2162 = vrot.lane.b32.xlu0 %v2160_v6, %s4066_s7 }
0x3d52   :  { %v2641_v13 = vpop.permute.xlu1 %2640 }
0x3d53   :  { %v2643_v12 = vmul.f32 %v2641_v13, %v2624_v40  ;;  %v2163_v14 = vpop.permute.xlu0 %2162 }
0x3d54   :  { %v2165_v15 = vadd.f32 %v2163_v14, %v2155_v8 }
0x3d55   :  { %v2644_v25 = vpack.c.bf16 %v2643_v12, %v2643_v12 }
0x3d56   :  { %3952 = vtanh.f32 %v2165_v15 }
0x3d57   :  { %2646 = vrot.lane.b32.xlu2 %v2644_v25, %s4066_s7 }
0x3d5c   :  { %v3953_v34 = vpop.eup %3952 }
0x3d5d   :  { %2168 = vrot.lane.b32.xlu0 %v3953_v34, %s4063_s23 }
0x3db1   :  { %v2647_v37 = vpop.permute.xlu2 %2646 }
0x3db2   :  { %3621 = vmatmul.msk.bf16.vlgmr.msrb.gmra.mxu3 %vm194_vm7, %v2647_v37 }
0x3db3   :  { %2998 = vmatpush.bf16.msrb.mxu3 %v4682_v17 }
0x3db7   :  { %2999 = vmatpush.bf16.msrb.mxu3 %v4685_v26 }
0x3dc2   :  { %3635 = vmatmul.msk.bf16.vlgmr.msra.gmra.mxu3 %vm194_vm7, %v4451_v28  ;;  %v4704_v28 = vld [vmem:[%s4902_s3 + $0x8] ss:$0 sm:$0xff] }
0x3dc3   :  { %3144 = vmatpush.bf16.msra.mxu3 %v4682_v17  ;;  %v2296_v16 = vadd.f32 %v4704_v28, %v4620_v7 }
0x3dc7   :  { %3145 = vmatpush.bf16.msra.mxu3 %v4685_v26 }
0x3dcf   :  { %v2169_v3 = vpop.permute.xlu0 %2168 }
0x3dd0   :  { %v2171_v52 = vmul.f32 %v2169_v3, %v2152_v11 }
0x3dd2   :  { %v2172_v43 = vpack.c.bf16 %v2171_v52, %v2171_v52 }
0x3dd4   :  { %2174 = vrot.lane.b32.xlu0 %v2172_v43, %s4066_s7 }
0x3e35   :  { %v2675_v29 = vpop.f32.mrf.mxu3 }
0x3e36   :  { %v2679_v44 = vadd.f32 %v2675_v29, %v2116_v21 }
0x3e38   :  { %3954 = vtanh.f32 %v2679_v44  ;;  %v3622_v10 = vmul.f32 -1.442695, %v2679_v44 }
0x3e3d   :  { %v2677_v9 = vpop.f32.mrf.mxu3 }
0x3e3e   :  { %v3955_v22 = vpop.eup %3954 }
0x3e3f   :  { %2702 = vrot.lane.b32.xlu1 %v3955_v22, %s4063_s23 }
0x3e45   :  { %v2842_v49 = vpop.f32.mrf.mxu3 }
0x3e46   :  { %v2846_v31 = vadd.f32 %v2842_v49, %v2296_v16  ;;  %v2175_v19 = vpop.permute.xlu0 %2174  ;;  %v4739_v49 = vld [vmem:[#allocation4 + $0xe8] sm:$0xff] }
0x3e47   :  { %3586 = vmatmul.msk.bf16.vlgmr.msrb.gmra.mxu2 %vm194_vm7, %v2175_v19  ;;  %2910 = vmatpush.bf16.msra.mxu1 %v4739_v49 }
0x3e48   :  { %3956 = vtanh.f32 %v2846_v31  ;;  %2511 = vmatpush.bf16.msrb.mxu2 %v4592_v61  ;;  %v3636_v7 = vmul.f32 -1.442695, %v2846_v31 }
0x3e4a   :  { %3958 = vpow2.f32 %v3636_v7 }
0x3e4b   :  { %3960 = vpow2.f32 %v3622_v10 }
0x3e4c   :  { %2512 = vmatpush.bf16.msrb.mxu2 %v4595_v56 }
0x3e4d   :  { %v2844_v5 = vpop.f32.mrf.mxu3 }
0x3e4e   :  { %v3957_v32 = vpop.eup %3956 }
0x3e4f   :  { %2869 = vrot.lane.b32.xlu2 %v3957_v32, %s4063_s23 }
0x3e50   :  { %v3959_v33 = vpop.eup %3958 }
0x3e51   :  { %v2850_v4 = vadd.f32 1.0, %v3959_v33 }
0x3e53   :  { %3962 = vrcp.f32 %v2850_v4  ;;  %v2862_v41 = vand.u32 2147483648, %v2850_v4  ;;  %vm2856_vm10 = vweird.f32 %v2850_v4  ;;  %v2860_v42 = vand.u32 2147483647, %v2850_v4 }
0x3e55   :  { %v2863_v50 = vor.u32 1.1754944e-38, %v2862_v41  ;;  %vm2861_vm12 = vcmp.eq.f32.partialorder %v2860_v42, 8.507059e+37 }
0x3e57   :  { %3608 = vmatmul.msk.bf16.vlgmr.msra.gmra.mxu2 %vm194_vm7, %v4627_v38  ;;  %v3961_v38 = vpop.eup %3960 }
0x3e58   :  { %2657 = vmatpush.bf16.msra.mxu2 %v4592_v61  ;;  %v2683_v30 = vadd.f32 1.0, %v3961_v38  ;;  %v4767_v38 = vld [vmem:[%s4902_s3 + $0x9] ss:$0 sm:$0xff] }
0x3e59   :  { %v3963_v24 = vpop.eup %3962 }
0x3e5a   :  { %3964 = vrcp.f32 %v2683_v30  ;;  %v2852_v35 = vmul.f32 %v3963_v24, %v2850_v4  ;;  %vm2857_vm1 = vweird.f32 %v3963_v24  ;;  %v2695_v55 = vand.u32 2147483648, %v2683_v30 }
0x3e5b   :  { %vm2858_vm11 = vmor %vm2856_vm10, %vm2857_vm1  ;;  %vm2689_vm14 = vweird.f32 %v2683_v30  ;;  %v2693_v58 = vand.u32 2147483647, %v2683_v30 }
0x3e5c   :  { %2658 = vmatpush.bf16.msra.mxu2 %v4595_v56  ;;  %v2853_v36 = vsub.f32 1.0, %v2852_v35  ;;  %v2696_v60 = vor.u32 1.1754944e-38, %v2695_v55 }
0x3e5d   :  { %vm2694_vm3 = vcmp.eq.f32.partialorder %v2693_v58, 8.507059e+37 }
0x3e5e   :  { %v2854_v39 = vmul.f32 %v3963_v24, %v2853_v36 }
0x3e60   :  { %v2855_v40 = vadd.f32 %v3963_v24, %v2854_v39 }
0x3e62   :  { %v2859_v46 = vsel %vm2858_vm11, %v3963_v24, %v2855_v40 }
0x3e63   :  { %v2864_v48 = vsel %vm2861_vm12, %v2863_v50, %v2859_v46 }
0x3e64   :  { %v2867_v15 = vmul.f32 %v2864_v48, %v4447_v27 }
0x3e67   :  { %3614 = vmatmul.msk.bf16.vlgmr.msrb.gmra.mxu2 %vm194_vm7, %v4653_v20  ;;  %v3965_v20 = vpop.eup %3964 }
0x3e68   :  { %2803 = vmatpush.bf16.msrb.mxu2 %v4592_v61  ;;  %v2685_v61 = vmul.f32 %v3965_v20, %v2683_v30  ;;  %vm2690_vm13 = vweird.f32 %v3965_v20 }
0x3e69   :  { %vm2691_vm15 = vmor %vm2689_vm14, %vm2690_vm13 }
0x3e6c   :  { %2804 = vmatpush.bf16.msrb.mxu2 %v4595_v56  ;;  %v2686_v56 = vsub.f32 1.0, %v2685_v61 }
0x3e6e   :  { %v2687_v47 = vmul.f32 %v3965_v20, %v2686_v56 }
0x3e70   :  { %v2688_v18 = vadd.f32 %v3965_v20, %v2687_v47 }
0x3e72   :  { %v2692_v2 = vsel %vm2691_vm15, %v3965_v20, %v2688_v18 }
0x3e73   :  { %v2697_v1 = vsel %vm2694_vm3, %v2696_v60, %v2692_v2 }
0x3e74   :  { %v2700_v3 = vmul.f32 %v2697_v1, %v4674_v59  ;;  %v4742_v59 = vld [vmem:[#allocation4 + $0xe0] sm:$0xff] }
0x3e75   :  { %2911 = vmatpush.bf16.msra.mxu1 %v4742_v59 }
0x3e77   :  { %3620 = vmatmul.msk.bf16.vlgmr.msra.gmra.mxu2 %vm194_vm7, %v2647_v37 }
0x3e78   :  { %2983 = vmatpush.bf16.msra.mxu2 %v4739_v49 }
0x3e7c   :  { %2984 = vmatpush.bf16.msra.mxu2 %v4742_v59 }
0x3ea9   :  { %v2870_v51 = vpop.permute.xlu2 %2869 }
0x3eaa   :  { %v2872_v54 = vmul.f32 %v2870_v51, %v2864_v48 }
0x3eac   :  { %2874 = vrot.lane.b32.xlu2 %v2872_v54, %s4066_s7 }
0x3eb1   :  { %v2703_v62 = vpop.permute.xlu1 %2702 }
0x3eb2   :  { %v2705_v0 = vmul.f32 %v2703_v62, %v2697_v1 }
0x3eb4   :  { %2707 = vrot.lane.b32.xlu1 %v2705_v0, %s4066_s7 }
0x3eca   :  { %v2188_v11 = vpop.f32.mrf.mxu2 }
0x3ecb   :  { %v2189_v5 = vadd.f32 %v4573_v23, %v2188_v11 }
0x3ed2   :  { %v2190_v57 = vpop.f32.mrf.mxu2 }
0x3eda   :  { %v2368_v45 = vpop.f32.mrf.mxu2 }
0x3edb   :  { %v2369_v30 = vadd.f32 %v4704_v28, %v2368_v45 }
0x3ee2   :  { %v2370_v6 = vpop.f32.mrf.mxu2 }
0x3eea   :  { %v4723_v13 = vpop.f32.mrf.mxu2 }
0x3ef2   :  { %v2516_v8 = vpop.f32.mrf.mxu2 }
0x3efa   :  { %v4725_v12 = vpop.f32.mrf.mxu2 }
0x3f02   :  { %v2662_v14 = vpop.f32.mrf.mxu2 }
0x3f03   :  { %v2442_v14 = vadd.f32 %v4704_v28, %v4647_v63 }
0x3f06   :  { %v2875_v25 = vpop.permute.xlu2 %2874 }
0x3f07   :  { %v4728_v34 = vadd.f32 %v2875_v25, %v2867_v15 }
0x3f09   :  { %3966 = vtanh.f32 %v4728_v34 }
0x3f0f   :  { %v3967_v37 = vpop.eup %3966 }
0x3f10   :  { %2880 = vrot.lane.b32.xlu2 %v3967_v37, %s4063_s23 }
0x3f26   :  { %v2708_v52 = vpop.permute.xlu1 %2707 }
0x3f27   :  { %v4733_v43 = vadd.f32 %v2708_v52, %v2700_v3 }
0x3f29   :  { %3968 = vtanh.f32 %v4733_v43 }
0x3f2f   :  { %v3969_v21 = vpop.eup %3968 }
0x3f30   :  { %2713 = vrot.lane.b32.xlu1 %v3969_v21, %s4063_s23 }
0x3f6a   :  { %v2881_v29 = vpop.permute.xlu2 %2880 }
0x3f6b   :  { %v2883_v27 = vmul.f32 %v2881_v29, %v2864_v48 }
0x3f6d   :  { %v2884_v44 = vpack.c.bf16 %v2883_v27, %v2883_v27 }
0x3f6f   :  { %2887 = vrot.lane.b32.xlu2 %v2884_v44, %s4066_s7 }
0x3fa2   :  { %v2714_v9 = vpop.permute.xlu1 %2713 }
0x3fa3   :  { %v2716_v22 = vmul.f32 %v2714_v9, %v2697_v1 }
0x3fa5   :  { %v2717_v16 = vpack.c.bf16 %v2716_v22, %v2716_v22 }
0x3fa7   :  { %2719 = vrot.lane.b32.xlu1 %v2717_v16, %s4066_s7 }
0x3fc9   :  { %v2888_v19 = vpop.permute.xlu2 %2887 }
0x4019   :  { %v2720_v31 = vpop.permute.xlu1 %2719 }
0x401a   :  { %3623 = vmatmul.msk.bf16.vlgmr.msrb.gmra.mxu1 %vm194_vm7, %v2720_v31  ;;  %3624 = vmatmul.msk.bf16.vlgmr.msra.gmra.mxu0 %vm194_vm7, %v2720_v31 }
0x401b   :  { %3071 = vmatpush.bf16.msra.mxu0 %v4682_v17  ;;  %3056 = vmatpush.bf16.msrb.mxu1 %v4739_v49 }
0x401f   :  { %3072 = vmatpush.bf16.msra.mxu0 %v4685_v26  ;;  %3057 = vmatpush.bf16.msrb.mxu1 %v4742_v59 }
0x402a   :  { %3645 = vmatmul.msk.bf16.vlgmr.msra.gmra.mxu1 %vm194_vm7, %v2888_v19  ;;  %3646 = vmatmul.msk.bf16.vlgmr.msrb.gmra.mxu0 %vm194_vm7, %v2888_v19 }
0x402b   :  { %3217 = vmatpush.bf16.msrb.mxu0 %v4682_v17  ;;  %3202 = vmatpush.bf16.msra.mxu1 %v4739_v49 }
0x402f   :  { %3218 = vmatpush.bf16.msrb.mxu0 %v4685_v26  ;;  %3203 = vmatpush.bf16.msra.mxu1 %v4742_v59 }
0x4097   :  { %v4760_v32 = vpop.f32.mrf.mxu1  ;;  %v2748_v7 = vpop.f32.mrf.mxu0 }
0x4098   :  { %v4762_v10 = vadd.f32 %v2748_v7, %v2189_v5 }
0x409f   :  { %v2735_v33 = vpop.f32.mrf.mxu1  ;;  %v2750_v4 = vpop.f32.mrf.mxu0 }
0x40a7   :  { %v2913_v24 = vpop.f32.mrf.mxu1  ;;  %v2928_v35 = vpop.f32.mrf.mxu0 }
0x40a8   :  { %v2914_v36 = vadd.f32 %v4767_v38, %v2913_v24  ;;  %v2932_v20 = vadd.f32 %v2928_v35, %v2369_v30 }
0x40aa   :  { %2917 = vst.msk [vmem:[%s4904_s5] sm:$0xff] %vm122_vm2, %v2914_v36  ;;  %3970 = vtanh.f32 %v2932_v20  ;;  %v3647_v40 = vmul.f32 -1.442695, %v2932_v20 }
0x40ac   :  { %3972 = vpow2.f32 %v3647_v40 }
0x40af   :  { %v2915_v23 = vpop.f32.mrf.mxu1  ;;  %v2930_v39 = vpop.f32.mrf.mxu0 }
0x40b0   :  { %v3971_v61 = vpop.eup %3970 }
0x40b1   :  { %2955 = vrot.lane.b32.xlu0 %v3971_v61, %s4063_s23  ;;  %v2515_v61 = vadd.f32 %v4704_v28, %v4723_v13 }
0x40b2   :  { %v3973_v56 = vpop.eup %3972 }
0x40b3   :  { %v2936_v41 = vadd.f32 1.0, %v3973_v56 }
0x40b5   :  { %3974 = vrcp.f32 %v2936_v41  ;;  %v2948_v48 = vand.u32 2147483648, %v2936_v41  ;;  %vm2942_vm5 = vweird.f32 %v2936_v41  ;;  %v2946_v54 = vand.u32 2147483647, %v2936_v41 }
0x40b7   :  { %v2949_v55 = vor.u32 1.1754944e-38, %v2948_v48  ;;  %vm2947_vm8 = vcmp.eq.f32.partialorder %v2946_v54, 8.507059e+37 }
0x40bb   :  { %v3975_v42 = vpop.eup %3974 }
0x40bc   :  { %v2938_v46 = vmul.f32 %v3975_v42, %v2936_v41  ;;  %vm2943_vm4 = vweird.f32 %v3975_v42 }
0x40bd   :  { %vm2944_vm6 = vmor %vm2942_vm5, %vm2943_vm4 }
0x40be   :  { %v2939_v47 = vsub.f32 1.0, %v2938_v46 }
0x40c0   :  { %v2940_v50 = vmul.f32 %v3975_v42, %v2939_v47 }
0x40c2   :  { %v2941_v51 = vadd.f32 %v3975_v42, %v2940_v50 }
0x40c4   :  { %v2945_v18 = vsel %vm2944_vm6, %v3975_v42, %v2941_v51 }
0x40c5   :  { %v2950_v2 = vsel %vm2947_vm8, %v2949_v55, %v2945_v18 }
0x40c6   :  { %v2953_v62 = vmul.f32 %v2950_v2, %v4728_v34 }
0x4123   :  { %v2956_v58 = vpop.permute.xlu0 %2955 }
0x4124   :  { %v2958_v60 = vmul.f32 %v2956_v58, %v2950_v2 }
0x4126   :  { %2960 = vrot.lane.b32.xlu1 %v2958_v60, %s4066_s7 }
0x4198   :  { %v2961_v1 = vpop.permute.xlu1 %2960 }
0x4199   :  { %v2963_v0 = vadd.f32 %v2961_v1, %v2953_v62 }
0x419b   :  { %3976 = vtanh.f32 %v2963_v0 }
0x41a1   :  { %v3977_v11 = vpop.eup %3976 }
0x41a2   :  { %2966 = vrot.lane.b32.xlu2 %v3977_v11, %s4063_s23 }
0x41fc   :  { %v2967_v57 = vpop.permute.xlu2 %2966 }
0x41fd   :  { %v2969_v45 = vmul.f32 %v2967_v57, %v2950_v2 }
0x41ff   :  { %v2970_v6 = vpack.c.bf16 %v2969_v45, %v2969_v45 }
0x4201   :  { %2972 = vrot.lane.b32.xlu0 %v2970_v6, %s4066_s7 }
0x4273   :  { %v4780_v8 = vpop.permute.xlu0 %2972 }
0x4274   :  { %3649 = vmatmul.msk.bf16.vlgmr.msrb.gmra.mxu3 %vm194_vm7, %v4780_v8 }
0x4275   :  { %3290 = vmatpush.bf16.msrb.mxu3 %v4682_v17 }
0x4279   :  { %3291 = vmatpush.bf16.msrb.mxu3 %v4685_v26 }
0x42f7   :  { %v3001_v15 = vpop.f32.mrf.mxu3 }
0x42f8   :  { %v3005_v25 = vadd.f32 %v3001_v15, %v2442_v14 }
0x42fa   :  { %3978 = vtanh.f32 %v3005_v25  ;;  %v3650_v3 = vmul.f32 -1.442695, %v3005_v25 }
0x42fc   :  { %3980 = vpow2.f32 %v3650_v3  ;;  %v2588_v3 = vadd.f32 %v4704_v28, %v4667_v53 }
0x42ff   :  { %v3003_v34 = vpop.f32.mrf.mxu3 }
0x4300   :  { %v3979_v37 = vpop.eup %3978 }
0x4301   :  { %3028 = vrot.lane.b32.xlu1 %v3979_v37, %s4063_s23 }
0x4302   :  { %v3981_v52 = vpop.eup %3980 }
0x4303   :  { %v3009_v21 = vadd.f32 1.0, %v3981_v52 }
0x4305   :  { %3982 = vrcp.f32 %v3009_v21  ;;  %v3021_v16 = vand.u32 2147483648, %v3009_v21  ;;  %vm3015_vm0 = vweird.f32 %v3009_v21  ;;  %v3019_v63 = vand.u32 2147483647, %v3009_v21 }
0x4307   :  { %v3022_v19 = vor.u32 1.1754944e-38, %v3021_v16  ;;  %vm3020_vm10 = vcmp.eq.f32.partialorder %v3019_v63, 8.507059e+37 }
0x430b   :  { %v3983_v29 = vpop.eup %3982 }
0x430c   :  { %v3011_v27 = vmul.f32 %v3983_v29, %v3009_v21  ;;  %vm3016_vm9 = vweird.f32 %v3983_v29 }
0x430d   :  { %vm3017_vm1 = vmor %vm3015_vm0, %vm3016_vm9 }
0x430e   :  { %v3012_v44 = vsub.f32 1.0, %v3011_v27 }
0x4310   :  { %v3013_v9 = vmul.f32 %v3983_v29, %v3012_v44 }
0x4312   :  { %v3014_v22 = vadd.f32 %v3983_v29, %v3013_v9 }
0x4314   :  { %v3018_v31 = vsel %vm3017_vm1, %v3983_v29, %v3014_v22 }
0x4315   :  { %v3023_v7 = vsel %vm3020_vm10, %v3022_v19, %v3018_v31 }
0x4316   :  { %v3026_v4 = vmul.f32 %v3023_v7, %v2963_v0 }
0x4373   :  { %v3029_v5 = vpop.permute.xlu1 %3028 }
0x4374   :  { %v3031_v33 = vmul.f32 %v3029_v5, %v3023_v7 }
0x4376   :  { %3033 = vrot.lane.b32.xlu2 %v3031_v33, %s4066_s7 }
0x43d0   :  { %v3034_v30 = vpop.permute.xlu2 %3033 }
0x43d1   :  { %v3036_v24 = vadd.f32 %v3034_v30, %v3026_v4 }
0x43d3   :  { %3984 = vtanh.f32 %v3036_v24 }
0x43d9   :  { %v3985_v35 = vpop.eup %3984 }
0x43da   :  { %3039 = vrot.lane.b32.xlu0 %v3985_v35, %s4063_s23 }
0x444c   :  { %v3040_v36 = vpop.permute.xlu0 %3039 }
0x444d   :  { %v3042_v20 = vmul.f32 %v3040_v36, %v3023_v7 }
0x444f   :  { %v3043_v23 = vpack.c.bf16 %v3042_v20, %v3042_v20 }
0x4451   :  { %3045 = vrot.lane.b32.xlu1 %v3043_v23, %s4066_s7 }
0x44c3   :  { %v3046_v39 = vpop.permute.xlu1 %3045 }
0x44c4   :  { %3651 = vmatmul.msk.bf16.vlgmr.msrb.gmra.mxu1 %vm194_vm7, %v3046_v39  ;;  %3652 = vmatmul.msk.bf16.vlgmr.msra.gmra.mxu0 %vm194_vm7, %v3046_v39 }
0x44c5   :  { %3363 = vmatpush.bf16.msra.mxu0 %v4682_v17  ;;  %3348 = vmatpush.bf16.msrb.mxu1 %v4739_v49 }
0x44c9   :  { %3364 = vmatpush.bf16.msra.mxu0 %v4685_v26  ;;  %3349 = vmatpush.bf16.msrb.mxu1 %v4742_v59 }
0x4541   :  { %v3059_v40 = vpop.f32.mrf.mxu1  ;;  %v3074_v56 = vpop.f32.mrf.mxu0 }
0x4542   :  { %v3060_v41 = vadd.f32 %v4767_v38, %v3059_v40  ;;  %v3078_v42 = vadd.f32 %v3074_v56, %v2515_v61 }
0x4544   :  { %3063 = vst.msk [vmem:[%s4904_s5 + $0x10] sm:$0xff] %vm122_vm2, %v3060_v41  ;;  %3986 = vtanh.f32 %v3078_v42  ;;  %v3653_v26 = vmul.f32 -1.442695, %v3078_v42  ;;  %v2661_v42 = vadd.f32 %v4704_v28, %v4725_v12 }
0x4546   :  { %3988 = vpow2.f32 %v3653_v26 }
0x4549   :  { %v3061_v17 = vpop.f32.mrf.mxu1  ;;  %v3076_v46 = vpop.f32.mrf.mxu0 }
0x454a   :  { %v3987_v47 = vpop.eup %3986 }
0x454b   :  { %3101 = vrot.lane.b32.xlu2 %v3987_v47, %s4063_s23 }
0x454c   :  { %v3989_v50 = vpop.eup %3988 }
0x454d   :  { %v3082_v13 = vadd.f32 1.0, %v3989_v50 }
0x454f   :  { %3990 = vrcp.f32 %v3082_v13  ;;  %v3094_v58 = vand.u32 2147483648, %v3082_v13  ;;  %vm3088_vm12 = vweird.f32 %v3082_v13  ;;  %v3092_v2 = vand.u32 2147483647, %v3082_v13 }
0x4551   :  { %v3095_v62 = vor.u32 1.1754944e-38, %v3094_v58  ;;  %vm3093_vm14 = vcmp.eq.f32.partialorder %v3092_v2, 8.507059e+37 }
0x4555   :  { %v3991_v51 = vpop.eup %3990 }
0x4556   :  { %v3084_v48 = vmul.f32 %v3991_v51, %v3082_v13  ;;  %vm3089_vm11 = vweird.f32 %v3991_v51 }
0x4557   :  { %vm3090_vm13 = vmor %vm3088_vm12, %vm3089_vm11 }
0x4558   :  { %v3085_v54 = vsub.f32 1.0, %v3084_v48 }
0x455a   :  { %v3086_v18 = vmul.f32 %v3991_v51, %v3085_v54 }
0x455c   :  { %v3087_v55 = vadd.f32 %v3991_v51, %v3086_v18 }
0x455e   :  { %v3091_v60 = vsel %vm3090_vm13, %v3991_v51, %v3087_v55 }
0x455f   :  { %v3096_v0 = vsel %vm3093_vm14, %v3095_v62, %v3091_v60 }
0x4560   :  { %v3099_v57 = vmul.f32 %v3096_v0, %v3036_v24 }
0x45a5   :  { %v3102_v1 = vpop.permute.xlu2 %3101 }
0x45a6   :  { %v3104_v11 = vmul.f32 %v3102_v1, %v3096_v0 }
0x45a8   :  { %3106 = vrot.lane.b32.xlu0 %v3104_v11, %s4066_s7 }
0x461a   :  { %v3107_v45 = vpop.permute.xlu0 %3106 }
0x461b   :  { %v3109_v6 = vadd.f32 %v3107_v45, %v3099_v57 }
0x461d   :  { %3992 = vtanh.f32 %v3109_v6 }
0x4623   :  { %v3993_v14 = vpop.eup %3992 }
0x4624   :  { %3112 = vrot.lane.b32.xlu1 %v3993_v14, %s4063_s23 }
0x4696   :  { %v3113_v15 = vpop.permute.xlu1 %3112 }
0x4697   :  { %v3115_v25 = vmul.f32 %v3113_v15, %v3096_v0 }
0x4699   :  { %v3116_v34 = vpack.c.bf16 %v3115_v25, %v3115_v25 }
0x469b   :  { %3118 = vrot.lane.b32.xlu2 %v3116_v34, %s4066_s7 }
0x46f5   :  { %v4809_v37 = vpop.permute.xlu2 %3118 }
0x46f6   :  { %3655 = vmatmul.msk.bf16.vlgmr.msra.gmra.mxu3 %vm194_vm7, %v4809_v37 }
0x4779   :  { %v3147_v52 = vpop.f32.mrf.mxu3 }
0x477a   :  { %v3151_v21 = vadd.f32 %v3147_v52, %v2588_v3  ;;  %v3625_v52 = vmul.f32 -1.442695, %v4762_v10 }
0x477c   :  { %3994 = vtanh.f32 %v3151_v21  ;;  %v3656_v44 = vmul.f32 -1.442695, %v3151_v21 }
0x477e   :  { %3996 = vpow2.f32 %v3656_v44 }
0x4781   :  { %v3149_v29 = vpop.f32.mrf.mxu3 }
0x4782   :  { %v3995_v27 = vpop.eup %3994 }
0x4783   :  { %3174 = vrot.lane.b32.xlu0 %v3995_v27, %s4063_s23 }
0x4784   :  { %v3997_v9 = vpop.eup %3996 }
0x4785   :  { %v3155_v22 = vadd.f32 1.0, %v3997_v9 }
0x4787   :  { %3998 = vrcp.f32 %v3155_v22  ;;  %v3167_v7 = vand.u32 2147483648, %v3155_v22  ;;  %vm3161_vm3 = vweird.f32 %v3155_v22  ;;  %v3165_v53 = vand.u32 2147483647, %v3155_v22 }
0x4789   :  { %v3168_v4 = vor.u32 1.1754944e-38, %v3167_v7  ;;  %vm3166_vm5 = vcmp.eq.f32.partialorder %v3165_v53, 8.507059e+37 }
0x478d   :  { %v3999_v16 = vpop.eup %3998 }
0x478e   :  { %v3157_v63 = vmul.f32 %v3999_v16, %v3155_v22  ;;  %vm3162_vm15 = vweird.f32 %v3999_v16 }
0x478f   :  { %vm3163_vm4 = vmor %vm3161_vm3, %vm3162_vm15 }
0x4790   :  { %v3158_v31 = vsub.f32 1.0, %v3157_v63 }
0x4792   :  { %v3159_v19 = vmul.f32 %v3999_v16, %v3158_v31 }
0x4794   :  { %v3160_v5 = vadd.f32 %v3999_v16, %v3159_v19 }
0x4796   :  { %v3164_v33 = vsel %vm3163_vm4, %v3999_v16, %v3160_v5 }
0x4797   :  { %v3169_v24 = vsel %vm3166_vm5, %v3168_v4, %v3164_v33 }
0x4798   :  { %v3172_v36 = vmul.f32 %v3169_v24, %v3109_v6 }
0x47f5   :  { %v3175_v30 = vpop.permute.xlu0 %3174 }
0x47f6   :  { %v3177_v35 = vmul.f32 %v3175_v30, %v3169_v24 }
0x47f8   :  { %3179 = vrot.lane.b32.xlu1 %v3177_v35, %s4066_s7  ;;  %v2734_v35 = vadd.f32 %v4704_v28, %v4760_v32 }
0x486a   :  { %v3180_v20 = vpop.permute.xlu1 %3179 }
0x486b   :  { %v3182_v23 = vadd.f32 %v3180_v20, %v3172_v36 }
0x486d   :  { %4000 = vtanh.f32 %v3182_v23 }
0x4873   :  { %v4001_v39 = vpop.eup %4000 }
0x4874   :  { %3185 = vrot.lane.b32.xlu2 %v4001_v39, %s4063_s23 }
0x48ce   :  { %v3186_v61 = vpop.permute.xlu2 %3185 }
0x48cf   :  { %v3188_v40 = vmul.f32 %v3186_v61, %v3169_v24 }
0x48d1   :  { %v3189_v56 = vpack.c.bf16 %v3188_v40, %v3188_v40 }
0x48d3   :  { %3191 = vrot.lane.b32.xlu0 %v3189_v56, %s4066_s7 }
0x4945   :  { %v3192_v41 = vpop.permute.xlu0 %3191 }
0x4946   :  { %3657 = vmatmul.msk.bf16.vlgmr.msra.gmra.mxu1 %vm194_vm7, %v3192_v41  ;;  %3658 = vmatmul.msk.bf16.vlgmr.msrb.gmra.mxu0 %vm194_vm7, %v3192_v41 }
0x49c3   :  { %v3205_v17 = vpop.f32.mrf.mxu1  ;;  %v3220_v46 = vpop.f32.mrf.mxu0 }
0x49c4   :  { %v3206_v47 = vadd.f32 %v4767_v38, %v3205_v17  ;;  %v3224_v26 = vadd.f32 %v3220_v46, %v2661_v42 }
0x49c6   :  { %3209 = vst.msk [vmem:[%s4904_s5 + $0x20] sm:$0xff] %vm122_vm2, %v3206_v47  ;;  %4002 = vtanh.f32 %v3224_v26  ;;  %v3659_v48 = vmul.f32 -1.442695, %v3224_v26 }
0x49c8   :  { %4004 = vpow2.f32 %v3659_v48 }
0x49cb   :  { %v3207_v50 = vpop.f32.mrf.mxu1  ;;  %v3222_v13 = vpop.f32.mrf.mxu0 }
0x49cc   :  { %v4003_v51 = vpop.eup %4002 }
0x49cd   :  { %3247 = vrot.lane.b32.xlu1 %v4003_v51, %s4063_s23 }
0x49ce   :  { %v4005_v54 = vpop.eup %4004 }
0x49cf   :  { %v3228_v12 = vadd.f32 1.0, %v4005_v54 }
0x49d1   :  { %4006 = vrcp.f32 %v3228_v12  ;;  %v3240_v62 = vand.u32 2147483648, %v3228_v12  ;;  %vm3234_vm8 = vweird.f32 %v3228_v12  ;;  %v3238_v1 = vand.u32 2147483647, %v3228_v12 }
0x49d2   :  { %4008 = vtanh.f32 %v4762_v10 }
0x49d3   :  { %v3241_v11 = vor.u32 1.1754944e-38, %v3240_v62  ;;  %vm3239_vm0 = vcmp.eq.f32.partialorder %v3238_v1, 8.507059e+37 }
0x49d7   :  { %v4007_v18 = vpop.eup %4006 }
0x49d8   :  { %v3230_v55 = vmul.f32 %v4007_v18, %v3228_v12  ;;  %vm3235_vm6 = vweird.f32 %v4007_v18  ;;  %v4009_v14 = vpop.eup %4008 }
0x49d9   :  { %vm3236_vm9 = vmor %vm3234_vm8, %vm3235_vm6 }
0x49da   :  { %v3231_v58 = vsub.f32 1.0, %v3230_v55 }
0x49dc   :  { %v3232_v2 = vmul.f32 %v4007_v18, %v3231_v58 }
0x49de   :  { %v3233_v60 = vadd.f32 %v4007_v18, %v3232_v2 }
0x49e0   :  { %v3237_v0 = vsel %vm3236_vm9, %v4007_v18, %v3233_v60 }
0x49e1   :  { %v3242_v45 = vsel %vm3239_vm0, %v3241_v11, %v3237_v0 }
0x49e2   :  { %v3245_v15 = vmul.f32 %v3242_v45, %v3182_v23 }
0x4a3f   :  { %v3248_v57 = vpop.permute.xlu1 %3247 }
0x4a40   :  { %v3250_v6 = vmul.f32 %v3248_v57, %v3242_v45 }
0x4a42   :  { %3252 = vrot.lane.b32.xlu2 %v3250_v6, %s4066_s7 }
0x4a4a   :  { %2775 = vrot.lane.b32.xlu2 %v4009_v14, %s4063_s23 }
0x4a9c   :  { %v3253_v25 = vpop.permute.xlu2 %3252 }
0x4a9d   :  { %v4832_v34 = vadd.f32 %v3253_v25, %v3245_v15 }
0x4a9f   :  { %4010 = vtanh.f32 %v4832_v34 }
0x4aa0   :  { %4012 = vpow2.f32 %v3625_v52 }
0x4aa4   :  { %v2776_v33 = vpop.permute.xlu2 %2775 }
0x4aa5   :  { %v4011_v3 = vpop.eup %4010 }
0x4aa6   :  { %3258 = vrot.lane.b32.xlu0 %v4011_v3, %s4063_s23  ;;  %v4013_v21 = vpop.eup %4012 }
0x4aa7   :  { %v2756_v29 = vadd.f32 1.0, %v4013_v21 }
0x4aa9   :  { %4014 = vrcp.f32 %v2756_v29  ;;  %v2768_v5 = vand.u32 2147483648, %v2756_v29  ;;  %vm2762_vm10 = vweird.f32 %v2756_v29  ;;  %v2766_v7 = vand.u32 2147483647, %v2756_v29 }
0x4aab   :  { %v2769_v53 = vor.u32 1.1754944e-38, %v2768_v5  ;;  %vm2767_vm12 = vcmp.eq.f32.partialorder %v2766_v7, 8.507059e+37 }
0x4aaf   :  { %v4015_v27 = vpop.eup %4014 }
0x4ab0   :  { %v2758_v44 = vmul.f32 %v4015_v27, %v2756_v29  ;;  %vm2763_vm1 = vweird.f32 %v4015_v27 }
0x4ab1   :  { %vm2764_vm11 = vmor %vm2762_vm10, %vm2763_vm1 }
0x4ab2   :  { %v2759_v9 = vsub.f32 1.0, %v2758_v44 }
0x4ab4   :  { %v2760_v22 = vmul.f32 %v4015_v27, %v2759_v9 }
0x4ab6   :  { %v2761_v31 = vadd.f32 %v4015_v27, %v2760_v22 }
0x4ab8   :  { %v2765_v10 = vsel %vm2764_vm11, %v4015_v27, %v2761_v31 }
0x4ab9   :  { %v2770_v4 = vsel %vm2767_vm12, %v2769_v53, %v2765_v10 }
0x4aba   :  { %v2778_v30 = vmul.f32 %v2776_v33, %v2770_v4  ;;  %v2773_v39 = vmul.f32 %v2770_v4, %v4733_v43 }
0x4b18   :  { %v3259_v16 = vpop.permute.xlu0 %3258 }
0x4b19   :  { %v3261_v63 = vmul.f32 %v3259_v16, %v3242_v45 }
0x4b1b   :  { %v3262_v19 = vpack.c.bf16 %v3261_v63, %v3261_v63 }
0x4b1d   :  { %3264 = vrot.lane.b32.xlu1 %v3262_v19, %s4066_s7 }
0x4b25   :  { %2780 = vrot.lane.b32.xlu1 %v2778_v30, %s4066_s7 }
0x4b8f   :  { %v3265_v24 = vpop.permute.xlu1 %3264 }
0x4b90   :  { %3661 = vmatmul.msk.bf16.vlgmr.msrb.gmra.mxu3 %vm194_vm7, %v3265_v24 }
0x4b97   :  { %v2781_v23 = vpop.permute.xlu1 %2780 }
0x4b98   :  { %v2783_v61 = vadd.f32 %v2781_v23, %v2773_v39 }
0x4c13   :  { %v3293_v36 = vpop.f32.mrf.mxu3 }
0x4c14   :  { %v3297_v20 = vadd.f32 %v3293_v36, %v2734_v35 }
0x4c16   :  { %4016 = vtanh.f32 %v3297_v20  ;;  %v3662_v42 = vmul.f32 -1.442695, %v3297_v20 }
0x4c17   :  { %4018 = vtanh.f32 %v2783_v61 }
0x4c18   :  { %4020 = vpow2.f32 %v3662_v42 }
0x4c1b   :  { %v3295_v40 = vpop.f32.mrf.mxu3 }
0x4c1c   :  { %v4017_v56 = vpop.eup %4016 }
0x4c1d   :  { %3320 = vrot.lane.b32.xlu0 %v4017_v56, %s4063_s23  ;;  %v4019_v41 = vpop.eup %4018 }
0x4c1e   :  { %v4021_v17 = vpop.eup %4020 }
0x4c1f   :  { %v3301_v46 = vadd.f32 1.0, %v4021_v17 }
0x4c21   :  { %4022 = vrcp.f32 %v3301_v46  ;;  %v3313_v43 = vand.u32 2147483648, %v3301_v46  ;;  %vm3307_vm14 = vweird.f32 %v3301_v46  ;;  %v3311_v51 = vand.u32 2147483647, %v3301_v46 }
0x4c23   :  { %v3314_v54 = vor.u32 1.1754944e-38, %v3313_v43  ;;  %vm3312_vm3 = vcmp.eq.f32.partialorder %v3311_v51, 8.507059e+37 }
0x4c25   :  { %2786 = vrot.lane.b32.xlu0 %v4019_v41, %s4063_s23 }
0x4c27   :  { %v4023_v32 = vpop.eup %4022 }
0x4c28   :  { %v3303_v47 = vmul.f32 %v4023_v32, %v3301_v46  ;;  %vm3308_vm13 = vweird.f32 %v4023_v32 }
0x4c29   :  { %vm3309_vm15 = vmor %vm3307_vm14, %vm3308_vm13 }
0x4c2a   :  { %v3304_v26 = vsub.f32 1.0, %v3303_v47 }
0x4c2c   :  { %v3305_v50 = vmul.f32 %v4023_v32, %v3304_v26 }
0x4c2e   :  { %v3306_v13 = vadd.f32 %v4023_v32, %v3305_v50 }
0x4c30   :  { %v3310_v48 = vsel %vm3309_vm15, %v4023_v32, %v3306_v13 }
0x4c31   :  { %v3315_v18 = vsel %vm3312_vm3, %v3314_v54, %v3310_v48 }
0x4c32   :  { %v3318_v62 = vmul.f32 %v3315_v18, %v4832_v34 }
0x4c8f   :  { %v3321_v12 = vpop.permute.xlu0 %3320 }
0x4c90   :  { %v3323_v55 = vmul.f32 %v3321_v12, %v3315_v18 }
0x4c92   :  { %3325 = vrot.lane.b32.xlu2 %v3323_v55, %s4066_s7 }
0x4c97   :  { %v2787_v58 = vpop.permute.xlu0 %2786 }
0x4c98   :  { %v2789_v2 = vmul.f32 %v2787_v58, %v2770_v4 }
0x4c9a   :  { %v2790_v60 = vpack.c.bf16 %v2789_v2, %v2789_v2 }
0x4c9c   :  { %2792 = vrot.lane.b32.xlu2 %v2790_v60, %s4066_s7 }
0x4cec   :  { %v3326_v1 = vpop.permute.xlu2 %3325 }
0x4ced   :  { %v4848_v0 = vadd.f32 %v3326_v1, %v3318_v62 }
0x4cef   :  { %4024 = vtanh.f32 %v4848_v0 }
0x4cf5   :  { %v4025_v11 = vpop.eup %4024 }
0x4cf6   :  { %3331 = vrot.lane.b32.xlu1 %v4025_v11, %s4063_s23  ;;  %v2793_v57 = vpop.permute.xlu2 %2792 }
0x4cf7   :  { %3626 = vmatmul.msk.bf16.vlgmr.msrb.gmra.mxu2 %vm194_vm7, %v2793_v57 }
0x4cf8   :  { %3129 = vmatpush.bf16.msrb.mxu2 %v4739_v49 }
0x4cfc   :  { %3130 = vmatpush.bf16.msrb.mxu2 %v4742_v59 }
0x4d07   :  { %3648 = vmatmul.msk.bf16.vlgmr.msra.gmra.mxu2 %vm194_vm7, %v4780_v8 }
0x4d08   :  { %3275 = vmatpush.bf16.msra.mxu2 %v4739_v49 }
0x4d0c   :  { %3276 = vmatpush.bf16.msra.mxu2 %v4742_v59 }
0x4d17   :  { %3654 = vmatmul.msk.bf16.vlgmr.msrb.gmra.mxu2 %vm194_vm7, %v4809_v37 }
0x4d18   :  { %3421 = vmatpush.bf16.msrb.mxu2 %v4739_v49 }
0x4d1c   :  { %3422 = vmatpush.bf16.msrb.mxu2 %v4742_v59 }
0x4d27   :  { %3660 = vmatmul.msk.bf16.vlgmr.msra.gmra.mxu2 %vm194_vm7, %v3265_v24 }
0x4d68   :  { %v3332_v45 = vpop.permute.xlu1 %3331 }
0x4d69   :  { %v3334_v6 = vmul.f32 %v3332_v45, %v3315_v18 }
0x4d6b   :  { %v3335_v14 = vpack.c.bf16 %v3334_v6, %v3334_v6 }
0x4d6d   :  { %3337 = vrot.lane.b32.xlu0 %v3335_v14, %s4066_s7 }
0x4d7a   :  { %v2806_v15 = vpop.f32.mrf.mxu2 }
0x4d7b   :  { %v2807_v44 = vadd.f32 %v4704_v28, %v2806_v15 }
0x4d82   :  { %v2808_v8 = vpop.f32.mrf.mxu2 }
0x4d8a   :  { %v2986_v25 = vpop.f32.mrf.mxu2 }
0x4d8b   :  { %v2987_v34 = vadd.f32 %v4767_v38, %v2986_v25 }
0x4d8d   :  { %2990 = vst.msk [vmem:[%s4904_s5 + $0x8] sm:$0xff] %vm122_vm2, %v2987_v34 }
0x4d92   :  { %v2988_v49 = vpop.f32.mrf.mxu2 }
0x4d9a   :  { %v3132_v37 = vpop.f32.mrf.mxu2 }
0x4d9b   :  { %v3133_v59 = vadd.f32 %v4767_v38, %v3132_v37 }
0x4d9d   :  { %3136 = vst.msk [vmem:[%s4904_s5 + $0x18] sm:$0xff] %vm122_vm2, %v3133_v59 }
0x4da2   :  { %v3134_v3 = vpop.f32.mrf.mxu2 }
0x4daa   :  { %v3278_v52 = vpop.f32.mrf.mxu2 }
0x4dab   :  { %v3279_v21 = vadd.f32 %v4767_v38, %v3278_v52 }
0x4dad   :  { %3282 = vst.msk [vmem:[%s4904_s5 + $0x28] sm:$0xff] %vm122_vm2, %v3279_v21 }
0x4db2   :  { %v3280_v29 = vpop.f32.mrf.mxu2 }
0x4ddf   :  { %v3338_v27 = vpop.permute.xlu0 %3337 }
0x4de0   :  { %3663 = vmatmul.msk.bf16.vlgmr.msrb.gmra.mxu1 %vm194_vm7, %v3338_v27  ;;  %3664 = vmatmul.msk.bf16.vlgmr.msra.gmra.mxu0 %vm194_vm7, %v3338_v27 }
0x4e5d   :  { %v3351_v9 = vpop.f32.mrf.mxu1  ;;  %v3366_v22 = vpop.f32.mrf.mxu0 }
0x4e5e   :  { %v3352_v16 = vadd.f32 %v4767_v38, %v3351_v9  ;;  %v3370_v63 = vadd.f32 %v3366_v22, %v2807_v44 }
0x4e60   :  { %3355 = vst.msk [vmem:[%s4904_s5 + $0x30] sm:$0xff] %vm122_vm2, %v3352_v16  ;;  %4026 = vtanh.f32 %v3370_v63  ;;  %v3665_v7 = vmul.f32 -1.442695, %v3370_v63 }
0x4e62   :  { %4028 = vpow2.f32 %v3665_v7 }
0x4e65   :  { %v3353_v31 = vpop.f32.mrf.mxu1  ;;  %v3368_v19 = vpop.f32.mrf.mxu0 }
0x4e66   :  { %v4027_v5 = vpop.eup %4026 }
0x4e67   :  { %3393 = vrot.lane.b32.xlu1 %v4027_v5, %s4063_s23 }
0x4e68   :  { %v4029_v10 = vpop.eup %4028 }
0x4e69   :  { %v3374_v28 = vadd.f32 1.0, %v4029_v10 }
0x4e6b   :  { %4030 = vrcp.f32 %v3374_v28  ;;  %v3386_v35 = vand.u32 2147483648, %v3374_v28  ;;  %vm3380_vm5 = vweird.f32 %v3374_v28  ;;  %v3384_v36 = vand.u32 2147483647, %v3374_v28 }
0x4e6d   :  { %v3387_v23 = vor.u32 1.1754944e-38, %v3386_v35  ;;  %vm3385_vm8 = vcmp.eq.f32.partialorder %v3384_v36, 8.507059e+37 }
0x4e71   :  { %v4031_v53 = vpop.eup %4030 }
0x4e72   :  { %v3376_v33 = vmul.f32 %v4031_v53, %v3374_v28  ;;  %vm3381_vm4 = vweird.f32 %v4031_v53 }
0x4e73   :  { %vm3382_vm6 = vmor %vm3380_vm5, %vm3381_vm4 }
0x4e74   :  { %v3377_v4 = vsub.f32 1.0, %v3376_v33 }
0x4e76   :  { %v3378_v30 = vmul.f32 %v4031_v53, %v3377_v4 }
0x4e78   :  { %v3379_v24 = vadd.f32 %v4031_v53, %v3378_v30 }
0x4e7a   :  { %v3383_v20 = vsel %vm3382_vm6, %v4031_v53, %v3379_v24 }
0x4e7b   :  { %v3388_v61 = vsel %vm3385_vm8, %v3387_v23, %v3383_v20 }
0x4e7c   :  { %v3391_v56 = vmul.f32 %v3388_v61, %v4848_v0 }
0x4ed9   :  { %v3394_v39 = vpop.permute.xlu1 %3393 }
0x4eda   :  { %v3396_v40 = vmul.f32 %v3394_v39, %v3388_v61 }
0x4edc   :  { %3398 = vrot.lane.b32.xlu2 %v3396_v40, %s4066_s7 }
0x4f36   :  { %v3399_v41 = vpop.permute.xlu2 %3398 }
0x4f37   :  { %v3401_v42 = vadd.f32 %v3399_v41, %v3391_v56 }
0x4f39   :  { %4032 = vtanh.f32 %v3401_v42 }
0x4f3f   :  { %v4033_v17 = vpop.eup %4032 }
0x4f40   :  { %3404 = vrot.lane.b32.xlu0 %v4033_v17, %s4063_s23 }
0x4fb2   :  { %v3405_v46 = vpop.permute.xlu0 %3404 }
0x4fb3   :  { %v3407_v32 = vmul.f32 %v3405_v46, %v3388_v61 }
0x4fb5   :  { %v3408_v47 = vpack.c.bf16 %v3407_v32, %v3407_v32 }
0x4fb7   :  { %3410 = vrot.lane.b32.xlu1 %v3408_v47, %s4066_s7 }
0x5029   :  { %v3411_v26 = vpop.permute.xlu1 %3410 }
0x502a   :  { %3666 = vmatmul.msk.bf16.vlgmr.msrb.gmra.mxu2 %vm194_vm7, %v3411_v26 }
0x50ad   :  { %v3424_v50 = vpop.f32.mrf.mxu2 }
0x50ae   :  { %v3425_v13 = vadd.f32 %v4767_v38, %v3424_v50 }
0x50b0   :  { %3428 = vst.msk [vmem:[%s4904_s5 + $0x38] sm:$0xff] %vm122_vm2, %v3425_v13 }
0x50b5   :  { %v3426_v43 = vpop.f32.mrf.mxu2 }
0x50b6   :  { %3437 = vsyncpa [#allocation5], 1 }

</bundles_post_ra>
